<compile_context>
chip_gen: v5e
topology: v5e:2x2
jax: 0.10.0
libtpu: 0.0.40
codegen_flags: <defaults>
</compile_context>

<pallas_src>
import functools

import jax
import jax.numpy as jnp
from jax import lax
from jax.experimental import pallas as pl
from jax.experimental.pallas import tpu as pltpu

HIDDEN_SIZE = 32   # module's configurable hidden_size
LN_EPS = 1e-5      # PyTorch nn.LayerNorm default
LANE = 128


def _round_up(n, m):
    return (n + m - 1) // m * m


# ----------------------------- kernel ------------------------------------- #

def _silu(h):
    # x * sigmoid(x), with sigmoid(x) = 0.5*tanh(0.5*x) + 0.5: a single EUP
    # push (tanh) and no VPU `1 + exp` add or reciprocal.
    return h * (0.5 * jnp.tanh(0.5 * h) + 0.5)


def _layer_norm(h, gamma, beta, n):
    # Single-pass statistics over the last dim; `n` is the number of *real*
    # lanes.  When h is lane-padded, the padded lanes are exactly zero, so
    # sum(h)/n and sum(h*h)/n are the exact biased mean / E[x^2] (PyTorch
    # LayerNorm uses the biased variance).
    inv_n = 1.0 / n
    mu = jnp.sum(h, axis=-1, keepdims=True) * inv_n
    ms = jnp.sum(h * h, axis=-1, keepdims=True) * inv_n
    var = ms - mu * mu
    return (h - mu) * lax.rsqrt(var + LN_EPS) * gamma + beta


def fidelity_mlp_kernel(x_ref, p1_ref, w2_ref, p2_ref, w3_ref, p3_ref, wo_ref,
                        o_ref, *, hidden):
    x = x_ref[...]                                   # (TB, 1) f32

    p1 = p1_ref[...]                                 # (4, 128) f32
    w1, b1, g1, be1 = p1[0:1], p1[1:2], p1[2:3], p1[3:4]
    p2 = p2_ref[...]                                 # (3, 256) f32
    b2, g2, be2 = p2[0:1], p2[1:2], p2[2:3]
    p3 = p3_ref[...]                                 # (4, HP) f32
    b3, g3, be3 = p3[0:1], p3[1:2], p3[2:3]
    bo = p3[3:4, :hidden]                            # (1, hidden) f32

    # Linear(1 -> 128): K == 1, so a VPU broadcast multiply, not an MXU op.
    h = x * w1 + b1                                  # (TB, 128) f32
    h = _silu(_layer_norm(h, g1, be1, float(p1_ref.shape[1])))

    # Linear(128 -> 256): bf16 operands, f32 accumulation on the MXU.
    h = jnp.dot(h.astype(jnp.bfloat16), w2_ref[...],
                preferred_element_type=jnp.float32) + b2
    h = _silu(_layer_norm(h, g2, be2, float(p2_ref.shape[1])))

    # Linear(256 -> hidden), lane-padded to HP.  Padded columns of w3 and
    # padded lanes of b3 are exactly zero => padded lanes of h are exactly 0,
    # so the mask-free statistics (divide by `hidden`) are exact, and the
    # zero padded gamma/beta keep the padded lanes at 0 afterwards.
    h = jnp.dot(h.astype(jnp.bfloat16), w3_ref[...],
                preferred_element_type=jnp.float32) + b3
    h = jnp.tanh(_layer_norm(h, g3, be3, float(hidden)))

    # output_proj: Linear(hidden -> hidden).  wo is (HP, hidden) with padded
    # rows zero; the output is stored un-padded (lane-masked vst is fine,
    # the vst slot has slack) so HBM writes match the real bytes.
    o_ref[...] = jnp.dot(h.astype(jnp.bfloat16), wo_ref[...],
                         preferred_element_type=jnp.float32) + bo


# ----------------------------- wrapper ------------------------------------ #

def prepare_params(p, hidden):
    """Pack / pad / cast the plain f32 parameter dict for the kernel.

    Invariant the kernel relies on (do not break when loading params from
    elsewhere): padded columns of w3, padded lanes of b3/g3/be3/bo and padded
    rows of wo must be *exactly zero*.
    """
    hp = _round_up(hidden, LANE)

    def pad_cols(a):
        return jnp.pad(a, ((0, 0), (0, hp - a.shape[1])))

    p1 = jnp.concatenate([p["w1"], p["b1"], p["g1"], p["be1"]], axis=0)   # (4,128)
    p2 = jnp.concatenate([p["b2"], p["g2"], p["be2"]], axis=0)            # (3,256)
    p3 = jnp.concatenate([pad_cols(p["b3"]), pad_cols(p["g3"]),
                          pad_cols(p["be3"]), pad_cols(p["bo"])], axis=0)  # (4,hp)
    w2 = p["w2"].astype(jnp.bfloat16)                                     # (128,256)
    w3 = pad_cols(p["w3"]).astype(jnp.bfloat16)                           # (256,hp)
    wo = jnp.pad(p["wo"], ((0, hp - hidden), (0, 0))).astype(jnp.bfloat16)  # (hp,hidden)
    return {"p1": p1, "w2": w2, "p2": p2, "w3": w3, "p3": p3, "wo": wo}


def fidelity_mlp_forward(x, kp, *, hidden, tb=2048):
    B = x.shape[0]

    # Large batch tile (amortizes ~0.35us/grid-step overhead), multiple of 16
    # (bf16 sublane tile), capped near ceil(B/2) so num_blocks >= 2 and the
    # "parallel" batch axis can shard across 2 TensorCores on v7x.
    TB = max(16, min(_round_up(tb, 16), _round_up(pl.cdiv(B, 2), 16)))
    num_blocks = pl.cdiv(B, TB)
    Bp = num_blocks * TB
    if Bp != B:
        x = jnp.pad(x, ((0, Bp - B), (0, 0)))

    const = lambda i: (0, 0)
    kernel = functools.partial(fidelity_mlp_kernel, hidden=hidden)
    out = pl.pallas_call(
        kernel,
        out_shape=jax.ShapeDtypeStruct((Bp, hidden), jnp.float32),
        grid=(num_blocks,),
        in_specs=[
            pl.BlockSpec((TB, 1), lambda i: (i, 0)),     # x   (pipelined per tile)
            pl.BlockSpec(kp["p1"].shape, const),         # w1/b1/g1/be1 (resident)
            pl.BlockSpec(kp["w2"].shape, const),         # w2  bf16     (resident)
            pl.BlockSpec(kp["p2"].shape, const),         # b2/g2/be2    (resident)
            pl.BlockSpec(kp["w3"].shape, const),         # w3  bf16     (resident)
            pl.BlockSpec(kp["p3"].shape, const),         # b3/g3/be3/bo (resident)
            pl.BlockSpec(kp["wo"].shape, const),         # wo  bf16     (resident)
        ],
        out_specs=pl.BlockSpec((TB, hidden), lambda i: (i, 0)),
        compiler_params=pltpu.CompilerParams(
            dimension_semantics=("parallel",),
            vmem_limit_bytes=48 * 1024 * 1024),
    )(x, kp["p1"], kp["w2"], kp["p2"], kp["w3"], kp["p3"], kp["wo"])
    return out if Bp == B else out[:B]


# ----------------------- init + pure-JAX reference ------------------------ #

def init_params(key, hidden_size):
    """Matches FidelityMLP._init_weights: Linear W ~ N(0, 0.01), b = 0;
    LayerNorm gamma=1, beta=0. Weights stored transposed (in, out)."""
    ks = jax.random.split(key, 4)
    std = 0.01

    def lin(k, fan_in, fan_out):
        w = std * jax.random.normal(k, (fan_in, fan_out), dtype=jnp.float32)
        b = jnp.zeros((1, fan_out), dtype=jnp.float32)
        return w, b

    w1, b1 = lin(ks[0], 1, 128)
    w2, b2 = lin(ks[1], 128, 256)
    w3, b3 = lin(ks[2], 256, hidden_size)
    wo, bo = lin(ks[3], hidden_size, hidden_size)
    return {
        "w1": w1, "b1": b1,
        "g1": jnp.ones((1, 128), jnp.float32), "be1": jnp.zeros((1, 128), jnp.float32),
        "w2": w2, "b2": b2,
        "g2": jnp.ones((1, 256), jnp.float32), "be2": jnp.zeros((1, 256), jnp.float32),
        "w3": w3, "b3": b3,
        "g3": jnp.ones((1, hidden_size), jnp.float32),
        "be3": jnp.zeros((1, hidden_size), jnp.float32),
        "wo": wo, "bo": bo,
    }


def reference_forward(x, p):
    def ln(h, g, b):
        mu = jnp.mean(h, axis=-1, keepdims=True)
        var = jnp.mean((h - mu) ** 2, axis=-1, keepdims=True)
        return (h - mu) * lax.rsqrt(var + LN_EPS) * g + b

    h = x @ p["w1"] + p["b1"]
    h = ln(h, p["g1"], p["be1"]); h = h * jax.nn.sigmoid(h)
    h = h @ p["w2"] + p["b2"]
    h = ln(h, p["g2"], p["be2"]); h = h * jax.nn.sigmoid(h)
    h = h @ p["w3"] + p["b3"]
    h = ln(h, p["g3"], p["be3"]); h = jnp.tanh(h)
    return h @ p["wo"] + p["bo"]


# TODO(synk): save_pretrained / from_pretrained are file-I/O utilities with no
# kernel equivalent; only the forward pass is implemented here.

if __name__ == "__main__":
    key = jax.random.PRNGKey(0)
    k_param, k_x = jax.random.split(key)

    B = 512  # -> TB=256, 2 grid steps: exercises the pipeline + parallel axis
    params = init_params(k_param, HIDDEN_SIZE)
    kparams = prepare_params(params, HIDDEN_SIZE)
    x = jax.random.normal(k_x, (B, 1), dtype=jnp.float32)

    fwd = jax.jit(functools.partial(fidelity_mlp_forward, hidden=HIDDEN_SIZE))
    out = jax.block_until_ready(fwd(x, kparams))

    ref = reference_forward(x, params)
    assert out.shape == (B, HIDDEN_SIZE)
    max_err = float(jnp.max(jnp.abs(out - ref)))
    assert max_err < 2e-2, f"max abs err {max_err}"  # bf16 matmuls vs f32 ref

    print("KERNEL_OK")
</pallas_src>

<mosaic_0001>
module attributes {stable_mosaic.version = 11 : i64} {
  func.func @fidelity_mlp_kernel(%arg0: i32, %arg1: memref<256x1xf32, #tpu.memory_space<vmem>>, %arg2: memref<4x128xf32, #tpu.memory_space<vmem>>, %arg3: memref<128x256xbf16, #tpu.memory_space<vmem>>, %arg4: memref<3x256xf32, #tpu.memory_space<vmem>>, %arg5: memref<256x128xbf16, #tpu.memory_space<vmem>>, %arg6: memref<4x128xf32, #tpu.memory_space<vmem>>, %arg7: memref<128x32xbf16, #tpu.memory_space<vmem>>, %arg8: memref<256x32xf32, #tpu.memory_space<vmem>>) attributes {dimension_semantics = [#tpu.dimension_semantics<parallel>], iteration_bounds = array<i64: 2>, scalar_prefetch = 0 : i64, scratch_operands = 0 : i64, tpu.core_type = #tpu.core_type<tc>, window_params = [{transform_indices = @transform_0, window_bounds = array<i64: 256, 1>}, {pipeline_mode = #tpu.pipeline_mode<synchronous>, transform_indices = @transform_1, window_bounds = array<i64: 4, 128>}, {pipeline_mode = #tpu.pipeline_mode<synchronous>, transform_indices = @transform_2, window_bounds = array<i64: 128, 256>}, {pipeline_mode = #tpu.pipeline_mode<synchronous>, transform_indices = @transform_3, window_bounds = array<i64: 3, 256>}, {pipeline_mode = #tpu.pipeline_mode<synchronous>, transform_indices = @transform_4, window_bounds = array<i64: 256, 128>}, {pipeline_mode = #tpu.pipeline_mode<synchronous>, transform_indices = @transform_5, window_bounds = array<i64: 4, 128>}, {pipeline_mode = #tpu.pipeline_mode<synchronous>, transform_indices = @transform_6, window_bounds = array<i64: 128, 32>}, {transform_indices = @transform_7, window_bounds = array<i64: 256, 32>}]} {
    %c0 = arith.constant 0 : index
    %c0_0 = arith.constant 0 : index
    %0 = vector.load %arg1[%c0, %c0_0] : memref<256x1xf32, #tpu.memory_space<vmem>>, vector<256x1xf32>
    %c0_1 = arith.constant 0 : index
    %c0_2 = arith.constant 0 : index
    %1 = vector.load %arg2[%c0_1, %c0_2] : memref<4x128xf32, #tpu.memory_space<vmem>>, vector<4x128xf32>
    %2 = vector.extract_strided_slice %1 {offsets = [0, 0], sizes = [1, 128], strides = [1, 1]} : vector<4x128xf32> to vector<1x128xf32>
    %3 = vector.extract_strided_slice %1 {offsets = [1, 0], sizes = [1, 128], strides = [1, 1]} : vector<4x128xf32> to vector<1x128xf32>
    %4 = vector.extract_strided_slice %1 {offsets = [2, 0], sizes = [1, 128], strides = [1, 1]} : vector<4x128xf32> to vector<1x128xf32>
    %5 = vector.extract_strided_slice %1 {offsets = [3, 0], sizes = [1, 128], strides = [1, 1]} : vector<4x128xf32> to vector<1x128xf32>
    %c0_3 = arith.constant 0 : index
    %c0_4 = arith.constant 0 : index
    %6 = vector.load %arg4[%c0_3, %c0_4] : memref<3x256xf32, #tpu.memory_space<vmem>>, vector<3x256xf32>
    %7 = vector.extract_strided_slice %6 {offsets = [0, 0], sizes = [1, 256], strides = [1, 1]} : vector<3x256xf32> to vector<1x256xf32>
    %8 = vector.extract_strided_slice %6 {offsets = [1, 0], sizes = [1, 256], strides = [1, 1]} : vector<3x256xf32> to vector<1x256xf32>
    %9 = vector.extract_strided_slice %6 {offsets = [2, 0], sizes = [1, 256], strides = [1, 1]} : vector<3x256xf32> to vector<1x256xf32>
    %c0_5 = arith.constant 0 : index
    %c0_6 = arith.constant 0 : index
    %10 = vector.load %arg6[%c0_5, %c0_6] : memref<4x128xf32, #tpu.memory_space<vmem>>, vector<4x128xf32>
    %11 = vector.extract_strided_slice %10 {offsets = [0, 0], sizes = [1, 128], strides = [1, 1]} : vector<4x128xf32> to vector<1x128xf32>
    %12 = vector.extract_strided_slice %10 {offsets = [1, 0], sizes = [1, 128], strides = [1, 1]} : vector<4x128xf32> to vector<1x128xf32>
    %13 = vector.extract_strided_slice %10 {offsets = [2, 0], sizes = [1, 128], strides = [1, 1]} : vector<4x128xf32> to vector<1x128xf32>
    %14 = vector.extract_strided_slice %10 {offsets = [3, 0], sizes = [1, 32], strides = [1, 1]} : vector<4x128xf32> to vector<1x32xf32>
    %15 = vector.broadcast %0 : vector<256x1xf32> to vector<256x128xf32>
    %16 = vector.broadcast %2 : vector<1x128xf32> to vector<256x128xf32>
    %17 = arith.mulf %15, %16 : vector<256x128xf32>
    %18 = vector.broadcast %3 : vector<1x128xf32> to vector<256x128xf32>
    %19 = arith.addf %17, %18 : vector<256x128xf32>
    %cst = arith.constant dense<0.000000e+00> : vector<256xf32>
    %20 = vector.multi_reduction <add>, %19, %cst [1] : vector<256x128xf32> to vector<256xf32>
    %21 = vector.shape_cast %20 : vector<256xf32> to vector<256x1xf32>
    %cst_7 = arith.constant 7.812500e-03 : f32
    %22 = vector.broadcast %cst_7 : f32 to vector<256x1xf32>
    %23 = arith.mulf %21, %22 : vector<256x1xf32>
    %24 = arith.mulf %19, %19 : vector<256x128xf32>
    %cst_8 = arith.constant dense<0.000000e+00> : vector<256xf32>
    %25 = vector.multi_reduction <add>, %24, %cst_8 [1] : vector<256x128xf32> to vector<256xf32>
    %26 = vector.shape_cast %25 : vector<256xf32> to vector<256x1xf32>
    %cst_9 = arith.constant 7.812500e-03 : f32
    %27 = vector.broadcast %cst_9 : f32 to vector<256x1xf32>
    %28 = arith.mulf %26, %27 : vector<256x1xf32>
    %29 = arith.mulf %23, %23 : vector<256x1xf32>
    %30 = arith.subf %28, %29 : vector<256x1xf32>
    %31 = vector.broadcast %23 : vector<256x1xf32> to vector<256x128xf32>
    %32 = arith.subf %19, %31 : vector<256x128xf32>
    %cst_10 = arith.constant 9.99999974E-6 : f32
    %33 = vector.broadcast %cst_10 : f32 to vector<256x1xf32>
    %34 = arith.addf %30, %33 : vector<256x1xf32>
    %35 = math.rsqrt %34 : vector<256x1xf32>
    %36 = vector.broadcast %35 : vector<256x1xf32> to vector<256x128xf32>
    %37 = arith.mulf %32, %36 : vector<256x128xf32>
    %38 = vector.broadcast %4 : vector<1x128xf32> to vector<256x128xf32>
    %39 = arith.mulf %37, %38 : vector<256x128xf32>
    %40 = vector.broadcast %5 : vector<1x128xf32> to vector<256x128xf32>
    %41 = arith.addf %39, %40 : vector<256x128xf32>
    %cst_11 = arith.constant 5.000000e-01 : f32
    %42 = vector.broadcast %cst_11 : f32 to vector<256x128xf32>
    %43 = arith.mulf %42, %41 : vector<256x128xf32>
    %44 = math.tanh %43 : vector<256x128xf32>
    %cst_12 = arith.constant 5.000000e-01 : f32
    %45 = vector.broadcast %cst_12 : f32 to vector<256x128xf32>
    %46 = arith.mulf %45, %44 : vector<256x128xf32>
    %cst_13 = arith.constant 5.000000e-01 : f32
    %47 = vector.broadcast %cst_13 : f32 to vector<256x128xf32>
    %48 = arith.addf %46, %47 : vector<256x128xf32>
    %49 = arith.mulf %41, %48 : vector<256x128xf32>
    %50 = arith.truncf %49 : vector<256x128xf32> to vector<256x128xbf16>
    %c0_14 = arith.constant 0 : index
    %c0_15 = arith.constant 0 : index
    %51 = vector.load %arg3[%c0_14, %c0_15] : memref<128x256xbf16, #tpu.memory_space<vmem>>, vector<128x256xbf16>
    %cst_16 = arith.constant dense<0.000000e+00> : vector<256x256xf32>
    %52 = tpu.matmul %50, %51, %cst_16 {dimension_numbers = #tpu.dot_dimension_numbers<[1], [0], [0], [1], [0, 0, 1, 1], [], []>} : vector<256x128xbf16>, vector<128x256xbf16>, vector<256x256xf32> -> vector<256x256xf32>
    %53 = vector.broadcast %7 : vector<1x256xf32> to vector<256x256xf32>
    %54 = arith.addf %52, %53 : vector<256x256xf32>
    %cst_17 = arith.constant dense<0.000000e+00> : vector<256xf32>
    %55 = vector.multi_reduction <add>, %54, %cst_17 [1] : vector<256x256xf32> to vector<256xf32>
    %56 = vector.shape_cast %55 : vector<256xf32> to vector<256x1xf32>
    %cst_18 = arith.constant 3.906250e-03 : f32
    %57 = vector.broadcast %cst_18 : f32 to vector<256x1xf32>
    %58 = arith.mulf %56, %57 : vector<256x1xf32>
    %59 = arith.mulf %54, %54 : vector<256x256xf32>
    %cst_19 = arith.constant dense<0.000000e+00> : vector<256xf32>
    %60 = vector.multi_reduction <add>, %59, %cst_19 [1] : vector<256x256xf32> to vector<256xf32>
    %61 = vector.shape_cast %60 : vector<256xf32> to vector<256x1xf32>
    %cst_20 = arith.constant 3.906250e-03 : f32
    %62 = vector.broadcast %cst_20 : f32 to vector<256x1xf32>
    %63 = arith.mulf %61, %62 : vector<256x1xf32>
    %64 = arith.mulf %58, %58 : vector<256x1xf32>
    %65 = arith.subf %63, %64 : vector<256x1xf32>
    %66 = vector.broadcast %58 : vector<256x1xf32> to vector<256x256xf32>
    %67 = arith.subf %54, %66 : vector<256x256xf32>
    %cst_21 = arith.constant 9.99999974E-6 : f32
    %68 = vector.broadcast %cst_21 : f32 to vector<256x1xf32>
    %69 = arith.addf %65, %68 : vector<256x1xf32>
    %70 = math.rsqrt %69 : vector<256x1xf32>
    %71 = vector.broadcast %70 : vector<256x1xf32> to vector<256x256xf32>
    %72 = arith.mulf %67, %71 : vector<256x256xf32>
    %73 = vector.broadcast %8 : vector<1x256xf32> to vector<256x256xf32>
    %74 = arith.mulf %72, %73 : vector<256x256xf32>
    %75 = vector.broadcast %9 : vector<1x256xf32> to vector<256x256xf32>
    %76 = arith.addf %74, %75 : vector<256x256xf32>
    %cst_22 = arith.constant 5.000000e-01 : f32
    %77 = vector.broadcast %cst_22 : f32 to vector<256x256xf32>
    %78 = arith.mulf %77, %76 : vector<256x256xf32>
    %79 = math.tanh %78 : vector<256x256xf32>
    %cst_23 = arith.constant 5.000000e-01 : f32
    %80 = vector.broadcast %cst_23 : f32 to vector<256x256xf32>
    %81 = arith.mulf %80, %79 : vector<256x256xf32>
    %cst_24 = arith.constant 5.000000e-01 : f32
    %82 = vector.broadcast %cst_24 : f32 to vector<256x256xf32>
    %83 = arith.addf %81, %82 : vector<256x256xf32>
    %84 = arith.mulf %76, %83 : vector<256x256xf32>
    %85 = arith.truncf %84 : vector<256x256xf32> to vector<256x256xbf16>
    %c0_25 = arith.constant 0 : index
    %c0_26 = arith.constant 0 : index
    %86 = vector.load %arg5[%c0_25, %c0_26] : memref<256x128xbf16, #tpu.memory_space<vmem>>, vector<256x128xbf16>
    %cst_27 = arith.constant dense<0.000000e+00> : vector<256x128xf32>
    %87 = tpu.matmul %85, %86, %cst_27 {dimension_numbers = #tpu.dot_dimension_numbers<[1], [0], [0], [1], [0, 0, 1, 1], [], []>} : vector<256x256xbf16>, vector<256x128xbf16>, vector<256x128xf32> -> vector<256x128xf32>
    %88 = vector.broadcast %11 : vector<1x128xf32> to vector<256x128xf32>
    %89 = arith.addf %87, %88 : vector<256x128xf32>
    %cst_28 = arith.constant dense<0.000000e+00> : vector<256xf32>
    %90 = vector.multi_reduction <add>, %89, %cst_28 [1] : vector<256x128xf32> to vector<256xf32>
    %91 = vector.shape_cast %90 : vector<256xf32> to vector<256x1xf32>
    %cst_29 = arith.constant 3.125000e-02 : f32
    %92 = vector.broadcast %cst_29 : f32 to vector<256x1xf32>
    %93 = arith.mulf %91, %92 : vector<256x1xf32>
    %94 = arith.mulf %89, %89 : vector<256x128xf32>
    %cst_30 = arith.constant dense<0.000000e+00> : vector<256xf32>
    %95 = vector.multi_reduction <add>, %94, %cst_30 [1] : vector<256x128xf32> to vector<256xf32>
    %96 = vector.shape_cast %95 : vector<256xf32> to vector<256x1xf32>
    %cst_31 = arith.constant 3.125000e-02 : f32
    %97 = vector.broadcast %cst_31 : f32 to vector<256x1xf32>
    %98 = arith.mulf %96, %97 : vector<256x1xf32>
    %99 = arith.mulf %93, %93 : vector<256x1xf32>
    %100 = arith.subf %98, %99 : vector<256x1xf32>
    %101 = vector.broadcast %93 : vector<256x1xf32> to vector<256x128xf32>
    %102 = arith.subf %89, %101 : vector<256x128xf32>
    %cst_32 = arith.constant 9.99999974E-6 : f32
    %103 = vector.broadcast %cst_32 : f32 to vector<256x1xf32>
    %104 = arith.addf %100, %103 : vector<256x1xf32>
    %105 = math.rsqrt %104 : vector<256x1xf32>
    %106 = vector.broadcast %105 : vector<256x1xf32> to vector<256x128xf32>
    %107 = arith.mulf %102, %106 : vector<256x128xf32>
    %108 = vector.broadcast %12 : vector<1x128xf32> to vector<256x128xf32>
    %109 = arith.mulf %107, %108 : vector<256x128xf32>
    %110 = vector.broadcast %13 : vector<1x128xf32> to vector<256x128xf32>
    %111 = arith.addf %109, %110 : vector<256x128xf32>
    %112 = math.tanh %111 : vector<256x128xf32>
    %113 = arith.truncf %112 : vector<256x128xf32> to vector<256x128xbf16>
    %c0_33 = arith.constant 0 : index
    %c0_34 = arith.constant 0 : index
    %114 = vector.load %arg7[%c0_33, %c0_34] : memref<128x32xbf16, #tpu.memory_space<vmem>>, vector<128x32xbf16>
    %cst_35 = arith.constant dense<0.000000e+00> : vector<256x32xf32>
    %115 = tpu.matmul %113, %114, %cst_35 {dimension_numbers = #tpu.dot_dimension_numbers<[1], [0], [0], [1], [0, 0, 1, 1], [], []>} : vector<256x128xbf16>, vector<128x32xbf16>, vector<256x32xf32> -> vector<256x32xf32>
    %116 = vector.broadcast %14 : vector<1x32xf32> to vector<256x32xf32>
    %117 = arith.addf %115, %116 : vector<256x32xf32>
    %c0_36 = arith.constant 0 : index
    %c0_37 = arith.constant 0 : index
    %118 = vector.load %arg8[%c0_36, %c0_37] : memref<256x32xf32, #tpu.memory_space<vmem>>, vector<256x32xf32>
    tpu.vector_store %arg8[%c0_36, %c0_37], %117 {strides = array<i32>} : memref<256x32xf32, #tpu.memory_space<vmem>>, vector<256x32xf32>,
    return
  }
  func.func @transform_0(%arg0: i32) -> (i32, i32) {
    %c0_i32 = arith.constant 0 : i32
    %c0_i32_0 = arith.constant 0 : i32
    return %arg0, %c0_i32 : i32, i32
  }
  func.func @transform_1(%arg0: i32) -> (i32, i32) {
    %c0_i32 = arith.constant 0 : i32
    %c0_i32_0 = arith.constant 0 : i32
    %c0_i32_1 = arith.constant 0 : i32
    return %c0_i32, %c0_i32_0 : i32, i32
  }
  func.func @transform_2(%arg0: i32) -> (i32, i32) {
    %c0_i32 = arith.constant 0 : i32
    %c0_i32_0 = arith.constant 0 : i32
    %c0_i32_1 = arith.constant 0 : i32
    return %c0_i32, %c0_i32_0 : i32, i32
  }
  func.func @transform_3(%arg0: i32) -> (i32, i32) {
    %c0_i32 = arith.constant 0 : i32
    %c0_i32_0 = arith.constant 0 : i32
    %c0_i32_1 = arith.constant 0 : i32
    return %c0_i32, %c0_i32_0 : i32, i32
  }
  func.func @transform_4(%arg0: i32) -> (i32, i32) {
    %c0_i32 = arith.constant 0 : i32
    %c0_i32_0 = arith.constant 0 : i32
    %c0_i32_1 = arith.constant 0 : i32
    return %c0_i32, %c0_i32_0 : i32, i32
  }
  func.func @transform_5(%arg0: i32) -> (i32, i32) {
    %c0_i32 = arith.constant 0 : i32
    %c0_i32_0 = arith.constant 0 : i32
    %c0_i32_1 = arith.constant 0 : i32
    return %c0_i32, %c0_i32_0 : i32, i32
  }
  func.func @transform_6(%arg0: i32) -> (i32, i32) {
    %c0_i32 = arith.constant 0 : i32
    %c0_i32_0 = arith.constant 0 : i32
    %c0_i32_1 = arith.constant 0 : i32
    return %c0_i32, %c0_i32_0 : i32, i32
  }
  func.func @transform_7(%arg0: i32) -> (i32, i32) {
    %c0_i32 = arith.constant 0 : i32
    %c0_i32_0 = arith.constant 0 : i32
    return %arg0, %c0_i32 : i32, i32
  }
}

</mosaic_0001>

<bundles_post_ra>
// kernel: fidelity_mlp_forward.1
= control target key start
LH: loop header
LB: loop body
LE: loop exit
PB: predicated region body
PF: predicated region fallthrough
CT: control target
= control target key end

     0   :  { %s5241_s24 = smov 0   ;;  %s8789_s0 = inlined_call_operand.vmem [shape: f32[512,1], index: 0, kind: input, shape index: {}]   ;;  %s8790_s1 = inlined_call_operand.vmem [shape: f32[4,128], index: 1, kind: input, shape index: {}]   ;;  %s8791_s2 = inlined_call_operand.vmem [shape: bf16[128,256], index: 2, kind: input, shape index: {}]   ;;  %s8792_s3 = inlined_call_operand.vmem [shape: f32[3,256], index: 3, kind: input, shape index: {}]   ;;  %s8793_s4 = inlined_call_operand.vmem [shape: bf16[256,128], index: 4, kind: input, shape index: {}]   ;;  %s8794_s5 = inlined_call_operand.vmem [shape: f32[4,128], index: 5, kind: input, shape index: {}]   ;;  %s8795_s6 = inlined_call_operand.vmem [shape: bf16[128,32], index: 6, kind: input, shape index: {}]   ;;  %s8796_s7 = inlined_call_operand.vmem [shape: f32[512,32], index: 7, kind: output, shape index: {}]  }
   0x1 LB: > { %s4494_s25 = sadd.s32 4294967295, %s5198_s24   ;;  %p4498_p0 = scmp.ge.s32.totalorder %s5198_s24, 1  ;;  %s5198_s24 = sphi %s5241_s24, %s17_s24  }
   0x2   : > { %p238_p1 = scmp.lt.s32.totalorder %s5198_s24, 3 }
   0x4   : > { %p239_p2 = pnand %p4498_p0, %p238_p1 }
   0x6   : > { %242 = sbr.rel (%p239_p2) target bundleno = 2010 (0x7da), region = 48 }
   0xb   : > { %s4499_s26 = sshll.u32 %s4494_s25, 5  ;;  %v5200_v0 = vmov 0   ;;  %v5271_v10 = vld [vmem:[%s8790_s1] sm:$0xf]  ;;  %v4561_v58 = vld [vmem:[%s8791_s2 + $0x70] sm:$0xf] }
   0xc   : > { %4739 = vset.pattern.permute.xlu1 %v5200_v0  ;;  %4738 = vset.pattern.permute.xlu0 %v5200_v0  ;;  %p271_p3 = scmp.lt.s32.totalorder %s4499_s26, 63  ;;  %v5274_v11 = vperm.slane %v5271_v10, 0  ;;  %v5277_v12 = vperm.slane %v5271_v10, 1  ;;  %v4680_v59 = vld [vmem:[%s8791_s2 + $0x74] sm:$0xf0] }
   0xd   : > { %4740 = vset.pattern.permute.xlu2 %v5200_v0  ;;  %v4562_v63 = vor.u32 %v4680_v59, %v4561_v58 }
   0xe   : > { %s9033_s26 = smov (!%p271_p3, %s4499_s26), 63 }
   0xf   : > { %s4500_s27 = sshll.u32 %s9033_s26, 3  ;;  %4705 = vmatpush.bf16.msra.mxu1 %v4562_v63  ;;  %1592 = vmatpush.bf16.msra.mxu0 %v4562_v63 }
  0x10   : > { %s5257_s30 = scalar_lea.vmem %s8789_s0, %s4500_s27  ;;  %4706 = vmatpush.bf16.msra.mxu2 %v4562_v63  ;;  %4707 = vmatpush.bf16.msra.mxu3 %v4562_v63  ;;  %s8583_s17 = scalar_lea.vmem %s8796_s7, %s4500_s27 }
  0x11   : > { %v292_v1 = vld [vmem:[%s5257_s30 + $0x50] sm:$0xff]  ;;  %v290_v2 = vld [vmem:[%s5257_s30 + $0x40] sm:$0xff]  ;;  %v293_v4 = vld [vmem:[%s5257_s30 + $0x58] sm:$0xff] }
  0x12   : > { %369 = vperm.xlu1 %4739, %v292_v1   ;;  %359 = vperm.xlu0 %4738, %v290_v2   ;;  %v294_v3 = vld [vmem:[%s5257_s30 + $0x60] sm:$0xff]  ;;  %v291_v5 = vld [vmem:[%s5257_s30 + $0x48] sm:$0xff]  ;;  %v297_v7 = vld [vmem:[%s5257_s30 + $0x78] sm:$0xff] }
  0x13   : > { %379 = vperm.xlu2 %4740, %v294_v3   ;;  %v295_v6 = vld [vmem:[%s5257_s30 + $0x68] sm:$0xff]  ;;  %v296_v8 = vld [vmem:[%s5257_s30 + $0x70] sm:$0xff]  ;;  %v282_v9 = vld [vmem:[%s5257_s30] sm:$0xff] }
  0x14   : > { %v283_v48 = vld [vmem:[%s5257_s30 + $0x8] sm:$0xff]  ;;  %v286_v49 = vld [vmem:[%s5257_s30 + $0x20] sm:$0xff] }
  0x15   : > { %v287_v50 = vld [vmem:[%s5257_s30 + $0x28] sm:$0xff]  ;;  %v4553_v1 = vld [vmem:[%s8791_s2 + $0x60] sm:$0xf] }
  0x16   : > { %v4678_v2 = vld [vmem:[%s8791_s2 + $0x64] sm:$0xf0] }
  0x1a   : > { %374 = vperm.xlu1 %4739, %v293_v4   ;;  %364 = vperm.xlu0 %4738, %v291_v5   ;;  %v4554_v4 = vor.u32 %v4678_v2, %v4553_v1 }
  0x1b   : > { %384 = vperm.xlu2 %4740, %v295_v6  }
  0x1c   : > { %4708 = vmatpush.bf16.msra.mxu1 %v4554_v4  ;;  %1593 = vmatpush.bf16.msra.mxu0 %v4554_v4 }
  0x1d   : > { %4709 = vmatpush.bf16.msra.mxu2 %v4554_v4  ;;  %4710 = vmatpush.bf16.msra.mxu3 %v4554_v4 }
  0x22   : > { %394 = vperm.xlu1 %4739, %v297_v7   ;;  %389 = vperm.xlu0 %4738, %v296_v8  }
  0x2a   : > { %319 = vperm.xlu1 %4739, %v282_v9   ;;  %v4545_v9 = vld [vmem:[%s8791_s2 + $0x50] sm:$0xf] }
  0x6d   : > { %v380_v17 = vpop.permute.xlu2 %379 }
  0x6e   : > { %v490_v24 = vmul.f32 %v5274_v11, %v380_v17 }
  0x70   : > { %v5303_v29 = vadd.f32 %v5277_v12, %v490_v24  ;;  %v4674_v24 = vld [vmem:[%s8791_s2 + $0x44] sm:$0xf0] }
  0x72   : > { %v651_v34 = vmul.f32 %v5303_v29, %v5303_v29 }
  0x75   : > { %v385_v28 = vpop.permute.xlu2 %384 }
  0x76   : > { %v491_v30 = vmul.f32 %v5274_v11, %v385_v28 }
  0x78   : > { %v5308_v33 = vadd.f32 %v5277_v12, %v491_v30 }
  0x7a   : > { %v652_v39 = vmul.f32 %v5308_v33, %v5308_v33 }
  0x84   : > { %v370_v13 = vpop.permute.xlu1 %369  ;;  %v360_v14 = vpop.permute.xlu0 %359 }
  0x85   : > { %v488_v15 = vmul.f32 %v5274_v11, %v370_v13  ;;  %v486_v16 = vmul.f32 %v5274_v11, %v360_v14  ;;  %v4676_v13 = vld [vmem:[%s8791_s2 + $0x54] sm:$0xf0] }
  0x87   : > { %v5282_v18 = vadd.f32 %v5277_v12, %v488_v15  ;;  %v5285_v19 = vadd.f32 %v5277_v12, %v486_v16  ;;  %v4546_v15 = vor.u32 %v4676_v13, %v4545_v9  ;;  %v4505_v9 = vld [vmem:[%s8791_s2] sm:$0xf]  ;;  %v4666_v13 = vld [vmem:[%s8791_s2 + $0x4] sm:$0xf0] }
  0x89   : > { %563 = vadd.xlane.f32.xlu2 %v5282_v18  ;;  %559 = vadd.xlane.f32.xlu0 %v5285_v19  ;;  %v649_v27 = vmul.f32 %v5282_v18, %v5282_v18  ;;  %v647_v36 = vmul.f32 %v5285_v19, %v5285_v19 }
  0x8a   : > { %4711 = vmatpush.bf16.msra.mxu1 %v4546_v15  ;;  %1594 = vmatpush.bf16.msra.mxu0 %v4546_v15 }
  0x8b   : > { %4712 = vmatpush.bf16.msra.mxu2 %v4546_v15  ;;  %4713 = vmatpush.bf16.msra.mxu3 %v4546_v15  ;;  %v4506_v15 = vor.u32 %v4666_v13, %v4505_v9 }
  0x8c   : > { %v375_v20 = vpop.permute.xlu1 %374  ;;  %v365_v21 = vpop.permute.xlu0 %364 }
  0x8d   : > { %v489_v22 = vmul.f32 %v5274_v11, %v375_v20  ;;  %v487_v23 = vmul.f32 %v5274_v11, %v365_v21 }
  0x8f   : > { %v5293_v25 = vadd.f32 %v5277_v12, %v489_v22  ;;  %v5296_v26 = vadd.f32 %v5277_v12, %v487_v23  ;;  %v4537_v23 = vld [vmem:[%s8791_s2 + $0x40] sm:$0xf] }
  0x91   : > { %565 = vadd.xlane.f32.xlu2 %v5293_v25  ;;  %691 = vadd.xlane.f32.xlu0 %v649_v27  ;;  %v648_v42 = vmul.f32 %v5296_v26, %v5296_v26  ;;  %v650_v46 = vmul.f32 %v5293_v25, %v5293_v25  ;;  %v4538_v27 = vor.u32 %v4674_v24, %v4537_v23 }
  0x92   : > { %561 = vadd.xlane.f32.xlu1 %v5296_v26 }
  0x93   : > { %4714 = vmatpush.bf16.msra.mxu1 %v4538_v27  ;;  %1595 = vmatpush.bf16.msra.mxu0 %v4538_v27 }
  0x94   : > { %v390_v31 = vpop.permute.xlu0 %389  ;;  %v395_v37 = vpop.permute.xlu1 %394  ;;  %4715 = vmatpush.bf16.msra.mxu2 %v4538_v27  ;;  %4716 = vmatpush.bf16.msra.mxu3 %v4538_v27 }
  0x95   : > { %v492_v32 = vmul.f32 %v5274_v11, %v390_v31  ;;  %v493_v40 = vmul.f32 %v5274_v11, %v395_v37  ;;  %v4672_v37 = vld [vmem:[%s8791_s2 + $0x34] sm:$0xf0] }
  0x97   : > { %v5315_v35 = vadd.f32 %v5277_v12, %v492_v32  ;;  %v5325_v41 = vadd.f32 %v5277_v12, %v493_v40 }
  0x99   : > { %569 = vadd.xlane.f32.xlu2 %v5308_v33  ;;  %695 = vadd.xlane.f32.xlu0 %v651_v34  ;;  %v653_v38 = vmul.f32 %v5315_v35, %v5315_v35  ;;  %v654_v47 = vmul.f32 %v5325_v41, %v5325_v41 }
  0x9a   : > { %567 = vadd.xlane.f32.xlu1 %v5303_v29 }
  0x9c   : > { %v320_v43 = vpop.permute.xlu1 %319 }
  0x9d   : > { %v478_v44 = vmul.f32 %v5274_v11, %v320_v43 }
  0x9f   : > { %v5332_v45 = vadd.f32 %v5277_v12, %v478_v44 }
  0xa1   : > { %697 = vadd.xlane.f32.xlu0 %v652_v39  ;;  %687 = vadd.xlane.f32.xlu2 %v647_v36  ;;  %v639_v3 = vmul.f32 %v5332_v45, %v5332_v45  ;;  %v4529_v36 = vld [vmem:[%s8791_s2 + $0x30] sm:$0xf] }
  0xa2   : > { %699 = vadd.xlane.f32.xlu1 %v653_v38 }
  0xa9   : > { %573 = vadd.xlane.f32.xlu0 %v5325_v41  ;;  %689 = vadd.xlane.f32.xlu2 %v648_v42  ;;  %v4530_v42 = vor.u32 %v4672_v37, %v4529_v36 }
  0xab   : > { %4717 = vmatpush.bf16.msra.mxu1 %v4530_v42  ;;  %1596 = vmatpush.bf16.msra.mxu0 %v4530_v42 }
  0xac   : > { %4718 = vmatpush.bf16.msra.mxu2 %v4530_v42  ;;  %4719 = vmatpush.bf16.msra.mxu3 %v4530_v42  ;;  %v5455_v42 = vperm.slane %v5271_v10, 2 }
  0xb1   : > { %693 = vadd.xlane.f32.xlu2 %v650_v46  ;;  %543 = vadd.xlane.f32.xlu0 %v5332_v45 }
  0xb9   : > { %571 = vadd.xlane.f32.xlu2 %v5315_v35 }
  0xc1   : > { %701 = vadd.xlane.f32.xlu2 %v654_v47 }
  0xd9   : > { %324 = vperm.xlu2 %4740, %v283_v48  }
  0xe1   : > { %339 = vperm.xlu2 %4740, %v286_v49  }
  0xe9   : > { %344 = vperm.xlu2 %4740, %v287_v50   ;;  %v4521_v50 = vld [vmem:[%s8791_s2 + $0x20] sm:$0xf] }
  0xfc   : > { %v564_v51 = vpop.xlane.xlu2 %563  ;;  %v560_v52 = vpop.xlane.xlu0 %559 }
  0xfd   : > { %v5345_v55 = vmul.f32 0.0078125, %v564_v51  ;;  %v5363_v5 = vmul.f32 0.0078125, %v560_v52  ;;  %v4670_v51 = vld [vmem:[%s8791_s2 + $0x24] sm:$0xf0] }
  0xfe   : > { %v4522_v52 = vor.u32 %v4670_v51, %v4521_v50 }
  0xff   : > { %v777_v60 = vmul.f32 %v5345_v55, %v5345_v55  ;;  %v775_v7 = vmul.f32 %v5363_v5, %v5363_v5  ;;  %v839_v27 = vsub.f32 %v5285_v19, %v5363_v5  ;;  %v5458_v19 = vperm.slane %v5271_v10, 3 }
 0x100   : > { %4720 = vmatpush.bf16.msra.mxu1 %v4522_v52  ;;  %1597 = vmatpush.bf16.msra.mxu0 %v4522_v52 }
 0x101   : > { %4721 = vmatpush.bf16.msra.mxu2 %v4522_v52  ;;  %4722 = vmatpush.bf16.msra.mxu3 %v4522_v52 }
 0x104   : > { %v5343_v53 = vpop.xlane.xlu2 %565  ;;  %v692_v54 = vpop.xlane.xlu0 %691 }
 0x105   : > { %v562_v56 = vpop.xlane.xlu1 %561  ;;  %v745_v57 = vmul.f32 0.0078125, %v692_v54 }
 0x106   : > { %v5390_v32 = vmul.f32 0.0078125, %v562_v56  ;;  %v5414_v56 = vmul.f32 0.0078125, %v5343_v53  ;;  %v4668_v53 = vld [vmem:[%s8791_s2 + $0x14] sm:$0xf0] }
 0x107   : > { %v809_v0 = vsub.f32 %v745_v57, %v777_v60 }
 0x108   : > { %v776_v43 = vmul.f32 %v5390_v32, %v5390_v32  ;;  %v778_v2 = vmul.f32 %v5414_v56, %v5414_v56  ;;  %v840_v10 = vsub.f32 %v5296_v26, %v5390_v32 }
 0x109   : > { %v5365_v6 = vadd.f32 1e-05, %v809_v0 }
 0x10b   : > { %4741 = vrsqrt.f32 %v5365_v6  ;;  %vm1001_vm5 = vweird.f32 %v5365_v6 }
 0x10c   : > { %v570_v61 = vpop.xlane.xlu2 %569  ;;  %v696_v62 = vpop.xlane.xlu0 %695 }
 0x10d   : > { %v568_v8 = vpop.xlane.xlu1 %567  ;;  %v5378_v21 = vmul.f32 0.0078125, %v570_v61  ;;  %v747_v39 = vmul.f32 0.0078125, %v696_v62  ;;  %v4513_v62 = vld [vmem:[%s8791_s2 + $0x10] sm:$0xf] }
 0x10e   : > { %v5376_v17 = vmul.f32 0.0078125, %v568_v8  ;;  %v4514_v1 = vor.u32 %v4668_v53, %v4513_v62 }
 0x10f   : > { %v780_v34 = vmul.f32 %v5378_v21, %v5378_v21 }
 0x110   : > { %v779_v31 = vmul.f32 %v5376_v17, %v5376_v17  ;;  %4723 = vmatpush.bf16.msra.mxu1 %v4514_v1  ;;  %1598 = vmatpush.bf16.msra.mxu0 %v4514_v1 }
 0x111   : > { %v5401_v38 = vpop.eup %4741  ;;  %4724 = vmatpush.bf16.msra.mxu2 %v4514_v1  ;;  %4725 = vmatpush.bf16.msra.mxu3 %v4514_v1 }
 0x112   : > { %671 = vadd.xlane.f32.xlu2 %v639_v3  ;;  %v811_v47 = vsub.f32 %v747_v39, %v779_v31  ;;  %v996_v48 = vmul.f32 %v5401_v38, %v5365_v6  ;;  %vm1002_vm3 = vweird.f32 %v5401_v38 }
 0x113   : > { %vm5479_vm6 = vmor %vm1001_vm5, %vm1002_vm3 }
 0x114   : > { %v688_v14 = vpop.xlane.xlu2 %687  ;;  %v698_v20 = vpop.xlane.xlu0 %697  ;;  %v5420_v59 = vadd.f32 1e-05, %v811_v47  ;;  %v997_v61 = vmul.f32 %v5401_v38, %v996_v48  ;;  %4726 = vmatpush.bf16.msra.mxu1 %v4506_v15  ;;  %1599 = vmatpush.bf16.msra.mxu0 %v4506_v15 }
 0x115   : > { %v743_v16 = vmul.f32 0.0078125, %v688_v14  ;;  %v748_v30 = vmul.f32 0.0078125, %v698_v20  ;;  %v700_v31 = vpop.xlane.xlu1 %699  ;;  %4727 = vmatpush.bf16.msra.mxu2 %v4506_v15  ;;  %4728 = vmatpush.bf16.msra.mxu3 %v4506_v15 }
 0x116   : > { %vm1021_vm15 = vweird.f32 %v5420_v59 }
 0x117   : > { %v807_v22 = vsub.f32 %v743_v16, %v775_v7  ;;  %v812_v44 = vsub.f32 %v748_v30, %v780_v34  ;;  %v998_v7 = vmul.f32 0.5, %v997_v61 }
 0x119   : > { %v5386_v28 = vadd.f32 1e-05, %v807_v22  ;;  %v5416_v57 = vadd.f32 1e-05, %v812_v44  ;;  %v999_v30 = vsub.f32 1.5, %v998_v7 }
 0x11b   : > { %4743 = vrsqrt.f32 %v5386_v28  ;;  %vm981_vm1 = vweird.f32 %v5386_v28  ;;  %v1000_v47 = vmul.f32 %v5401_v38, %v999_v30  ;;  %vm1031_vm14 = vweird.f32 %v5416_v57 }
 0x11c   : > { %v690_v40 = vpop.xlane.xlu2 %689 }
 0x11d   : > { %v744_v46 = vmul.f32 0.0078125, %v690_v40  ;;  %v1004_v1 = vsel %vm5479_vm6, %v5401_v38, %v1000_v47 }
 0x11f   : > { %v808_v49 = vsub.f32 %v744_v46, %v776_v43  ;;  %v749_v43 = vmul.f32 0.0078125, %v700_v31  ;;  %v574_v46 = vpop.xlane.xlu0 %573 }
 0x121   : > { %v4744_v54 = vpop.eup %4743  ;;  %v5418_v58 = vadd.f32 1e-05, %v808_v49 }
 0x122   : > { %v976_v60 = vmul.f32 %v4744_v54, %v5386_v28  ;;  %vm982_vm0 = vweird.f32 %v4744_v54 }
 0x123   : > { %4745 = vrsqrt.f32 %v5418_v58  ;;  %vm983_vm2 = vmor %vm981_vm1, %vm982_vm0  ;;  %vm991_vm7 = vweird.f32 %v5418_v58 }
 0x124   : > { %v977_v63 = vmul.f32 %v4744_v54, %v976_v60  ;;  %v694_v0 = vpop.xlane.xlu2 %693  ;;  %4747 = vrsqrt.f32 %v5416_v57 }
 0x125   : > { %v746_v3 = vmul.f32 0.0078125, %v694_v0  ;;  %4749 = vrsqrt.f32 %v5420_v59 }
 0x126   : > { %v978_v4 = vmul.f32 0.5, %v977_v63 }
 0x127   : > { %v810_v8 = vsub.f32 %v746_v3, %v778_v2  ;;  %v841_v2 = vsub.f32 %v5282_v18, %v5345_v55 }
 0x128   : > { %v979_v14 = vsub.f32 1.5, %v978_v4 }
 0x129   : > { %v4746_v16 = vpop.eup %4745  ;;  %v5441_v20 = vadd.f32 1e-05, %v810_v8  ;;  %v1225_v15 = vmul.f32 %v1004_v1, %v841_v2 }
 0x12a   : > { %v980_v22 = vmul.f32 %v4744_v54, %v979_v14  ;;  %v986_v23 = vmul.f32 %v4746_v16, %v5418_v58  ;;  %v5445_v24 = vpop.eup %4747  ;;  %vm992_vm4 = vweird.f32 %v4746_v16 }
 0x12b   : > { %4751 = vrsqrt.f32 %v5441_v20  ;;  %v5450_v34 = vpop.eup %4749  ;;  %v1026_v5 = vmul.f32 %v5445_v24, %v5416_v57  ;;  %vm993_vm8 = vmor %vm991_vm7, %vm992_vm4  ;;  %vm1011_vm10 = vweird.f32 %v5441_v20  ;;  %vm1032_vm13 = vweird.f32 %v5445_v24 }
 0x12c   : > { %v987_v36 = vmul.f32 %v4746_v16, %v986_v23  ;;  %v572_v37 = vpop.xlane.xlu2 %571  ;;  %v984_v39 = vsel %vm983_vm2, %v4744_v54, %v980_v22  ;;  %v1016_v48 = vmul.f32 %v5450_v34, %v5420_v59  ;;  %v5472_v54 = vmul.f32 0.0078125, %v574_v46  ;;  %vm5525_vm0 = vmor %vm1031_vm14, %vm1032_vm13 }
 0x12d   : > { %v5452_v28 = vmul.f32 0.0078125, %v572_v37  ;;  %v1223_v40 = vmul.f32 %v984_v39, %v839_v27  ;;  %v1027_v53 = vmul.f32 %v5445_v24, %v1026_v5  ;;  %v1258_v39 = vmul.f32 %v5455_v42, %v1225_v15 }
 0x12e   : > { %v988_v44 = vmul.f32 0.5, %v987_v36  ;;  %v1017_v6 = vmul.f32 %v5450_v34, %v1016_v48  ;;  %v782_v58 = vmul.f32 %v5472_v54, %v5472_v54  ;;  %vm1022_vm12 = vweird.f32 %v5450_v34 }
 0x12f   : > { %v781_v49 = vmul.f32 %v5452_v28, %v5452_v28  ;;  %v1256_v50 = vmul.f32 %v5455_v42, %v1223_v40  ;;  %v1028_v13 = vmul.f32 0.5, %v1027_v53  ;;  %vm5535_vm1 = vmor %vm1021_vm15, %vm1022_vm12 }
 0x130   : > { %v989_v51 = vsub.f32 1.5, %v988_v44  ;;  %v1018_v22 = vmul.f32 0.5, %v1017_v6 }
 0x131   : > { %v4752_v52 = vpop.eup %4751  ;;  %v813_v60 = vsub.f32 %v749_v43, %v781_v49  ;;  %v5475_v61 = vadd.f32 %v5458_v19, %v1256_v50  ;;  %v1029_v30 = vsub.f32 1.5, %v1028_v13  ;;  %v5519_v49 = vadd.f32 %v5458_v19, %v1258_v39 }
 0x132   : > { %v990_v26 = vmul.f32 %v4746_v16, %v989_v51  ;;  %v1006_v32 = vmul.f32 %v4752_v52, %v5441_v20  ;;  %vm1012_vm9 = vweird.f32 %v4752_v52  ;;  %v1019_v36 = vsub.f32 1.5, %v1018_v22 }
 0x133   : > { %v5487_v63 = vadd.f32 1e-05, %v813_v60  ;;  %v1321_v0 = vmul.f32 0.5, %v5475_v61  ;;  %vm1013_vm11 = vmor %vm1011_vm10, %vm1012_vm9 }
 0x134   : > { %v1007_v3 = vmul.f32 %v4752_v52, %v1006_v32  ;;  %v702_v4 = vpop.xlane.xlu2 %701  ;;  %v994_v7 = vsel %vm993_vm8, %v4746_v16, %v990_v26  ;;  %v842_v16 = vsub.f32 %v5293_v25, %v5414_v56  ;;  %v1030_v56 = vmul.f32 %v5445_v24, %v1029_v30 }
 0x135   : > { %v750_v8 = vmul.f32 0.0078125, %v702_v4  ;;  %v1224_v9 = vmul.f32 %v994_v7, %v840_v10  ;;  %4753 = vrsqrt.f32 %v5487_v63  ;;  %v1020_v20 = vmul.f32 %v5450_v34, %v1019_v36 }
 0x136   : > { %v1008_v14 = vmul.f32 0.5, %v1007_v3  ;;  %4755 = vtanh.f32 %v1321_v0  ;;  %v1034_v59 = vsel %vm5525_vm0, %v5445_v24, %v1030_v56  ;;  %v844_v32 = vsub.f32 %v5308_v33, %v5378_v21 }
 0x137   : > { %v814_v23 = vsub.f32 %v750_v8, %v782_v58  ;;  %v1257_v38 = vmul.f32 %v5455_v42, %v1224_v9  ;;  %v1024_v6 = vsel %vm5535_vm1, %v5450_v34, %v1020_v20  ;;  %v1323_v0 = vmul.f32 0.5, %v5519_v49 }
 0x138   : > { %v1009_v27 = vsub.f32 1.5, %v1008_v14  ;;  %v843_v24 = vsub.f32 %v5303_v29, %v5376_v17  ;;  %v1228_v58 = vmul.f32 %v1034_v59, %v844_v32  ;;  %vm1041_vm6 = vweird.f32 %v5487_v63 }
 0x139   : > { %v5499_v18 = vadd.f32 1e-05, %v814_v23  ;;  %v1290_v55 = vadd.f32 %v5458_v19, %v1257_v38 }
 0x13a   : > { %v1010_v31 = vmul.f32 %v4752_v52, %v1009_v27  ;;  %v1227_v21 = vmul.f32 %v1024_v6, %v843_v24  ;;  %v1261_v14 = vmul.f32 %v5455_v42, %v1228_v58 }
 0x13b   : > { %4757 = vrsqrt.f32 %v5499_v18  ;;  %v1322_v37 = vmul.f32 0.5, %v1290_v55  ;;  %v5507_v40 = vpop.eup %4753  ;;  %vm1051_vm4 = vweird.f32 %v5499_v18 }
 0x13c   : > { %v325_v5 = vpop.permute.xlu2 %324  ;;  %v1014_v43 = vsel %vm1013_vm11, %v4752_v52, %v1010_v31  ;;  %v4756_v44 = vpop.eup %4755  ;;  %v1036_v50 = vmul.f32 %v5507_v40, %v5487_v63  ;;  %v1260_v38 = vmul.f32 %v5455_v42, %v1227_v21  ;;  %v1294_v17 = vadd.f32 %v5458_v19, %v1261_v14  ;;  %v284_v63 = vld [vmem:[%s5257_s30 + $0x10] sm:$0xff] }
 0x13d   : > { %v479_v46 = vmul.f32 %v5274_v11, %v325_v5  ;;  %4759 = vtanh.f32 %v1322_v37  ;;  %v1226_v25 = vmul.f32 %v1014_v43, %v842_v16  ;;  %v1385_v10 = vmul.f32 0.5, %v4756_v44 }
 0x13e   : > { %v1037_v2 = vmul.f32 %v5507_v40, %v1036_v50  ;;  %vm1042_vm3 = vweird.f32 %v5507_v40  ;;  %v1326_v36 = vmul.f32 0.5, %v1294_v17  ;;  %v846_v5 = vsub.f32 %v5325_v41, %v5472_v54 }
 0x13f   : > { %v5515_v47 = vadd.f32 %v5277_v12, %v479_v46  ;;  %v1259_v48 = vmul.f32 %v5455_v42, %v1226_v25  ;;  %v1417_v7 = vadd.f32 0.5, %v1385_v10  ;;  %vm1043_vm7 = vmor %vm1041_vm6, %vm1042_vm3  ;;  %v285_v46 = vld [vmem:[%s5257_s30 + $0x18] sm:$0xff] }
 0x140   : > { %v1038_v9 = vmul.f32 0.5, %v1037_v2 }
 0x141   : > { %v4758_v51 = vpop.eup %4757  ;;  %545 = vadd.xlane.f32.xlu1 %v5515_v47  ;;  %v640_v60 = vmul.f32 %v5515_v47, %v5515_v47  ;;  %v1292_v62 = vadd.f32 %v5458_v19, %v1259_v48  ;;  %v1449_v34 = vmul.f32 %v1417_v7, %v5475_v61  ;;  %v1293_v61 = vadd.f32 %v5458_v19, %v1260_v38 }
 0x142   : > { %v1046_v53 = vmul.f32 %v4758_v51, %v5499_v18  ;;  %v1039_v27 = vsub.f32 1.5, %v1038_v9  ;;  %vm1052_vm2 = vweird.f32 %v4758_v51  ;;  %v845_v18 = vsub.f32 %v5315_v35, %v5452_v28  ;;  %v289_v35 = vld [vmem:[%s5257_s30 + $0x38] sm:$0xff] }
 0x143   : > { %v4760_v26 = vpop.eup %4759  ;;  %673 = vadd.xlane.f32.xlu0 %v640_v60  ;;  %v1324_v1 = vmul.f32 0.5, %v1292_v62  ;;  %vm1053_vm5 = vmor %vm1051_vm4, %vm1052_vm2  ;;  %v1325_v43 = vmul.f32 0.5, %v1293_v61  ;;  %v288_v60 = vld [vmem:[%s5257_s30 + $0x30] sm:$0xff] }
 0x144   : > { %v1047_v3 = vmul.f32 %v4758_v51, %v1046_v53  ;;  %v1386_v4 = vmul.f32 0.5, %v4760_v26  ;;  %v5587_v21 = vpop.permute.xlu2 %339 }
 0x145   : > { %4761 = vtanh.f32 %v1324_v1 }
 0x146   : > { %v1048_v8 = vmul.f32 0.5, %v1047_v3  ;;  %v1418_v33 = vadd.f32 0.5, %v1386_v4  ;;  %4763 = vtanh.f32 %v1323_v0 }
 0x147   : > { %4765 = vtanh.f32 %v1326_v36 }
 0x148   : > { %v1450_v13 = vmul.f32 %v1418_v33, %v1290_v55  ;;  %v1049_v15 = vsub.f32 1.5, %v1048_v8  ;;  %v1040_v55 = vmul.f32 %v5507_v40, %v1039_v27  ;;  %4767 = vtanh.f32 %v1325_v43 }
 0x14a   : > { %v5554_v22 = vpack.c.bf16 %v1450_v13, %v1449_v34  ;;  %v1050_v16 = vmul.f32 %v4758_v51, %v1049_v15  ;;  %v1044_v44 = vsel %vm1043_vm7, %v5507_v40, %v1040_v55  ;;  %v544_v34 = vpop.xlane.xlu0 %543  ;;  %v4677_v55 = vld [vmem:[%s8791_s2 + $0x64] sm:$0xf] }
 0x14b   : > { %v4762_v23 = vpop.eup %4761  ;;  %v1229_v48 = vmul.f32 %v1044_v44, %v845_v18  ;;  %v607_v14 = vmul.f32 0.0078125, %v544_v34 }
 0x14c   : > { %1620 = vmatmul.bf16.vlgmr.msra.gmra.mxu1 %v5554_v22  ;;  %v4764_v29 = vpop.eup %4763  ;;  %v1388_v30 = vmul.f32 0.5, %v4762_v23  ;;  %v1054_v39 = vsel %vm1053_vm5, %v4758_v51, %v1050_v16  ;;  %v5589_v9 = vpop.permute.xlu2 %344 }
 0x14d   : > { %v1387_v31 = vmul.f32 0.5, %v4764_v29  ;;  %v1230_v56 = vmul.f32 %v1054_v39, %v846_v5  ;;  %v4766_v50 = vpop.eup %4765  ;;  %v1262_v10 = vmul.f32 %v5455_v42, %v1229_v48  ;;  %v767_v23 = vmul.f32 %v607_v14, %v607_v14  ;;  %v4679_v29 = vld [vmem:[%s8791_s2 + $0x74] sm:$0xf]  ;;  %v4547_v5 = vld [vmem:[%s8791_s2 + $0x58] sm:$0xf0] }
 0x14e   : > { %v1420_v37 = vadd.f32 0.5, %v1388_v30  ;;  %v4768_v28 = vpop.eup %4767  ;;  %v1390_v52 = vmul.f32 0.5, %v4766_v50  ;;  %v4675_v39 = vld [vmem:[%s8791_s2 + $0x54] sm:$0xf] }
 0x14f   : > { %v1419_v25 = vadd.f32 0.5, %v1387_v31  ;;  %v1263_v54 = vmul.f32 %v5455_v42, %v1230_v56  ;;  %v4555_v31 = vld [vmem:[%s8791_s2 + $0x68] sm:$0xf0]  ;;  %v4550_v43 = vor.u32 %v4675_v39, %v4547_v5 }
 0x150   : > { %v1452_v20 = vmul.f32 %v1420_v37, %v1292_v62  ;;  %v1295_v62 = vadd.f32 %v5458_v19, %v1262_v10  ;;  %v1422_v53 = vadd.f32 0.5, %v1390_v52  ;;  %v4558_v36 = vor.u32 %v4677_v55, %v4555_v31  ;;  %v4669_v52 = vld [vmem:[%s8791_s2 + $0x24] sm:$0xf] }
 0x151   : > { %v1451_v41 = vmul.f32 %v1419_v25, %v5519_v49  ;;  %v1296_v51 = vadd.f32 %v5458_v19, %v1263_v54  ;;  %v1389_v49 = vmul.f32 0.5, %v4768_v28  ;;  %v4539_v25 = vld [vmem:[%s8791_s2 + $0x48] sm:$0xf0]  ;;  %v4531_v54 = vld [vmem:[%s8791_s2 + $0x38] sm:$0xf0] }
 0x152   : > { %v1327_v59 = vmul.f32 0.5, %v1295_v62  ;;  %v1454_v32 = vmul.f32 %v1422_v53, %v1294_v17  ;;  %v4563_v17 = vld [vmem:[%s8791_s2 + $0x78] sm:$0xf0] }
 0x153   : > { %v5573_v40 = vpack.c.bf16 %v1452_v20, %v1451_v41  ;;  %v1328_v57 = vmul.f32 0.5, %v1296_v51  ;;  %v1421_v26 = vadd.f32 0.5, %v1389_v49  ;;  %v4566_v30 = vor.u32 %v4679_v29, %v4563_v17  ;;  %v4671_v41 = vld [vmem:[%s8791_s2 + $0x34] sm:$0xf]  ;;  %v4515_v53 = vld [vmem:[%s8791_s2 + $0x18] sm:$0xf0] }
 0x155   : > { %4769 = vtanh.f32 %v1328_v57  ;;  %v1453_v6 = vmul.f32 %v1421_v26, %v1293_v61  ;;  %1681 = vmatpush.bf16.msrb.mxu1 %v4566_v30  ;;  %v4667_v57 = vld [vmem:[%s8791_s2 + $0x14] sm:$0xf]  ;;  %v482_v30 = vmul.f32 %v5274_v11, %v5587_v21 }
 0x156   : > { %4771 = vtanh.f32 %v1327_v59  ;;  %v4518_v59 = vor.u32 %v4667_v57, %v4515_v53  ;;  %v298_v57 = vld [vmem:[%s5257_s30 + $0x80] sm:$0xff] }
 0x157   : > { %334 = vperm.xlu0 %4738, %v285_v46   ;;  %v5581_v0 = vpack.c.bf16 %v1454_v32, %v1453_v6  ;;  %v4673_v46 = vld [vmem:[%s8791_s2 + $0x44] sm:$0xf]  ;;  %v831_v32 = vsub.f32 %v5332_v45, %v607_v14 }
 0x158   : > { %v4542_v18 = vor.u32 %v4673_v46, %v4539_v25 }
 0x159   : > { %1682 = vmatpush.bf16.msrb.mxu1 %v4558_v36  ;;  %v5659_v36 = vadd.f32 %v5277_v12, %v482_v30 }
 0x15a   : > { %329 = vperm.xlu1 %4739, %v284_v63  }
 0x15b   : > { %v4770_v1 = vpop.eup %4769 }
 0x15c   : > { %1625 = vmatmul.bf16.gmra.mxu1 %v5573_v40  ;;  %v4772_v2 = vpop.eup %4771  ;;  %v1392_v3 = vmul.f32 0.5, %v4770_v1  ;;  %v4665_v1 = vld [vmem:[%s8791_s2 + $0x4] sm:$0xf] }
 0x15d   : > { %v1391_v4 = vmul.f32 0.5, %v4772_v2  ;;  %1683 = vmatpush.bf16.msrb.mxu1 %v4550_v43  ;;  %v4507_v2 = vld [vmem:[%s8791_s2 + $0x8] sm:$0xf0] }
 0x15e   : > { %v1424_v7 = vadd.f32 0.5, %v1392_v3 }
 0x15f   : > { %354 = vperm.xlu0 %4738, %v289_v35   ;;  %v1423_v24 = vadd.f32 0.5, %v1391_v4  ;;  %v4534_v35 = vor.u32 %v4671_v41, %v4531_v54  ;;  %v4510_v4 = vor.u32 %v4665_v1, %v4507_v2 }
 0x160   : > { %v1456_v58 = vmul.f32 %v1424_v7, %v1296_v51 }
 0x161   : > { %v1455_v8 = vmul.f32 %v1423_v24, %v1295_v62  ;;  %1684 = vmatpush.bf16.msrb.mxu1 %v4542_v18  ;;  %v643_v18 = vmul.f32 %v5659_v36, %v5659_v36 }
 0x162   : > { %349 = vperm.xlu1 %4739, %v288_v60   ;;  %v4523_v60 = vld [vmem:[%s8791_s2 + $0x28] sm:$0xf0] }
 0x163   : > { %v5584_v33 = vpack.c.bf16 %v1456_v58, %v1455_v8  ;;  %v4526_v49 = vor.u32 %v4669_v52, %v4523_v60  ;;  %v483_v52 = vmul.f32 %v5274_v11, %v5589_v9  ;;  %v299_v9 = vld [vmem:[%s5257_s30 + $0x88] sm:$0xff] }
 0x165   : > { %1685 = vmatpush.bf16.msrb.mxu1 %v4534_v35  ;;  %v5682_v60 = vadd.f32 %v5277_v12, %v483_v52 }
 0x169   : > { %1686 = vmatpush.bf16.msrb.mxu1 %v4526_v49  ;;  %v300_v49 = vld [vmem:[%s5257_s30 + $0x90] sm:$0xff] }
 0x16c   : > { %1630 = vmatmul.bf16.gmra.mxu1 %v5581_v0 }
 0x16d   : > { %1687 = vmatpush.bf16.msrb.mxu1 %v4518_v59  ;;  %v301_v59 = vld [vmem:[%s5257_s30 + $0x98] sm:$0xff] }
 0x171   : > { %1688 = vmatpush.bf16.msrb.mxu1 %v4510_v4 }
 0x17c   : > { %1635 = vmatmul.bf16.gmra.mxu1 %v5584_v33 }
 0x185   : > { %v672_v13 = vpop.xlane.xlu2 %671 }
 0x186   : > { %v735_v15 = vmul.f32 0.0078125, %v672_v13 }
 0x188   : > { %v799_v38 = vsub.f32 %v735_v15, %v767_v23 }
 0x18a   : > { %v863_v27 = vadd.f32 1e-05, %v799_v38 }
 0x18c   : > { %4773 = vrsqrt.f32 %v863_v27  ;;  %vm901_vm9 = vweird.f32 %v863_v27 }
 0x192   : > { %v4774_v16 = vpop.eup %4773 }
 0x193   : > { %v896_v61 = vmul.f32 %v4774_v16, %v863_v27  ;;  %vm902_vm8 = vweird.f32 %v4774_v16 }
 0x194   : > { %vm903_vm10 = vmor %vm901_vm9, %vm902_vm8 }
 0x195   : > { %v897_v37 = vmul.f32 %v4774_v16, %v896_v61 }
 0x197   : > { %v898_v44 = vmul.f32 0.5, %v897_v37 }
 0x199   : > { %v899_v48 = vsub.f32 1.5, %v898_v44 }
 0x19b   : > { %v900_v51 = vmul.f32 %v4774_v16, %v899_v48 }
 0x19d   : > { %v904_v26 = vsel %vm903_vm10, %v4774_v16, %v900_v51 }
 0x19e   : > { %v1215_v6 = vmul.f32 %v904_v26, %v831_v32 }
 0x1a0   : > { %v1248_v24 = vmul.f32 %v5455_v42, %v1215_v6 }
 0x1a2   : > { %v1281_v45 = vadd.f32 %v5458_v19, %v1248_v24 }
 0x1a4   : > { %v1313_v17 = vmul.f32 0.5, %v1281_v45 }
 0x1b4   : > { %v546_v56 = vpop.xlane.xlu1 %545 }
 0x1b5   : > { %v608_v20 = vmul.f32 0.0078125, %v546_v56 }
 0x1b6   : > { %v674_v63 = vpop.xlane.xlu0 %673 }
 0x1b7   : > { %v768_v50 = vmul.f32 %v608_v20, %v608_v20  ;;  %v736_v10 = vmul.f32 0.0078125, %v674_v63  ;;  %v832_v27 = vsub.f32 %v5515_v47, %v608_v20 }
 0x1b9   : > { %v800_v28 = vsub.f32 %v736_v10, %v768_v50 }
 0x1bb   : > { %v864_v62 = vadd.f32 1e-05, %v800_v28 }
 0x1bd   : > { %4775 = vrsqrt.f32 %v864_v62  ;;  %vm911_vm12 = vweird.f32 %v864_v62 }
 0x1be   : > { %4777 = vtanh.f32 %v1313_v17 }
 0x1c3   : > { %v4776_v3 = vpop.eup %4775 }
 0x1c4   : > { %v906_v7 = vmul.f32 %v4776_v3, %v864_v62  ;;  %vm912_vm11 = vweird.f32 %v4776_v3  ;;  %v4778_v44 = vpop.eup %4777  ;;  %v644_v62 = vmul.f32 %v5682_v60, %v5682_v60 }
 0x1c5   : > { %vm913_vm13 = vmor %vm911_vm12, %vm912_vm11  ;;  %v1377_v20 = vmul.f32 0.5, %v4778_v44 }
 0x1c6   : > { %v907_v58 = vmul.f32 %v4776_v3, %v906_v7 }
 0x1c7   : > { %v1409_v54 = vadd.f32 0.5, %v1377_v20 }
 0x1c8   : > { %v908_v8 = vmul.f32 0.5, %v907_v58 }
 0x1c9   : > { %v335_v34 = vpop.permute.xlu0 %334  ;;  %v1441_v35 = vmul.f32 %v1409_v54, %v1281_v45 }
 0x1ca   : > { %v909_v13 = vsub.f32 1.5, %v908_v8  ;;  %v481_v14 = vmul.f32 %v5274_v11, %v335_v34 }
 0x1cc   : > { %v910_v15 = vmul.f32 %v4776_v3, %v909_v13  ;;  %v5644_v23 = vadd.f32 %v5277_v12, %v481_v14  ;;  %v330_v38 = vpop.permute.xlu1 %329 }
 0x1cd   : > { %v480_v29 = vmul.f32 %v5274_v11, %v330_v38 }
 0x1ce   : > { %549 = vadd.xlane.f32.xlu0 %v5644_v23  ;;  %v914_v16 = vsel %vm913_vm13, %v4776_v3, %v910_v15  ;;  %v642_v56 = vmul.f32 %v5644_v23, %v5644_v23 }
 0x1cf   : > { %v5652_v61 = vadd.f32 %v5277_v12, %v480_v29  ;;  %v1216_v55 = vmul.f32 %v914_v16, %v832_v27 }
 0x1d1   : > { %547 = vadd.xlane.f32.xlu1 %v5652_v61  ;;  %v641_v31 = vmul.f32 %v5652_v61, %v5652_v61  ;;  %v1249_v47 = vmul.f32 %v5455_v42, %v1216_v55  ;;  %v355_v39 = vpop.permute.xlu0 %354 }
 0x1d2   : > { %v485_v46 = vmul.f32 %v5274_v11, %v355_v39 }
 0x1d3   : > { %675 = vadd.xlane.f32.xlu2 %v641_v31  ;;  %v1282_v37 = vadd.f32 %v5458_v19, %v1249_v47 }
 0x1d4   : > { %v350_v21 = vpop.permute.xlu1 %349  ;;  %v5673_v48 = vadd.f32 %v5277_v12, %v485_v46 }
 0x1d5   : > { %v484_v5 = vmul.f32 %v5274_v11, %v350_v21  ;;  %v1314_v43 = vmul.f32 0.5, %v1282_v37 }
 0x1d6   : > { %v646_v50 = vmul.f32 %v5673_v48, %v5673_v48 }
 0x1d7   : > { %v5665_v25 = vadd.f32 %v5277_v12, %v484_v5  ;;  %4779 = vtanh.f32 %v1314_v43 }
 0x1d9   : > { %679 = vadd.xlane.f32.xlu1 %v643_v18  ;;  %555 = vadd.xlane.f32.xlu0 %v5665_v25  ;;  %v645_v53 = vmul.f32 %v5665_v25, %v5665_v25 }
 0x1db   : > { %677 = vadd.xlane.f32.xlu2 %v642_v56 }
 0x1dd   : > { %v4780_v63 = vpop.eup %4779 }
 0x1de   : > { %v1378_v41 = vmul.f32 0.5, %v4780_v63 }
 0x1e0   : > { %v1410_v10 = vadd.f32 0.5, %v1378_v41 }
 0x1e1   : > { %557 = vadd.xlane.f32.xlu1 %v5673_v48  ;;  %685 = vadd.xlane.f32.xlu0 %v646_v50 }
 0x1e2   : > { %v1442_v28 = vmul.f32 %v1410_v10, %v1282_v37 }
 0x1e3   : > { %551 = vadd.xlane.f32.xlu2 %v5659_v36 }
 0x1e4   : > { %v1473_v51 = vpack.c.bf16 %v1442_v28, %v1441_v35 }
 0x1e6   : > { %1600 = vmatmul.bf16.vlgmr.msra.gmra.mxu0 %v1473_v51  ;;  %1689 = vmatmul.bf16.vlgmr.msrb.gmra.mxu1 %v1473_v51 }
 0x1eb   : > { %553 = vadd.xlane.f32.xlu2 %v5682_v60 }
 0x1f3   : > { %681 = vadd.xlane.f32.xlu2 %v644_v62 }
 0x1f5   : > { %409 = vperm.xlu0 %4738, %v300_v49  }
 0x1fa   : > { %399 = vperm.xlu1 %4739, %v298_v57  }
 0x1fb   : > { %683 = vadd.xlane.f32.xlu2 %v645_v53 }
 0x1fd   : > { %414 = vperm.xlu0 %4738, %v301_v59  }
 0x213   : > { %404 = vperm.xlu2 %4740, %v299_v9  }
 0x241   : > { %v550_v26 = vpop.xlane.xlu0 %549 }
 0x242   : > { %v610_v7 = vmul.f32 0.0078125, %v550_v26 }
 0x244   : > { %v548_v32 = vpop.xlane.xlu1 %547  ;;  %v770_v45 = vmul.f32 %v610_v7, %v610_v7  ;;  %v834_v59 = vsub.f32 %v5644_v23, %v610_v7 }
 0x245   : > { %v609_v6 = vmul.f32 0.0078125, %v548_v32 }
 0x246   : > { %v676_v1 = vpop.xlane.xlu2 %675 }
 0x247   : > { %v769_v2 = vmul.f32 %v609_v6, %v609_v6  ;;  %v737_v3 = vmul.f32 0.0078125, %v676_v1  ;;  %v833_v41 = vsub.f32 %v5652_v61, %v609_v6 }
 0x249   : > { %v801_v4 = vsub.f32 %v737_v3, %v769_v2 }
 0x24b   : > { %v865_v24 = vadd.f32 1e-05, %v801_v4 }
 0x24c   : > { %v5693_v58 = vpop.xlane.xlu0 %555  ;;  %v680_v8 = vpop.xlane.xlu1 %679 }
 0x24d   : > { %4781 = vrsqrt.f32 %v865_v24  ;;  %v739_v21 = vmul.f32 0.0078125, %v680_v8  ;;  %vm921_vm15 = vweird.f32 %v865_v24  ;;  %v5723_v7 = vmul.f32 0.0078125, %v5693_v58 }
 0x24e   : > { %v678_v34 = vpop.xlane.xlu2 %677 }
 0x24f   : > { %v738_v13 = vmul.f32 0.0078125, %v678_v34 }
 0x251   : > { %v802_v14 = vsub.f32 %v738_v13, %v770_v45 }
 0x253   : > { %v4782_v15 = vpop.eup %4781  ;;  %v866_v38 = vadd.f32 1e-05, %v802_v14 }
 0x254   : > { %v916_v27 = vmul.f32 %v4782_v15, %v865_v24  ;;  %v686_v29 = vpop.xlane.xlu0 %685  ;;  %v558_v17 = vpop.xlane.xlu1 %557  ;;  %vm922_vm14 = vweird.f32 %v4782_v15 }
 0x255   : > { %4783 = vrsqrt.f32 %v866_v38  ;;  %v5695_v16 = vmul.f32 0.0078125, %v558_v17  ;;  %v742_v31 = vmul.f32 0.0078125, %v686_v29  ;;  %vm923_vm0 = vmor %vm921_vm15, %vm922_vm14  ;;  %vm931_vm2 = vweird.f32 %v866_v38 }
 0x256   : > { %v917_v30 = vmul.f32 %v4782_v15, %v916_v27  ;;  %v552_v55 = vpop.xlane.xlu2 %551 }
 0x257   : > { %v774_v47 = vmul.f32 %v5695_v16, %v5695_v16  ;;  %v5699_v37 = vmul.f32 0.0078125, %v552_v55 }
 0x258   : > { %v918_v39 = vmul.f32 0.5, %v917_v30  ;;  %v773_v30 = vmul.f32 %v5723_v7, %v5723_v7 }
 0x259   : > { %v806_v5 = vsub.f32 %v742_v31, %v774_v47  ;;  %v771_v43 = vmul.f32 %v5699_v37, %v5699_v37  ;;  %v835_v47 = vsub.f32 %v5659_v36, %v5699_v37 }
 0x25a   : > { %v919_v44 = vsub.f32 1.5, %v918_v39 }
 0x25b   : > { %v4784_v46 = vpop.eup %4783  ;;  %v803_v18 = vsub.f32 %v739_v21, %v771_v43  ;;  %v5703_v63 = vadd.f32 1e-05, %v806_v5 }
 0x25c   : > { %v920_v56 = vmul.f32 %v4782_v15, %v919_v44  ;;  %v926_v20 = vmul.f32 %v4784_v46, %v866_v38  ;;  %vm932_vm1 = vweird.f32 %v4784_v46 }
 0x25d   : > { %v867_v54 = vadd.f32 1e-05, %v803_v18  ;;  %vm933_vm3 = vmor %vm931_vm2, %vm932_vm1  ;;  %vm971_vm9 = vweird.f32 %v5703_v63 }
 0x25e   : > { %v927_v50 = vmul.f32 %v4784_v46, %v926_v20  ;;  %v554_v10 = vpop.xlane.xlu2 %553  ;;  %v924_v35 = vsel %vm923_vm0, %v4782_v15, %v920_v56 }
 0x25f   : > { %4785 = vrsqrt.f32 %v867_v54  ;;  %v1217_v28 = vmul.f32 %v924_v35, %v833_v41  ;;  %v5708_v49 = vmul.f32 0.0078125, %v554_v10  ;;  %vm941_vm5 = vweird.f32 %v867_v54 }
 0x260   : > { %v928_v51 = vmul.f32 0.5, %v927_v50  ;;  %4787 = vrsqrt.f32 %v5703_v63 }
 0x261   : > { %v1250_v52 = vmul.f32 %v5455_v42, %v1217_v28  ;;  %v772_v2 = vmul.f32 %v5708_v49, %v5708_v49 }
 0x262   : > { %v929_v62 = vsub.f32 1.5, %v928_v51 }
 0x263   : > { %v5711_v57 = vadd.f32 %v5458_v19, %v1250_v52 }
 0x264   : > { %v930_v61 = vmul.f32 %v4784_v46, %v929_v62 }
 0x265   : > { %v4786_v53 = vpop.eup %4785  ;;  %v1315_v9 = vmul.f32 0.5, %v5711_v57 }
 0x266   : > { %v5715_v26 = vpop.eup %4787  ;;  %v936_v32 = vmul.f32 %v4786_v53, %v867_v54  ;;  %v682_v6 = vpop.xlane.xlu2 %681  ;;  %v934_v1 = vsel %vm933_vm3, %v4784_v46, %v930_v61  ;;  %vm942_vm4 = vweird.f32 %v4786_v53 }
 0x267   : > { %v740_v3 = vmul.f32 0.0078125, %v682_v6  ;;  %v1218_v4 = vmul.f32 %v934_v1, %v834_v59  ;;  %v966_v8 = vmul.f32 %v5715_v26, %v5703_v63  ;;  %4789 = vtanh.f32 %v1315_v9  ;;  %vm943_vm6 = vmor %vm941_vm5, %vm942_vm4  ;;  %v410_v43 = vpop.permute.xlu0 %409 }
 0x268   : > { %v937_v24 = vmul.f32 %v4786_v53, %v936_v32  ;;  %vm972_vm7 = vweird.f32 %v5715_v26 }
 0x269   : > { %v804_v34 = vsub.f32 %v740_v3, %v772_v2  ;;  %v1251_v23 = vmul.f32 %v5455_v42, %v1218_v4  ;;  %v967_v27 = vmul.f32 %v5715_v26, %v966_v8  ;;  %vm5754_vm10 = vmor %vm971_vm9, %vm972_vm7 }
 0x26a   : > { %v938_v45 = vmul.f32 0.5, %v937_v24  ;;  %v496_v24 = vmul.f32 %v5274_v11, %v410_v43 }
 0x26b   : > { %v868_v13 = vadd.f32 1e-05, %v804_v34  ;;  %v1284_v14 = vadd.f32 %v5458_v19, %v1251_v23  ;;  %v968_v44 = vmul.f32 0.5, %v967_v27  ;;  %v311_v34 = vld [vmem:[%s5257_s30 + $0xe8] sm:$0xff] }
 0x26c   : > { %v939_v15 = vsub.f32 1.5, %v938_v45  ;;  %v400_v38 = vpop.permute.xlu1 %399 }
 0x26d   : > { %4791 = vrsqrt.f32 %v868_v13  ;;  %v494_v29 = vmul.f32 %v5274_v11, %v400_v38  ;;  %v1316_v17 = vmul.f32 0.5, %v1284_v14  ;;  %v4790_v31 = vpop.eup %4789  ;;  %v969_v50 = vsub.f32 1.5, %v968_v44 }
 0x26e   : > { %v940_v55 = vmul.f32 %v4786_v53, %v939_v15  ;;  %v684_v58 = vpop.xlane.xlu2 %683  ;;  %v1379_v20 = vmul.f32 0.5, %v4790_v31  ;;  %vm951_vm11 = vweird.f32 %v868_v13 }
 0x26f   : > { %v5733_v39 = vadd.f32 %v5277_v12, %v494_v29  ;;  %v741_v21 = vmul.f32 0.0078125, %v684_v58  ;;  %4793 = vtanh.f32 %v1316_v17  ;;  %v970_v59 = vmul.f32 %v5715_v26, %v969_v50  ;;  %v415_v1 = vpop.permute.xlu0 %414 }
 0x270   : > { %v944_v5 = vsel %vm943_vm6, %v4786_v53, %v940_v55  ;;  %v1411_v52 = vadd.f32 0.5, %v1379_v20  ;;  %v497_v63 = vmul.f32 %v5274_v11, %v415_v1  ;;  %v838_v29 = vsub.f32 %v5673_v48, %v5695_v16  ;;  %v303_v1 = vld [vmem:[%s5257_s30 + $0xa8] sm:$0xff] }
 0x271   : > { %v1219_v46 = vmul.f32 %v944_v5, %v835_v47  ;;  %v805_v18 = vsub.f32 %v741_v21, %v773_v30  ;;  %575 = vadd.xlane.f32.xlu1 %v5733_v39  ;;  %v655_v56 = vmul.f32 %v5733_v39, %v5733_v39  ;;  %v974_v38 = vsel %vm5754_vm10, %v5715_v26, %v970_v59 }
 0x272   : > { %v1443_v2 = vmul.f32 %v1411_v52, %v5711_v57  ;;  %v836_v57 = vsub.f32 %v5682_v60, %v5708_v49  ;;  %v5769_v60 = vadd.f32 %v5277_v12, %v496_v24  ;;  %v1222_v30 = vmul.f32 %v974_v38, %v838_v29 }
 0x273   : > { %v4792_v41 = vpop.eup %4791  ;;  %v869_v54 = vadd.f32 1e-05, %v805_v18  ;;  %703 = vadd.xlane.f32.xlu2 %v655_v56  ;;  %v1252_v10 = vmul.f32 %v5455_v42, %v1219_v46  ;;  %v5772_v55 = vadd.f32 %v5277_v12, %v497_v63  ;;  %v837_v47 = vsub.f32 %v5665_v25, %v5723_v7  ;;  %v302_v18 = vld [vmem:[%s5257_s30 + $0xa0] sm:$0xff] }
 0x274   : > { %v946_v36 = vmul.f32 %v4792_v41, %v868_v13  ;;  %vm952_vm8 = vweird.f32 %v4792_v41  ;;  %v657_v48 = vmul.f32 %v5769_v60, %v5769_v60  ;;  %v1255_v5 = vmul.f32 %v5455_v42, %v1222_v30 }
 0x275   : > { %v4794_v37 = vpop.eup %4793  ;;  %4795 = vrsqrt.f32 %v869_v54  ;;  %v5746_v32 = vadd.f32 %v5458_v19, %v1252_v10  ;;  %vm953_vm12 = vmor %vm951_vm11, %vm952_vm8  ;;  %vm961_vm14 = vweird.f32 %v869_v54  ;;  %v307_v10 = vld [vmem:[%s5257_s30 + $0xc8] sm:$0xff] }
 0x276   : > { %v947_v35 = vmul.f32 %v4792_v41, %v946_v36  ;;  %v405_v28 = vpop.permute.xlu2 %404  ;;  %v1380_v51 = vmul.f32 0.5, %v4794_v37  ;;  %v1288_v20 = vadd.f32 %v5458_v19, %v1255_v5 }
 0x277   : > { %v495_v62 = vmul.f32 %v5274_v11, %v405_v28 }
 0x278   : > { %v948_v61 = vmul.f32 0.5, %v947_v35  ;;  %v1412_v53 = vadd.f32 0.5, %v1380_v51  ;;  %v1320_v36 = vmul.f32 0.5, %v1288_v20 }
 0x279   : > { %v5743_v9 = vadd.f32 %v5277_v12, %v495_v62 }
 0x27a   : > { %v949_v6 = vsub.f32 1.5, %v948_v61  ;;  %v1444_v3 = vmul.f32 %v1412_v53, %v1284_v14  ;;  %v1317_v14 = vmul.f32 0.5, %v5746_v32  ;;  %v305_v53 = vld [vmem:[%s5257_s30 + $0xb8] sm:$0xff] }
 0x27b   : > { %v4796_v4 = vpop.eup %4795  ;;  %577 = vadd.xlane.f32.xlu0 %v5743_v9  ;;  %v656_v8 = vmul.f32 %v5743_v9, %v5743_v9 }
 0x27c   : > { %v950_v23 = vmul.f32 %v4792_v41, %v949_v6  ;;  %v956_v45 = vmul.f32 %v4796_v4, %v869_v54  ;;  %v1474_v15 = vpack.c.bf16 %v1444_v3, %v1443_v2  ;;  %4797 = vtanh.f32 %v1317_v14 }
 0x27d   : > { %705 = vadd.xlane.f32.xlu1 %v656_v8  ;;  %vm962_vm13 = vweird.f32 %v4796_v4  ;;  %v308_v8 = vld [vmem:[%s5257_s30 + $0xd0] sm:$0xff] }
 0x27e   : > { %v957_v27 = vmul.f32 %v4796_v4, %v956_v45  ;;  %1605 = vmatmul.bf16.gmra.mxu0 %v1474_v15  ;;  %1694 = vmatmul.bf16.gmra.mxu1 %v1474_v15  ;;  %v954_v13 = vsel %vm953_vm12, %v4792_v41, %v950_v23  ;;  %vm963_vm15 = vmor %vm961_vm14, %vm962_vm13  ;;  %v658_v23 = vmul.f32 %v5772_v55, %v5772_v55 }
 0x27f   : > { %v1220_v49 = vmul.f32 %v954_v13, %v836_v57 }
 0x280   : > { %v958_v17 = vmul.f32 0.5, %v957_v27 }
 0x281   : > { %v1253_v58 = vmul.f32 %v5455_v42, %v1220_v49 }
 0x282   : > { %v959_v26 = vsub.f32 1.5, %v958_v17  ;;  %v4798_v44 = vpop.eup %4797 }
 0x283   : > { %581 = vadd.xlane.f32.xlu0 %v5772_v55  ;;  %v1286_v16 = vadd.f32 %v5458_v19, %v1253_v58  ;;  %v1381_v41 = vmul.f32 0.5, %v4798_v44 }
 0x284   : > { %v960_v31 = vmul.f32 %v4796_v4, %v959_v26 }
 0x285   : > { %707 = vadd.xlane.f32.xlu1 %v657_v48  ;;  %v1318_v21 = vmul.f32 0.5, %v1286_v16  ;;  %v1413_v50 = vadd.f32 0.5, %v1381_v41 }
 0x286   : > { %v964_v43 = vsel %vm963_vm15, %v4796_v4, %v960_v31 }
 0x287   : > { %4799 = vtanh.f32 %v1318_v21  ;;  %v1221_v46 = vmul.f32 %v964_v43, %v837_v47  ;;  %v1445_v28 = vmul.f32 %v1413_v50, %v5746_v32  ;;  %v306_v50 = vld [vmem:[%s5257_s30 + $0xc0] sm:$0xff] }
 0x289   : > { %v1254_v56 = vmul.f32 %v5455_v42, %v1221_v46 }
 0x28b   : > { %419 = vperm.xlu2 %4740, %v302_v18   ;;  %v1287_v54 = vadd.f32 %v5458_v19, %v1254_v56 }
 0x28d   : > { %v4800_v25 = vpop.eup %4799  ;;  %v1319_v7 = vmul.f32 0.5, %v1287_v54 }
 0x28e   : > { %v1382_v37 = vmul.f32 0.5, %v4800_v25  ;;  %v5808_v25 = vpop.f32.mrf.mxu1 }
 0x28f   : > { %4801 = vtanh.f32 %v1319_v7 }
 0x290   : > { %v1414_v35 = vadd.f32 0.5, %v1382_v37  ;;  %4803 = vtanh.f32 %v1320_v36 }
 0x292   : > { %v1446_v51 = vmul.f32 %v1414_v35, %v1286_v16 }
 0x293   : > { %444 = vperm.xlu2 %4740, %v307_v10  }
 0x294   : > { %v1475_v52 = vpack.c.bf16 %v1446_v51, %v1445_v28 }
 0x295   : > { %v4802_v62 = vpop.eup %4801 }
 0x296   : > { %1610 = vmatmul.bf16.gmra.mxu0 %v1475_v52  ;;  %1699 = vmatmul.bf16.gmra.mxu1 %v1475_v52  ;;  %v4804_v61 = vpop.eup %4803  ;;  %v1383_v59 = vmul.f32 0.5, %v4802_v62  ;;  %v5814_v62 = vpop.f32.mrf.mxu1 }
 0x297   : > { %v1384_v6 = vmul.f32 0.5, %v4804_v61 }
 0x298   : > { %v1415_v2 = vadd.f32 0.5, %v1383_v59 }
 0x299   : > { %v1416_v3 = vadd.f32 0.5, %v1384_v6 }
 0x29a   : > { %v1447_v4 = vmul.f32 %v1415_v2, %v1287_v54 }
 0x29b   : > { %434 = vperm.xlu2 %4740, %v305_v53   ;;  %v1448_v24 = vmul.f32 %v1416_v3, %v1288_v20  ;;  %v304_v53 = vld [vmem:[%s5257_s30 + $0xb0] sm:$0xff] }
 0x29d   : > { %v1476_v32 = vpack.c.bf16 %v1448_v24, %v1447_v4  ;;  %v309_v4 = vld [vmem:[%s5257_s30 + $0xd8] sm:$0xff] }
 0x29e   : > { %424 = vperm.xlu1 %4739, %v303_v1  }
 0x2a6   : > { %1615 = vmatmul.bf16.gmra.mxu0 %v1476_v32  ;;  %1704 = vmatmul.bf16.gmra.mxu1 %v1476_v32  ;;  %v5824_v32 = vpop.f32.mrf.mxu1 }
 0x2a7   : > { %449 = vperm.xlu1 %4739, %v308_v8  }
 0x2af   : > { %464 = vperm.xlu1 %4739, %v311_v34  }
 0x2b6   : > { %1709 = vmatmul.bf16.gmra.mxu1 %v5554_v22 }
 0x2c4   : > { %579 = vadd.xlane.f32.xlu2 %v5769_v60 }
 0x2c6   : > { %1714 = vmatmul.bf16.gmra.mxu1 %v5573_v40 }
 0x2cc   : > { %709 = vadd.xlane.f32.xlu2 %v658_v23 }
 0x2d6   : > { %1719 = vmatmul.bf16.gmra.mxu1 %v5581_v0 }
 0x2e4   : > { %v576_v45 = vpop.xlane.xlu1 %575 }
 0x2e5   : > { %v623_v15 = vmul.f32 0.0078125, %v576_v45 }
 0x2e6   : > { %1724 = vmatmul.bf16.gmra.mxu1 %v5584_v33  ;;  %v704_v57 = vpop.xlane.xlu2 %703 }
 0x2e7   : > { %v783_v63 = vmul.f32 %v623_v15, %v623_v15  ;;  %v751_v14 = vmul.f32 0.0078125, %v704_v57  ;;  %v847_v44 = vsub.f32 %v5733_v39, %v623_v15 }
 0x2e9   : > { %v815_v38 = vsub.f32 %v751_v14, %v783_v63 }
 0x2eb   : > { %v879_v27 = vadd.f32 1e-05, %v815_v38  ;;  %v310_v38 = vld [vmem:[%s5257_s30 + $0xe0] sm:$0xff] }
 0x2ed   : > { %4805 = vrsqrt.f32 %v879_v27  ;;  %vm1061_vm1 = vweird.f32 %v879_v27 }
 0x2ee   : > { %v578_v22 = vpop.xlane.xlu0 %577  ;;  %v420_v13 = vpop.permute.xlu2 %419 }
 0x2ef   : > { %v624_v29 = vmul.f32 0.0078125, %v578_v22  ;;  %v498_v40 = vmul.f32 %v5274_v11, %v420_v13  ;;  %v5830_v22 = vpop.f32.mrf.mxu1 }
 0x2f0   : > { %v706_v49 = vpop.xlane.xlu1 %705 }
 0x2f1   : > { %v784_v17 = vmul.f32 %v624_v29, %v624_v29  ;;  %v5801_v30 = vadd.f32 %v5277_v12, %v498_v40  ;;  %v752_v0 = vmul.f32 0.0078125, %v706_v49  ;;  %v848_v39 = vsub.f32 %v5743_v9, %v624_v29  ;;  %v313_v29 = vld [vmem:[%s5257_s30 + $0xf8] sm:$0xff] }
 0x2f3   : > { %v4806_v58 = vpop.eup %4805  ;;  %v816_v26 = vsub.f32 %v752_v0, %v784_v17  ;;  %583 = vadd.xlane.f32.xlu2 %v5801_v30  ;;  %v659_v33 = vmul.f32 %v5801_v30, %v5801_v30 }
 0x2f4   : > { %v1056_v48 = vmul.f32 %v4806_v58, %v879_v27  ;;  %vm1062_vm0 = vweird.f32 %v4806_v58 }
 0x2f5   : > { %v880_v16 = vadd.f32 1e-05, %v816_v26  ;;  %711 = vadd.xlane.f32.xlu0 %v659_v33  ;;  %vm1063_vm2 = vmor %vm1061_vm1, %vm1062_vm0 }
 0x2f6   : > { %v1057_v31 = vmul.f32 %v4806_v58, %v1056_v48  ;;  %v445_v15 = vpop.permute.xlu2 %444  ;;  %v582_v26 = vpop.xlane.xlu0 %581 }
 0x2f7   : > { %4807 = vrsqrt.f32 %v880_v16  ;;  %vm1071_vm4 = vweird.f32 %v880_v16  ;;  %v503_v27 = vmul.f32 %v5274_v11, %v445_v15  ;;  %v5837_v40 = vpop.f32.mrf.mxu1 }
 0x2f8   : > { %v1058_v47 = vmul.f32 0.5, %v1057_v31  ;;  %v708_v35 = vpop.xlane.xlu1 %707 }
 0x2f9   : > { %v5833_v13 = vadd.f32 %v5277_v12, %v503_v27  ;;  %v753_v33 = vmul.f32 0.0078125, %v708_v35 }
 0x2fa   : > { %v1059_v21 = vsub.f32 1.5, %v1058_v47 }
 0x2fc   : > { %v1060_v5 = vmul.f32 %v4806_v58, %v1059_v21 }
 0x2fd   : > { %v4808_v43 = vpop.eup %4807 }
 0x2fe   : > { %v1066_v46 = vmul.f32 %v4808_v43, %v880_v16  ;;  %v1064_v18 = vsel %vm1063_vm2, %v4806_v58, %v1060_v5  ;;  %vm1072_vm3 = vweird.f32 %v4808_v43  ;;  %v435_v49 = vpop.permute.xlu2 %434  ;;  %v626_v16 = vmul.f32 0.0078125, %v582_v26 }
 0x2ff   : > { %v1231_v56 = vmul.f32 %v1064_v18, %v847_v44  ;;  %vm1073_vm5 = vmor %vm1071_vm4, %vm1072_vm3  ;;  %v5839_v17 = vpop.f32.mrf.mxu1 }
 0x300   : > { %v1067_v20 = vmul.f32 %v4808_v43, %v1066_v46 }
 0x301   : > { %v1264_v41 = vmul.f32 %v5455_v42, %v1231_v56 }
 0x302   : > { %v1068_v54 = vmul.f32 0.5, %v1067_v20 }
 0x303   : > { %v1297_v7 = vadd.f32 %v5458_v19, %v1264_v41 }
 0x304   : > { %v1069_v36 = vsub.f32 1.5, %v1068_v54  ;;  %v501_v54 = vmul.f32 %v5274_v11, %v435_v49 }
 0x305   : > { %v1329_v10 = vmul.f32 0.5, %v1297_v7 }
 0x306   : > { %v1070_v37 = vmul.f32 %v4808_v43, %v1069_v36 }
 0x307   : > { %4809 = vtanh.f32 %v1329_v10  ;;  %v5841_v21 = vpop.f32.mrf.mxu1 }
 0x308   : > { %v1074_v28 = vsel %vm1073_vm5, %v4808_v43, %v1070_v37  ;;  %v786_v43 = vmul.f32 %v626_v16, %v626_v16 }
 0x309   : > { %439 = vperm.xlu0 %4738, %v306_v50   ;;  %v1232_v51 = vmul.f32 %v1074_v28, %v848_v39  ;;  %v5847_v50 = vadd.f32 %v5277_v12, %v501_v54 }
 0x30b   : > { %v1265_v52 = vmul.f32 %v5455_v42, %v1232_v51 }
 0x30d   : > { %v1298_v61 = vadd.f32 %v5458_v19, %v1265_v52  ;;  %v4810_v1 = vpop.eup %4809 }
 0x30e   : > { %v1393_v3 = vmul.f32 0.5, %v4810_v1 }
 0x30f   : > { %v1330_v59 = vmul.f32 0.5, %v1298_v61  ;;  %v5843_v41 = vpop.f32.mrf.mxu1 }
 0x310   : > { %v425_v6 = vpop.permute.xlu1 %424  ;;  %v1425_v34 = vadd.f32 0.5, %v1393_v3  ;;  %8874 = vst [vmem:[#allocation2_spill] sm:$0xff] %v5843_v41 }
 0x311   : > { %v499_v9 = vmul.f32 %v5274_v11, %v425_v6  ;;  %429 = vperm.xlu0 %4738, %v304_v53   ;;  %4811 = vtanh.f32 %v1330_v59  ;;  %v662_v59 = vmul.f32 %v5847_v50, %v5847_v50 }
 0x312   : > { %v1457_v57 = vmul.f32 %v1425_v34, %v1297_v7 }
 0x313   : > { %v5820_v2 = vadd.f32 %v5277_v12, %v499_v9 }
 0x315   : > { %585 = vadd.xlane.f32.xlu2 %v5820_v2  ;;  %v660_v45 = vmul.f32 %v5820_v2, %v5820_v2 }
 0x317   : > { %v4812_v24 = vpop.eup %4811  ;;  %v5850_v52 = vpop.f32.mrf.mxu1 }
 0x318   : > { %v1394_v8 = vmul.f32 0.5, %v4812_v24 }
 0x319   : > { %454 = vperm.xlu0 %4738, %v309_v4   ;;  %v850_v4 = vsub.f32 %v5772_v55, %v626_v16 }
 0x31a   : > { %v1426_v23 = vadd.f32 0.5, %v1394_v8 }
 0x31c   : > { %v1458_v63 = vmul.f32 %v1426_v23, %v1298_v61 }
 0x31d   : > { %713 = vadd.xlane.f32.xlu2 %v660_v45 }
 0x31e   : > { %v1481_v14 = vpack.c.bf16 %v1458_v63, %v1457_v57 }
 0x31f   : > { %v5858_v45 = vpop.f32.mrf.mxu1 }
 0x320   : > { %1640 = vmatmul.bf16.vlgmr.msra.gmra.mxu2 %v1481_v14  ;;  %1729 = vmatmul.bf16.gmra.mxu1 %v1481_v14 }
 0x321   : > { %459 = vperm.xlu0 %4738, %v310_v38  }
 0x325   : > { %593 = vadd.xlane.f32.xlu2 %v5833_v13 }
 0x327   : > { %v5861_v14 = vpop.f32.mrf.mxu1 }
 0x329   : > { %474 = vperm.xlu0 %4738, %v313_v29  }
 0x32f   : > { %v5865_v16 = vpop.f32.mrf.mxu1 }
 0x337   : > { %v580_v0 = vpop.xlane.xlu2 %579 }
 0x338   : > { %v625_v58 = vmul.f32 0.0078125, %v580_v0 }
 0x33a   : > { %v785_v48 = vmul.f32 %v625_v58, %v625_v58  ;;  %v849_v51 = vsub.f32 %v5769_v60, %v625_v58 }
 0x33c   : > { %v817_v31 = vsub.f32 %v753_v33, %v785_v48 }
 0x33e   : > { %v881_v47 = vadd.f32 1e-05, %v817_v31 }
 0x33f   : > { %v710_v5 = vpop.xlane.xlu2 %709 }
 0x340   : > { %4813 = vrsqrt.f32 %v881_v47  ;;  %v754_v44 = vmul.f32 0.0078125, %v710_v5  ;;  %vm1081_vm7 = vweird.f32 %v881_v47 }
 0x342   : > { %v818_v46 = vsub.f32 %v754_v44, %v786_v43  ;;  %v5869_v44 = vpop.f32.mrf.mxu1 }
 0x344   : > { %v882_v18 = vadd.f32 1e-05, %v818_v46 }
 0x346   : > { %v4814_v56 = vpop.eup %4813  ;;  %4815 = vrsqrt.f32 %v882_v18  ;;  %vm1091_vm10 = vweird.f32 %v882_v18 }
 0x347   : > { %v1076_v20 = vmul.f32 %v4814_v56, %v881_v47  ;;  %vm1082_vm6 = vweird.f32 %v4814_v56 }
 0x348   : > { %vm1083_vm8 = vmor %vm1081_vm7, %vm1082_vm6 }
 0x349   : > { %v1077_v7 = vmul.f32 %v4814_v56, %v1076_v20 }
 0x34a   : > { %v5875_v54 = vpop.f32.mrf.mxu1 }
 0x34b   : > { %v1078_v36 = vmul.f32 0.5, %v1077_v7 }
 0x34c   : > { %v4816_v37 = vpop.eup %4815 }
 0x34d   : > { %v1079_v39 = vsub.f32 1.5, %v1078_v36  ;;  %v1086_v10 = vmul.f32 %v4816_v37, %v882_v18  ;;  %vm1092_vm9 = vweird.f32 %v4816_v37 }
 0x34e   : > { %vm1093_vm11 = vmor %vm1091_vm10, %vm1092_vm9 }
 0x34f   : > { %v1080_v35 = vmul.f32 %v4814_v56, %v1079_v39  ;;  %v1087_v28 = vmul.f32 %v4816_v37, %v1086_v10 }
 0x351   : > { %v1084_v61 = vsel %vm1083_vm8, %v4814_v56, %v1080_v35  ;;  %v1088_v53 = vmul.f32 0.5, %v1087_v28 }
 0x352   : > { %v1233_v6 = vmul.f32 %v1084_v61, %v849_v51 }
 0x353   : > { %v1089_v1 = vsub.f32 1.5, %v1088_v53  ;;  %717 = vadd.xlane.f32.xlu0 %v662_v59  ;;  %v664_v53 = vmul.f32 %v5833_v13, %v5833_v13  ;;  %v5889_v59 = vpop.f32.mrf.mxu1 }
 0x354   : > { %v1266_v9 = vmul.f32 %v5455_v42, %v1233_v6 }
 0x355   : > { %v1090_v3 = vmul.f32 %v4816_v37, %v1089_v1 }
 0x356   : > { %v1299_v60 = vadd.f32 %v5458_v19, %v1266_v9 }
 0x357   : > { %v1094_v24 = vsel %vm1093_vm11, %v4816_v37, %v1090_v3  ;;  %v5880_v37 = vpop.f32.mrf.mxu0 }
 0x358   : > { %v1234_v8 = vmul.f32 %v1094_v24, %v850_v4  ;;  %v1331_v34 = vmul.f32 0.5, %v1299_v60  ;;  %v450_v4 = vpop.permute.xlu1 %449 }
 0x35a   : > { %v1267_v23 = vmul.f32 %v5455_v42, %v1234_v8  ;;  %4817 = vtanh.f32 %v1331_v34 }
 0x35c   : > { %v1300_v15 = vadd.f32 %v5458_v19, %v1267_v23  ;;  %v504_v23 = vmul.f32 %v5274_v11, %v450_v4 }
 0x35e   : > { %v1332_v57 = vmul.f32 0.5, %v1300_v15 }
 0x35f   : > { %v1603_v9 = vpop.f32.mrf.mxu0 }
 0x360   : > { %v4818_v63 = vpop.eup %4817  ;;  %4819 = vtanh.f32 %v1332_v57 }
 0x361   : > { %v1395_v38 = vmul.f32 0.5, %v4818_v63 }
 0x363   : > { %v1427_v29 = vadd.f32 0.5, %v1395_v38 }
 0x365   : > { %v1459_v26 = vmul.f32 %v1427_v29, %v1299_v60 }
 0x366   : > { %v4820_v55 = vpop.eup %4819  ;;  %v584_v49 = vpop.xlane.xlu2 %583 }
 0x367   : > { %v1396_v27 = vmul.f32 0.5, %v4820_v55  ;;  %v5863_v58 = vmul.f32 0.0078125, %v584_v49  ;;  %v5901_v49 = vadd.f32 %v5277_v12, %v504_v23 }
 0x368   : > { %v712_v48 = vpop.xlane.xlu0 %711 }
 0x369   : > { %v1428_v0 = vadd.f32 0.5, %v1396_v27  ;;  %v787_v47 = vmul.f32 %v5863_v58, %v5863_v58  ;;  %v755_v5 = vmul.f32 0.0078125, %v712_v48  ;;  %v1606_v27 = vpop.f32.mrf.mxu0  ;;  %v851_v48 = vsub.f32 %v5801_v30, %v5863_v58 }
 0x36a   : > { %v665_v23 = vmul.f32 %v5901_v49, %v5901_v49 }
 0x36b   : > { %v1460_v33 = vmul.f32 %v1428_v0, %v1300_v15  ;;  %v819_v43 = vsub.f32 %v755_v5, %v787_v47  ;;  %v5897_v15 = vpop.f32.mrf.mxu1  ;;  %v315_v47 = vld [vmem:[%s8792_s3] sm:$0x77] }
 0x36d   : > { %v1482_v31 = vpack.c.bf16 %v1460_v33, %v1459_v26  ;;  %v883_v46 = vadd.f32 1e-05, %v819_v43 }
 0x36f   : > { %1645 = vmatmul.bf16.gmra.mxu2 %v1482_v31  ;;  %1734 = vmatmul.bf16.gmra.mxu1 %v1482_v31  ;;  %4821 = vrsqrt.f32 %v883_v46  ;;  %vm1101_vm13 = vweird.f32 %v883_v46 }
 0x371   : > { %v5921_v58 = vpop.f32.mrf.mxu0 }
 0x375   : > { %v4822_v36 = vpop.eup %4821 }
 0x376   : > { %v1096_v10 = vmul.f32 %v4822_v36, %v883_v46  ;;  %vm1102_vm12 = vweird.f32 %v4822_v36  ;;  %v1507_v46 = vperm.slane %v315_v47, 4 }
 0x377   : > { %vm1103_vm14 = vmor %vm1101_vm13, %vm1102_vm12 }
 0x378   : > { %v1097_v51 = vmul.f32 %v4822_v36, %v1096_v10  ;;  %v312_v10 = vld [vmem:[%s5257_s30 + $0xf0] sm:$0xff] }
 0x37a   : > { %v1098_v1 = vmul.f32 0.5, %v1097_v51  ;;  %v5925_v51 = vperm.slane %v1507_v46, 0 }
 0x37b   : > { %v440_v18 = vpop.permute.xlu0 %439 }
 0x37c   : > { %v502_v56 = vmul.f32 %v5274_v11, %v440_v18  ;;  %v1099_v60 = vsub.f32 1.5, %v1098_v1  ;;  %8875 = vst [vmem:[#allocation3_spill] sm:$0xff] %v5925_v51 }
 0x37e   : > { %v5873_v20 = vadd.f32 %v5277_v12, %v502_v56  ;;  %v1100_v38 = vmul.f32 %v4822_v36, %v1099_v60 }
 0x380   : > { %591 = vadd.xlane.f32.xlu1 %v5873_v20  ;;  %v663_v7 = vmul.f32 %v5873_v20, %v5873_v20  ;;  %v1104_v33 = vsel %vm1103_vm14, %v4822_v36, %v1100_v38 }
 0x381   : > { %v1235_v43 = vmul.f32 %v1104_v33, %v851_v48 }
 0x382   : > { %719 = vadd.xlane.f32.xlu2 %v663_v7  ;;  %v5916_v7 = vpop.f32.mrf.mxu1 }
 0x383   : > { %v430_v39 = vpop.permute.xlu0 %429 }
 0x384   : > { %v500_v35 = vmul.f32 %v5274_v11, %v430_v39  ;;  %v1506_v39 = vperm.slane %v315_v47, 0 }
 0x386   : > { %v5884_v28 = vadd.f32 %v5277_v12, %v500_v35  ;;  %v1268_v35 = vmul.f32 %v5455_v42, %v1235_v43 }
 0x388   : > { %587 = vadd.xlane.f32.xlu1 %v5884_v28  ;;  %v586_v61 = vpop.xlane.xlu2 %585  ;;  %v1301_v4 = vadd.f32 %v5458_v19, %v1268_v35 }
 0x389   : > { %v5891_v3 = vmul.f32 0.0078125, %v586_v61 }
 0x38a   : > { %721 = vadd.xlane.f32.xlu2 %v664_v53 }
 0x38b   : > { %v455_v6 = vpop.permute.xlu0 %454  ;;  %v788_v8 = vmul.f32 %v5891_v3, %v5891_v3  ;;  %v852_v38 = vsub.f32 %v5820_v2, %v5891_v3 }
 0x38c   : > { %v505_v31 = vmul.f32 %v5274_v11, %v455_v6  ;;  %v5931_v6 = vperm.slane %v1506_v39, 0  ;;  %v465_v39 = vpop.permute.xlu1 %464 }
 0x38d   : > { %v507_v35 = vmul.f32 %v5274_v11, %v465_v39  ;;  %v661_v39 = vmul.f32 %v5884_v28, %v5884_v28 }
 0x38e   : > { %v5919_v36 = vadd.f32 %v5277_v12, %v505_v31  ;;  %v5937_v60 = vadd.f32 %v5880_v37, %v5931_v6  ;;  %v1333_v37 = vmul.f32 0.5, %v1301_v4  ;;  %v5969_v47 = vadd.f32 %v1606_v27, %v5931_v6 }
 0x390   : > { %589 = vadd.xlane.f32.xlu1 %v5847_v50  ;;  %v714_v24 = vpop.xlane.xlu2 %713 }
 0x391   : > { %v756_v34 = vmul.f32 0.0078125, %v714_v24  ;;  %v5941_v24 = vadd.f32 %v5850_v52, %v5925_v51  ;;  %v5956_v52 = vadd.f32 %v5858_v45, %v5925_v51  ;;  %v666_v45 = vmul.f32 %v5919_v36, %v5919_v36 }
 0x393   : > { %v820_v57 = vsub.f32 %v756_v34, %v788_v8  ;;  %v460_v63 = vpop.permute.xlu0 %459 }
 0x394   : > { %v506_v55 = vmul.f32 %v5274_v11, %v460_v63  ;;  %v5947_v63 = vpop.f32.mrf.mxu1 }
 0x395   : > { %v884_v29 = vadd.f32 1e-05, %v820_v57  ;;  %v5945_v57 = vpop.f32.mrf.mxu0 }
 0x396   : > { %v5904_v0 = vadd.f32 %v5277_v12, %v506_v55  ;;  %v5952_v55 = vadd.f32 %v1603_v9, %v5931_v6  ;;  %v1901_v9 = vmul.f32 %v5956_v52, %v5956_v52 }
 0x397   : > { %4823 = vrsqrt.f32 %v884_v29  ;;  %vm1111_vm0 = vweird.f32 %v884_v29 }
 0x398   : > { %595 = vadd.xlane.f32.xlu1 %v5901_v49  ;;  %v667_v26 = vmul.f32 %v5904_v0, %v5904_v0  ;;  %4825 = vtanh.f32 %v1333_v37  ;;  %v1900_v2 = vmul.f32 %v5952_v55, %v5952_v55 }
 0x39a   : > { %727 = vadd.xlane.f32.xlu0 %v667_v26  ;;  %v1965_v43 = vadd.f32 %v1901_v9, %v1900_v2 }
 0x39b   : > { %v475_v5 = vpop.permute.xlu0 %474 }
 0x39c   : > { %v509_v18 = vmul.f32 %v5274_v11, %v475_v5  ;;  %v5973_v5 = vadd.f32 %v5861_v14, %v5925_v51 }
 0x39d   : > { %v4824_v56 = vpop.eup %4823 }
 0x39e   : > { %v1106_v30 = vmul.f32 %v4824_v56, %v884_v29  ;;  %v5928_v53 = vadd.f32 %v5277_v12, %v509_v18  ;;  %vm1112_vm15 = vweird.f32 %v4824_v56  ;;  %v1770_v29 = vadd.f32 %v5941_v24, %v5937_v60  ;;  %8876 = vst [vmem:[#allocation4_spill] sm:$0xff] %v5973_v5  ;;  %v4826_v46 = vpop.eup %4825  ;;  %v1613_v18 = vpop.f32.mrf.mxu0 }
 0x39f   : > { %vm1113_vm1 = vmor %vm1111_vm0, %vm1112_vm15  ;;  %v1903_v27 = vmul.f32 %v5973_v5, %v5973_v5 }
 0x3a0   : > { %v1107_v61 = vmul.f32 %v4824_v56, %v1106_v30  ;;  %597 = vadd.xlane.f32.xlu1 %v5919_v36  ;;  %v1902_v30 = vmul.f32 %v5969_v47, %v5969_v47 }
 0x3a2   : > { %v1108_v1 = vmul.f32 0.5, %v1107_v61  ;;  %469 = vperm.xlu2 %4740, %v312_v10   ;;  %605 = vadd.xlane.f32.xlu0 %v5928_v53  ;;  %v1397_v10 = vmul.f32 0.5, %v4826_v46  ;;  %v1968_v61 = vadd.f32 %v1903_v27, %v1902_v30  ;;  %v6009_v46 = vadd.f32 %v5897_v15, %v5925_v51 }
 0x3a4   : > { %v1109_v8 = vsub.f32 1.5, %v1108_v1  ;;  %v1913_v30 = vmul.f32 %v6009_v46, %v6009_v46 }
 0x3a6   : > { %v1110_v34 = vmul.f32 %v4824_v56, %v1109_v8  ;;  %v1429_v8 = vadd.f32 0.5, %v1397_v10  ;;  %v6021_v10 = vadd.f32 %v5916_v7, %v5925_v51 }
 0x3a8   : > { %723 = vadd.xlane.f32.xlu1 %v665_v23  ;;  %v1114_v26 = vsel %vm1113_vm1, %v4824_v56, %v1110_v34  ;;  %v5975_v56 = vpop.f32.mrf.mxu1  ;;  %v5984_v34 = vadd.f32 %v5277_v12, %v507_v35  ;;  %v6025_v35 = vadd.f32 %v5808_v25, %v5931_v6 }
 0x3a9   : > { %v1236_v33 = vmul.f32 %v1114_v26, %v852_v38  ;;  %v1616_v38 = vpop.f32.mrf.mxu0  ;;  %v5991_v26 = vadd.f32 %v5875_v54, %v5925_v51  ;;  %v6002_v54 = vadd.f32 %v5889_v59, %v5925_v51 }
 0x3aa   : > { %1771 = vadd.xlane.f32.xlu0 %v1770_v29  ;;  %8877 = vst [vmem:[#allocation5_spill] sm:$0xff] %v5984_v34  ;;  %v5987_v29 = vadd.f32 %v1613_v18, %v5931_v6  ;;  %v668_v2 = vmul.f32 %v5984_v34, %v5984_v34 }
 0x3ab   : > { %v1269_v48 = vmul.f32 %v5455_v42, %v1236_v33  ;;  %v1461_v33 = vmul.f32 %v1429_v8, %v1301_v4 }
 0x3ad   : > { %v1302_v3 = vadd.f32 %v5458_v19, %v1269_v48 }
 0x3af   : > { %v1334_v31 = vmul.f32 0.5, %v1302_v3 }
 0x3b0   : > { %725 = vadd.xlane.f32.xlu1 %v666_v45  ;;  %v1717_v37 = vpop.f32.mrf.mxu1  ;;  %v1785_v45 = vadd.f32 %v5991_v26, %v5987_v29 }
 0x3b1   : > { %4827 = vtanh.f32 %v1334_v31  ;;  %v5998_v31 = vadd.f32 %v1616_v38, %v5931_v6  ;;  %v1618_v4 = vpop.f32.mrf.mxu0  ;;  %v6033_v7 = vadd.f32 %v1717_v37, %v5925_v51 }
 0x3b2   : > { %1966 = vadd.xlane.f32.xlu0 %v1965_v43  ;;  %v6005_v43 = vadd.f32 %v1618_v4, %v5931_v6 }
 0x3b3   : > { %v1788_v18 = vadd.f32 %v6002_v54, %v5998_v31  ;;  %8878 = vst [vmem:[#allocation6_spill] sm:$0xff] %v6033_v7 }
 0x3b4   : > { %v1912_v59 = vmul.f32 %v6005_v43, %v6005_v43 }
 0x3b6   : > { %v1983_v15 = vadd.f32 %v1913_v30, %v1912_v59  ;;  %v6072_v59 = vadd.f32 %v5841_v21, %v5931_v6 }
 0x3b7   : > { %v4828_v14 = vpop.eup %4827 }
 0x3b8   : > { %599 = vadd.xlane.f32.xlu1 %v5904_v0  ;;  %v1398_v1 = vmul.f32 0.5, %v4828_v14  ;;  %v1915_v14 = vmul.f32 %v6021_v10, %v6021_v10  ;;  %8888 = vst [vmem:[#allocation16_spill] sm:$0xff] %v6072_v59 }
 0x3ba   : > { %1969 = vadd.xlane.f32.xlu0 %v1968_v61  ;;  %v1430_v23 = vadd.f32 0.5, %v1398_v1  ;;  %v1914_v61 = vmul.f32 %v6025_v35, %v6025_v35 }
 0x3bc   : > { %v1462_v48 = vmul.f32 %v1430_v23, %v1302_v3  ;;  %v1720_v3 = vpop.f32.mrf.mxu1  ;;  %v1986_v1 = vadd.f32 %v1915_v14, %v1914_v61  ;;  %v6037_v23 = vadd.f32 %v5830_v22, %v5931_v6 }
 0x3be   : > { %v1483_v9 = vpack.c.bf16 %v1462_v48, %v1461_v33  ;;  %8879 = vst [vmem:[#allocation7_spill] sm:$0xff] %v6037_v23  ;;  %v1803_v25 = vadd.f32 %v6033_v7, %v6037_v23  ;;  %v6044_v33 = vadd.f32 %v1720_v3, %v5925_v51  ;;  %v6048_v48 = vadd.f32 %v5837_v40, %v5931_v6  ;;  %v594_v40 = vpop.xlane.xlu2 %593 }
 0x3c0   : > { %729 = vadd.xlane.f32.xlu1 %v668_v2  ;;  %1650 = vmatmul.bf16.gmra.mxu2 %v1483_v9  ;;  %8881 = vst [vmem:[#allocation9_spill] sm:$0xff] %v6044_v33  ;;  %v1806_v22 = vadd.f32 %v6044_v33, %v6048_v48  ;;  %v6055_v2 = vpop.f32.mrf.mxu2 }
 0x3c1   : > { %1739 = vmatmul.bf16.gmra.mxu1 %v1483_v9  ;;  %8882 = vst [vmem:[#allocation10_spill] sm:$0xff] %v6048_v48  ;;  %v6059_v9 = vadd.f32 %v5839_v17, %v5931_v6 }
 0x3c2   : > { %1786 = vadd.xlane.f32.xlu0 %v1785_v45  ;;  %8884 = vst [vmem:[#allocation12_spill] sm:$0xff] %v6055_v2 }
 0x3c3   : > { %8885 = vst [vmem:[#allocation13_spill] sm:$0xff] %v6059_v9  ;;  %v1924_v3 = vmul.f32 %v6059_v9, %v6059_v9 }
 0x3c4   : > { %v1722_v27 = vpop.f32.mrf.mxu1 }
 0x3c5   : > { %v6051_v37 = vadd.f32 %v1722_v27, %v5925_v51 }
 0x3c7   : > { %8883 = vst [vmem:[#allocation11_spill] sm:$0xff] %v6051_v37  ;;  %v1925_v4 = vmul.f32 %v6051_v37, %v6051_v37 }
 0x3c8   : > { %v1643_v17 = vpop.f32.mrf.mxu2 }
 0x3ca   : > { %1789 = vadd.xlane.f32.xlu0 %v1788_v18 }
 0x3cb   : > { %715 = vadd.xlane.f32.xlu2 %v661_v39  ;;  %v2001_v39 = vadd.f32 %v1925_v4, %v1924_v3  ;;  %v6078_v3 = vmul.f32 0.0078125, %v594_v40 }
 0x3cc   : > { %v1725_v8 = vpop.f32.mrf.mxu1 }
 0x3cd   : > { %v6068_v18 = vadd.f32 %v1725_v8, %v5925_v51  ;;  %v1926_v8 = vmul.f32 %v6072_v59, %v6072_v59 }
 0x3cf   : > { %8887 = vst [vmem:[#allocation15_spill] sm:$0xff] %v6068_v18 }
 0x3d2   : > { %1984 = vadd.xlane.f32.xlu0 %v1983_v15  ;;  %v1927_v15 = vmul.f32 %v6068_v18, %v6068_v18 }
 0x3d3   : > { %601 = vadd.xlane.f32.xlu2 %v5984_v34 }
 0x3d4   : > { %v6041_v38 = vpop.f32.mrf.mxu1  ;;  %v2004_v4 = vadd.f32 %v1927_v15, %v1926_v8 }
 0x3d5   : > { %8880 = vst [vmem:[#allocation8_spill] sm:$0xff] %v6041_v38 }
 0x3da   : > { %1987 = vadd.xlane.f32.xlu0 %v1986_v1 }
 0x3dc   : > { %v6061_v45 = vpop.f32.mrf.mxu1 }
 0x3dd   : > { %8886 = vst [vmem:[#allocation14_spill] sm:$0xff] %v6061_v45 }
 0x3e2   : > { %1804 = vadd.xlane.f32.xlu0 %v1803_v25 }
 0x3e4   : > { %v1732_v14 = vpop.f32.mrf.mxu1 }
 0x3e5   : > { %v6088_v41 = vadd.f32 %v1732_v14, %v5925_v51 }
 0x3e7   : > { %8890 = vst [vmem:[#allocation18_spill] sm:$0xff] %v6088_v41 }
 0x3ea   : > { %1807 = vadd.xlane.f32.xlu0 %v1806_v22 }
 0x3ec   : > { %v1735_v2 = vpop.f32.mrf.mxu1 }
 0x3ed   : > { %v6096_v14 = vadd.f32 %v1735_v2, %v5925_v51 }
 0x3ef   : > { %8892 = vst [vmem:[#allocation20_spill] sm:$0xff] %v6096_v14 }
 0x3f2   : > { %2002 = vadd.xlane.f32.xlu0 %v2001_v39  ;;  %v1646_v39 = vpop.f32.mrf.mxu2 }
 0x3f3   : > { %v592_v30 = vpop.xlane.xlu1 %591 }
 0x3f4   : > { %v631_v27 = vmul.f32 0.0078125, %v592_v30  ;;  %v6083_v30 = vadd.f32 %v1643_v17, %v5931_v6 }
 0x3f5   : > { %v720_v61 = vpop.xlane.xlu2 %719 }
 0x3f6   : > { %v791_v1 = vmul.f32 %v631_v27, %v631_v27  ;;  %v759_v25 = vmul.f32 0.0078125, %v720_v61  ;;  %8889 = vst [vmem:[#allocation17_spill] sm:$0xff] %v6083_v30  ;;  %v792_v61 = vmul.f32 %v6078_v3, %v6078_v3 }
 0x3f8   : > { %v823_v22 = vsub.f32 %v759_v25, %v791_v1  ;;  %v1821_v1 = vadd.f32 %v6088_v41, %v6083_v30 }
 0x3fa   : > { %v887_v21 = vadd.f32 1e-05, %v823_v22  ;;  %2005 = vadd.xlane.f32.xlu0 %v2004_v4  ;;  %v6093_v4 = vadd.f32 %v1646_v39, %v5931_v6  ;;  %v1648_v59 = vpop.f32.mrf.mxu2 }
 0x3fb   : > { %v6080_v45 = vpop.xlane.xlu1 %587  ;;  %v6100_v41 = vadd.f32 %v1648_v59, %v5931_v6 }
 0x3fc   : > { %4829 = vrsqrt.f32 %v887_v21  ;;  %8891 = vst [vmem:[#allocation19_spill] sm:$0xff] %v6093_v4  ;;  %v1824_v39 = vadd.f32 %v6096_v14, %v6093_v4  ;;  %vm1141_vm3 = vweird.f32 %v887_v21 }
 0x3fd   : > { %v722_v34 = vpop.xlane.xlu2 %721  ;;  %8893 = vst [vmem:[#allocation21_spill] sm:$0xff] %v6100_v41  ;;  %v1936_v59 = vmul.f32 %v6100_v41, %v6100_v41 }
 0x3fe   : > { %v760_v15 = vmul.f32 0.0078125, %v722_v34 }
 0x400   : > { %v824_v40 = vsub.f32 %v760_v15, %v792_v61  ;;  %v1737_v61 = vpop.f32.mrf.mxu1 }
 0x401   : > { %v6108_v30 = vadd.f32 %v1737_v61, %v5925_v51 }
 0x402   : > { %v4830_v25 = vpop.eup %4829  ;;  %v888_v8 = vadd.f32 1e-05, %v824_v40  ;;  %1822 = vadd.xlane.f32.xlu0 %v1821_v1 }
 0x403   : > { %v1136_v22 = vmul.f32 %v4830_v25, %v887_v21  ;;  %v590_v17 = vpop.xlane.xlu1 %589  ;;  %vm1142_vm2 = vweird.f32 %v4830_v25  ;;  %8895 = vst [vmem:[#allocation23_spill] sm:$0xff] %v6108_v30  ;;  %v670_v21 = vmul.f32 %v5928_v53, %v5928_v53 }
 0x404   : > { %4831 = vrsqrt.f32 %v888_v8  ;;  %vm1143_vm4 = vmor %vm1141_vm3, %vm1142_vm2  ;;  %vm1151_vm6 = vweird.f32 %v888_v8 }
 0x405   : > { %v1137_v18 = vmul.f32 %v4830_v25, %v1136_v22  ;;  %v470_v38 = vpop.permute.xlu2 %469 }
 0x406   : > { %v508_v34 = vmul.f32 %v5274_v11, %v470_v38 }
 0x407   : > { %v1138_v15 = vmul.f32 0.5, %v1137_v18  ;;  %v855_v18 = vsub.f32 %v5873_v20, %v631_v27  ;;  %v1773_v20 = vadd.f32 %v5956_v52, %v5952_v55 }
 0x408   : > { %v6103_v40 = vadd.f32 %v5277_v12, %v508_v34 }
 0x409   : > { %v1139_v1 = vsub.f32 1.5, %v1138_v15  ;;  %v1937_v15 = vmul.f32 %v6108_v30, %v6108_v30 }
 0x40a   : > { %8894 = vst [vmem:[#allocation22_spill] sm:$0xff] %v6103_v40  ;;  %v4832_v22 = vpop.eup %4831  ;;  %1825 = vadd.xlane.f32.xlu0 %v1824_v39  ;;  %603 = vadd.xlane.f32.xlu2 %v6103_v40  ;;  %v669_v11 = vmul.f32 %v6103_v40, %v6103_v40 }
 0x40b   : > { %v1140_v38 = vmul.f32 %v4830_v25, %v1139_v1  ;;  %v1146_v2 = vmul.f32 %v4832_v22, %v888_v8  ;;  %v596_v12 = vpop.xlane.xlu1 %595  ;;  %v2019_v4 = vadd.f32 %v1937_v15, %v1936_v59  ;;  %vm1152_vm5 = vweird.f32 %v4832_v22 }
 0x40c   : > { %731 = vadd.xlane.f32.xlu1 %v669_v11  ;;  %vm1153_vm7 = vmor %vm1151_vm6, %vm1152_vm5 }
 0x40d   : > { %v1147_v34 = vmul.f32 %v4832_v22, %v1146_v2  ;;  %v1144_v61 = vsel %vm1143_vm4, %v4830_v25, %v1140_v38  ;;  %v856_v38 = vsub.f32 %v5833_v13, %v6078_v3  ;;  %v1898_v2 = vmul.f32 %v5937_v60, %v5937_v60 }
 0x40e   : > { %v1239_v39 = vmul.f32 %v1144_v61, %v855_v18  ;;  %v6137_v13 = vadd.f32 %v5921_v58, %v5931_v6  ;;  %v6141_v3 = vadd.f32 %v5865_v16, %v5925_v51 }
 0x40f   : > { %v1148_v14 = vmul.f32 0.5, %v1147_v34  ;;  %v6130_v34 = vmul.f32 0.0078125, %v596_v12 }
 0x410   : > { %v1272_v1 = vmul.f32 %v5455_v42, %v1239_v39  ;;  %8896 = vst [vmem:[#allocation24_spill] sm:$0xff] %v6141_v3  ;;  %v718_v39 = vpop.xlane.xlu0 %717 }
 0x411   : > { %v1149_v40 = vsub.f32 1.5, %v1148_v14 }
 0x412   : > { %2020 = vadd.xlane.f32.xlu0 %v2019_v4  ;;  %733 = vadd.xlane.f32.xlu2 %v670_v21  ;;  %v1305_v27 = vadd.f32 %v5458_v19, %v1272_v1  ;;  %v1899_v4 = vmul.f32 %v5941_v24, %v5941_v24 }
 0x413   : > { %v1150_v25 = vmul.f32 %v4832_v22, %v1149_v40  ;;  %v598_v11 = vpop.xlane.xlu1 %597  ;;  %v6133_v40 = vmul.f32 0.0078125, %v590_v17  ;;  %v793_v17 = vmul.f32 %v6130_v34, %v6130_v34 }
 0x414   : > { %1774 = vadd.xlane.f32.xlu1 %v1773_v20  ;;  %v1337_v14 = vmul.f32 0.5, %v1305_v27  ;;  %v1962_v61 = vadd.f32 %v1899_v4, %v1898_v2  ;;  %v758_v2 = vmul.f32 0.0078125, %v718_v39  ;;  %v6154_v4 = vmul.f32 0.0078125, %v598_v11 }
 0x415   : > { %v1154_v18 = vsel %vm1153_vm7, %v4832_v22, %v1150_v25  ;;  %v1776_v22 = vadd.f32 %v5973_v5, %v5969_v47  ;;  %v790_v58 = vmul.f32 %v6133_v40, %v6133_v40  ;;  %v1904_v25 = vmul.f32 %v6137_v13, %v6137_v13 }
 0x416   : > { %v1240_v59 = vmul.f32 %v1154_v18, %v856_v38  ;;  %4833 = vtanh.f32 %v1337_v14  ;;  %v1905_v38 = vmul.f32 %v6141_v3, %v6141_v3  ;;  %v1779_v18 = vadd.f32 %v6141_v3, %v6137_v13 }
 0x418   : > { %v1273_v8 = vmul.f32 %v5455_v42, %v1240_v59  ;;  %v822_v59 = vsub.f32 %v758_v2, %v790_v58 }
 0x41a   : > { %1963 = vadd.xlane.f32.xlu2 %v1962_v61  ;;  %v1306_v12 = vadd.f32 %v5458_v19, %v1273_v8  ;;  %v6160_v8 = vadd.f32 %v5945_v57, %v5931_v6 }
 0x41b   : > { %v724_v15 = vpop.xlane.xlu1 %723 }
 0x41c   : > { %v761_v21 = vmul.f32 0.0078125, %v724_v15  ;;  %1777 = vadd.xlane.f32.xlu1 %v1776_v22  ;;  %v1338_v1 = vmul.f32 0.5, %v1306_v12  ;;  %v4834_v20 = vpop.eup %4833  ;;  %v6164_v22 = vadd.f32 %v5869_v44, %v5925_v51  ;;  %v1971_v15 = vadd.f32 %v1905_v38, %v1904_v25 }
 0x41d   : > { %v1401_v61 = vmul.f32 0.5, %v4834_v20 }
 0x41e   : > { %v825_v16 = vsub.f32 %v761_v21, %v793_v17  ;;  %4835 = vtanh.f32 %v1338_v1  ;;  %8897 = vst [vmem:[#allocation25_spill] sm:$0xff] %v6164_v22  ;;  %v794_v17 = vmul.f32 %v6154_v4, %v6154_v4  ;;  %v6168_v1 = vadd.f32 1e-05, %v822_v59 }
 0x41f   : > { %v1433_v20 = vadd.f32 0.5, %v1401_v61  ;;  %v1907_v44 = vmul.f32 %v6164_v22, %v6164_v22 }
 0x420   : > { %v889_v14 = vadd.f32 1e-05, %v825_v16  ;;  %v1906_v16 = vmul.f32 %v6160_v8, %v6160_v8  ;;  %vm1131_vm15 = vweird.f32 %v6168_v1 }
 0x421   : > { %v1465_v59 = vmul.f32 %v1433_v20, %v1305_v27 }
 0x422   : > { %4837 = vrsqrt.f32 %v889_v14  ;;  %1780 = vadd.xlane.f32.xlu2 %v1779_v18  ;;  %v1782_v18 = vadd.f32 %v6164_v22, %v6160_v8  ;;  %v1974_v61 = vadd.f32 %v1907_v44, %v1906_v16  ;;  %vm1161_vm9 = vweird.f32 %v889_v14 }
 0x423   : > { %v726_v39 = vpop.xlane.xlu1 %725  ;;  %4839 = vrsqrt.f32 %v6168_v1 }
 0x424   : > { %v4836_v11 = vpop.eup %4835  ;;  %v762_v21 = vmul.f32 0.0078125, %v726_v39  ;;  %1972 = vadd.xlane.f32.xlu1 %v1971_v15 }
 0x425   : > { %v1402_v58 = vmul.f32 0.5, %v4836_v11  ;;  %v728_v11 = vpop.xlane.xlu0 %727 }
 0x426   : > { %v826_v57 = vsub.f32 %v762_v21, %v794_v17  ;;  %v763_v27 = vmul.f32 0.0078125, %v728_v11 }
 0x427   : > { %v1434_v2 = vadd.f32 0.5, %v1402_v58  ;;  %v1908_v58 = vmul.f32 %v5987_v29, %v5987_v29 }
 0x428   : > { %v4838_v25 = vpop.eup %4837  ;;  %v890_v38 = vadd.f32 1e-05, %v826_v57  ;;  %v1909_v57 = vmul.f32 %v5991_v26, %v5991_v26 }
 0x429   : > { %v1156_v15 = vmul.f32 %v4838_v25, %v889_v14  ;;  %v1466_v39 = vmul.f32 %v1434_v2, %v1306_v12  ;;  %v6188_v20 = vpop.eup %4839  ;;  %vm1162_vm8 = vweird.f32 %v4838_v25  ;;  %v1910_v14 = vmul.f32 %v5998_v31, %v5998_v31 }
 0x42a   : > { %4841 = vrsqrt.f32 %v890_v38  ;;  %1783 = vadd.xlane.f32.xlu2 %v1782_v18  ;;  %v1977_v18 = vadd.f32 %v1909_v57, %v1908_v58  ;;  %vm1163_vm10 = vmor %vm1161_vm9, %vm1162_vm8  ;;  %v1911_v58 = vmul.f32 %v6002_v54, %v6002_v54  ;;  %vm1171_vm12 = vweird.f32 %v890_v38 }
 0x42b   : > { %v1157_v17 = vmul.f32 %v4838_v25, %v1156_v15  ;;  %v600_v21 = vpop.xlane.xlu1 %599  ;;  %v6177_v3 = vpack.c.bf16 %v1466_v39, %v1465_v59  ;;  %v1126_v39 = vmul.f32 %v6188_v20, %v6168_v1  ;;  %vm1132_vm14 = vweird.f32 %v6188_v20 }
 0x42c   : > { %v6179_v5 = vmul.f32 0.0078125, %v600_v21  ;;  %1975 = vadd.xlane.f32.xlu1 %v1974_v61  ;;  %v857_v61 = vsub.f32 %v5901_v49, %v6130_v34  ;;  %vm1133_vm0 = vmor %vm1131_vm15, %vm1132_vm14 }
 0x42d   : > { %v1158_v22 = vmul.f32 0.5, %v1157_v17  ;;  %1660 = vmatmul.bf16.vlgmr.msra.gmra.mxu3 %v6177_v3  ;;  %v1127_v34 = vmul.f32 %v6188_v20, %v1126_v39  ;;  %v858_v39 = vsub.f32 %v5919_v36, %v6154_v4 }
 0x42e   : > { %v795_v12 = vmul.f32 %v6179_v5, %v6179_v5 }
 0x42f   : > { %v1159_v16 = vsub.f32 1.5, %v1158_v22  ;;  %v1791_v22 = vadd.f32 %v6009_v46, %v6005_v43 }
 0x430   : > { %v4842_v44 = vpop.eup %4841  ;;  %v827_v2 = vsub.f32 %v763_v27, %v795_v12 }
 0x431   : > { %v1160_v15 = vmul.f32 %v4838_v25, %v1159_v16  ;;  %v1166_v59 = vmul.f32 %v4842_v44, %v890_v38  ;;  %vm1172_vm11 = vweird.f32 %v4842_v44  ;;  %v1980_v16 = vadd.f32 %v1911_v58, %v1910_v14 }
 0x432   : > { %v6194_v11 = vadd.f32 1e-05, %v827_v2  ;;  %1978 = vadd.xlane.f32.xlu2 %v1977_v18  ;;  %v6210_v2 = vadd.f32 %v5947_v63, %v5925_v51  ;;  %vm1173_vm13 = vmor %vm1171_vm12, %vm1172_vm11  ;;  %v6224_v63 = vmul.f32 0.0078125, %v6080_v45 }
 0x433   : > { %v1167_v17 = vmul.f32 %v4842_v44, %v1166_v59  ;;  %v1164_v21 = vsel %vm1163_vm10, %v4838_v25, %v1160_v15  ;;  %v1128_v59 = vmul.f32 0.5, %v1127_v34 }
 0x434   : > { %4843 = vrsqrt.f32 %v6194_v11  ;;  %1792 = vadd.xlane.f32.xlu1 %v1791_v22  ;;  %v1241_v57 = vmul.f32 %v1164_v21, %v857_v61  ;;  %8898 = vst [vmem:[#allocation26_spill] sm:$0xff] %v6210_v2  ;;  %v1794_v61 = vadd.f32 %v6021_v10, %v6025_v35  ;;  %v1917_v4 = vmul.f32 %v6210_v2, %v6210_v2 }
 0x435   : > { %v1168_v49 = vmul.f32 0.5, %v1167_v17  ;;  %v6221_v17 = vadd.f32 %v5814_v62, %v5931_v6  ;;  %v1129_v14 = vsub.f32 1.5, %v1128_v59  ;;  %v789_v62 = vmul.f32 %v6224_v63, %v6224_v63 }
 0x436   : > { %v1274_v27 = vmul.f32 %v5455_v42, %v1241_v57  ;;  %vm1181_vm2 = vweird.f32 %v6194_v11 }
 0x437   : > { %v1169_v12 = vsub.f32 1.5, %v1168_v49  ;;  %8899 = vst [vmem:[#allocation27_spill] sm:$0xff] %v6221_v17 }
 0x438   : > { %v6206_v25 = vadd.f32 %v5458_v19, %v1274_v27  ;;  %v1797_v27 = vadd.f32 %v6210_v2, %v6221_v17 }
 0x439   : > { %v1170_v18 = vmul.f32 %v4842_v44, %v1169_v12 }
 0x43a   : > { %v6212_v15 = vpop.eup %4843  ;;  %1981 = vadd.xlane.f32.xlu2 %v1980_v16  ;;  %v1339_v22 = vmul.f32 0.5, %v6206_v25  ;;  %v6241_v16 = vadd.f32 %v5975_v56, %v5925_v51 }
 0x43b   : > { %v1174_v38 = vsel %vm1173_vm13, %v4842_v44, %v1170_v18  ;;  %v1176_v21 = vmul.f32 %v6212_v15, %v6194_v11  ;;  %v1916_v44 = vmul.f32 %v6221_v17, %v6221_v17  ;;  %vm1182_vm1 = vweird.f32 %v6212_v15 }
 0x43c   : > { %1795 = vadd.xlane.f32.xlu1 %v1794_v61  ;;  %v1242_v36 = vmul.f32 %v1174_v38, %v858_v39  ;;  %4845 = vtanh.f32 %v1339_v22  ;;  %8900 = vst [vmem:[#allocation28_spill] sm:$0xff] %v6241_v16  ;;  %v1130_v39 = vmul.f32 %v6188_v20, %v1129_v14  ;;  %v6250_v38 = vadd.f32 %v5824_v32, %v5931_v6  ;;  %vm1183_vm3 = vmor %vm1181_vm2, %vm1182_vm1 }
 0x43d   : > { %v1177_v34 = vmul.f32 %v6212_v15, %v1176_v21  ;;  %v1989_v59 = vadd.f32 %v1917_v4, %v1916_v44  ;;  %v1919_v1 = vmul.f32 %v6241_v16, %v6241_v16 }
 0x43e   : > { %v716_v58 = vpop.xlane.xlu2 %715  ;;  %v1275_v57 = vmul.f32 %v5455_v42, %v1242_v36  ;;  %v1740_v49 = vpop.f32.mrf.mxu1  ;;  %8902 = vst [vmem:[#allocation30_spill] sm:$0xff] %v6250_v38 }
 0x43f   : > { %v757_v45 = vmul.f32 0.0078125, %v716_v58  ;;  %v6246_v61 = vadd.f32 %v1740_v49, %v5925_v51  ;;  %v1178_v4 = vmul.f32 0.5, %v1177_v34  ;;  %v1134_v58 = vsel %vm1133_vm0, %v6188_v20, %v1130_v39 }
 0x440   : > { %v1308_v12 = vadd.f32 %v5458_v19, %v1275_v57  ;;  %v730_v57 = vpop.xlane.xlu1 %729  ;;  %v1800_v20 = vadd.f32 %v6241_v16, %v6250_v38  ;;  %v8924_v16 = vld [vmem:[#allocation4_spill] sm:$0xff] }
 0x441   : > { %v821_v18 = vsub.f32 %v757_v45, %v789_v62  ;;  %8901 = vst [vmem:[#allocation29_spill] sm:$0xff] %v6246_v61  ;;  %v1939_v49 = vmul.f32 %v6246_v61, %v6246_v61  ;;  %v854_v45 = vsub.f32 %v5847_v50, %v6133_v40 }
 0x442   : > { %1798 = vadd.xlane.f32.xlu2 %v1797_v27  ;;  %v1340_v22 = vmul.f32 0.5, %v1308_v12  ;;  %v4846_v56 = vpop.eup %4845  ;;  %v1179_v27 = vsub.f32 1.5, %v1178_v4 }
 0x443   : > { %v6252_v21 = vadd.f32 1e-05, %v821_v18  ;;  %v1651_v36 = vpop.f32.mrf.mxu2  ;;  %v1403_v34 = vmul.f32 0.5, %v4846_v56  ;;  %v1238_v39 = vmul.f32 %v1134_v58, %v854_v45 }
 0x444   : > { %v6256_v14 = vadd.f32 %v1651_v36, %v5931_v6  ;;  %1990 = vadd.xlane.f32.xlu1 %v1989_v59  ;;  %4847 = vtanh.f32 %v1340_v22  ;;  %v1918_v59 = vmul.f32 %v6250_v38, %v6250_v38  ;;  %v6274_v22 = vpop.xlane.xlu0 %605  ;;  %v764_v36 = vmul.f32 0.0078125, %v730_v57 }
 0x445   : > { %4849 = vrsqrt.f32 %v6252_v21  ;;  %v1921_v57 = vmul.f32 %v6033_v7, %v6033_v7  ;;  %vm1121_vm5 = vweird.f32 %v6252_v21 }
 0x446   : > { %8903 = vst [vmem:[#allocation31_spill] sm:$0xff] %v6256_v14  ;;  %v602_v32 = vpop.xlane.xlu2 %601  ;;  %v1938_v62 = vmul.f32 %v6256_v14, %v6256_v14  ;;  %v1992_v50 = vadd.f32 %v1919_v1, %v1918_v59 }
 0x447   : > { %v6268_v44 = vmul.f32 0.0078125, %v602_v32  ;;  %v1435_v32 = vadd.f32 0.5, %v1403_v34 }
 0x448   : > { %v2022_v18 = vadd.f32 %v1939_v49, %v1938_v62  ;;  %v1180_v62 = vmul.f32 %v6212_v15, %v1179_v27 }
 0x449   : > { %v796_v2 = vmul.f32 %v6268_v44, %v6268_v44 }
 0x44a   : > { %v4848_v17 = vpop.eup %4847  ;;  %2023 = vadd.xlane.f32.xlu0 %v2022_v18  ;;  %1801 = vadd.xlane.f32.xlu2 %v1800_v20  ;;  %v1271_v18 = vmul.f32 %v5455_v42, %v1238_v39  ;;  %v1184_v27 = vsel %vm1183_vm3, %v6212_v15, %v1180_v62 }
 0x44b   : > { %v4850_v40 = vpop.eup %4849  ;;  %v828_v56 = vsub.f32 %v764_v36, %v796_v2  ;;  %v1404_v4 = vmul.f32 0.5, %v4848_v17  ;;  %v1920_v2 = vmul.f32 %v6037_v23, %v6037_v23  ;;  %v1467_v17 = vmul.f32 %v1435_v32, %v6206_v25 }
 0x44c   : > { %v1116_v58 = vmul.f32 %v4850_v40, %v6252_v21  ;;  %1993 = vadd.xlane.f32.xlu1 %v1992_v50  ;;  %v859_v36 = vsub.f32 %v5904_v0, %v6179_v5  ;;  %v6294_v11 = vadd.f32 %v5458_v19, %v1271_v18  ;;  %vm1122_vm4 = vweird.f32 %v4850_v40  ;;  %v6298_v25 = vpop.xlane.xlu0 %1771 }
 0x44d   : > { %v892_v49 = vadd.f32 1e-05, %v828_v56  ;;  %v1436_v45 = vadd.f32 0.5, %v1404_v4  ;;  %v1995_v59 = vadd.f32 %v1921_v57, %v1920_v2  ;;  %v1809_v56 = vadd.f32 %v6051_v37, %v6059_v9  ;;  %vm1123_vm6 = vmor %vm1121_vm5, %vm1122_vm4 }
 0x44e   : > { %v1117_v1 = vmul.f32 %v4850_v40, %v1116_v58  ;;  %v1923_v0 = vmul.f32 %v6044_v33, %v6044_v33  ;;  %v853_v4 = vsub.f32 %v5884_v28, %v6224_v63  ;;  %v1336_v32 = vmul.f32 0.5, %v6294_v11  ;;  %v8906_v63 = vld [vmem:[#allocation16_spill] sm:$0xff] }
 0x44f   : > { %4851 = vrsqrt.f32 %v892_v49  ;;  %v1468_v34 = vmul.f32 %v1436_v45, %v1308_v12  ;;  %v1243_v12 = vmul.f32 %v1184_v27, %v859_v36  ;;  %v1922_v58 = vmul.f32 %v6048_v48, %v6048_v48  ;;  %v8907_v27 = vld [vmem:[#allocation15_spill] sm:$0xff]  ;;  %v8908_v36 = vld [vmem:[#allocation2_spill] sm:$0xff] }
 0x450   : > { %v1118_v20 = vmul.f32 0.5, %v1117_v1  ;;  %4853 = vtanh.f32 %v1336_v32  ;;  %vm1191_vm8 = vweird.f32 %v892_v49 }
 0x451   : > { %v6291_v50 = vpack.c.bf16 %v1468_v34, %v1467_v17  ;;  %v1276_v45 = vmul.f32 %v5455_v42, %v1243_v12  ;;  %v1998_v1 = vadd.f32 %v1923_v0, %v1922_v58  ;;  %v8904_v17 = vld [vmem:[#allocation8_spill] sm:$0xff] }
 0x452   : > { %v1119_v39 = vsub.f32 1.5, %v1118_v20  ;;  %1996 = vadd.xlane.f32.xlu2 %v1995_v59  ;;  %v6313_v34 = vadd.f32 %v8904_v17, %v5925_v51  ;;  %v1812_v20 = vadd.f32 %v8907_v27, %v8906_v63 }
 0x453   : > { %1665 = vmatmul.bf16.gmra.mxu3 %v6291_v50 }
 0x454   : > { %v1120_v15 = vmul.f32 %v4850_v40, %v1119_v39  ;;  %1810 = vadd.xlane.f32.xlu1 %v1809_v56  ;;  %8905 = vst [vmem:[#allocation8_spill] sm:$0xff] %v6313_v34  ;;  %v6321_v39 = vadd.f32 %v8908_v36, %v5931_v6  ;;  %v6323_v12 = vpop.xlane.xlu0 %1966 }
 0x455   : > { %v4852_v5 = vpop.eup %4851 }
 0x456   : > { %v1186_v62 = vmul.f32 %v4852_v5, %v892_v49  ;;  %v1124_v57 = vsel %vm1123_vm6, %v4850_v40, %v1120_v15  ;;  %v1309_v40 = vadd.f32 %v5458_v19, %v1276_v45  ;;  %8909 = vst [vmem:[#allocation2_spill] sm:$0xff] %v6321_v39  ;;  %vm1192_vm7 = vweird.f32 %v4852_v5  ;;  %v4854_v32 = vpop.eup %4853  ;;  %v8911_v49 = vld [vmem:[#allocation12_spill] sm:$0xff] }
 0x457   : > { %v1237_v18 = vmul.f32 %v1124_v57, %v853_v4  ;;  %v1929_v4 = vmul.f32 %v6313_v34, %v6313_v34  ;;  %vm1193_vm9 = vmor %vm1191_vm8, %vm1192_vm7 }
 0x458   : > { %v1187_v21 = vmul.f32 %v4852_v5, %v1186_v62  ;;  %v8910_v62 = vld [vmem:[#allocation5_spill] sm:$0xff]  ;;  %v1341_v57 = vmul.f32 0.5, %v1309_v40 }
 0x459   : > { %v1270_v2 = vmul.f32 %v5455_v42, %v1237_v18  ;;  %v860_v58 = vsub.f32 %v8910_v62, %v6268_v44  ;;  %v1815_v18 = vadd.f32 %v6313_v34, %v6321_v39 }
 0x45a   : > { %v1188_v28 = vmul.f32 0.5, %v1187_v21  ;;  %1999 = vadd.xlane.f32.xlu2 %v1998_v1  ;;  %v1928_v21 = vmul.f32 %v6321_v39, %v6321_v39 }
 0x45b   : > { %v1303_v59 = vadd.f32 %v5458_v19, %v1270_v2  ;;  %v6335_v2 = vadd.f32 %v8911_v49, %v5931_v6 }
 0x45c   : > { %v1189_v56 = vsub.f32 1.5, %v1188_v28  ;;  %1813 = vadd.xlane.f32.xlu1 %v1812_v20  ;;  %v2007_v17 = vadd.f32 %v1929_v4, %v1928_v21  ;;  %v1400_v28 = vmul.f32 0.5, %v4854_v32  ;;  %v8913_v20 = vld [vmem:[#allocation14_spill] sm:$0xff] }
 0x45d   : > { %v1335_v15 = vmul.f32 0.5, %v1303_v59  ;;  %8912 = vst [vmem:[#allocation5_spill] sm:$0xff] %v6335_v2 }
 0x45e   : > { %v1190_v0 = vmul.f32 %v4852_v5, %v1189_v56  ;;  %v1432_v62 = vadd.f32 0.5, %v1400_v28  ;;  %v8915_v28 = vld [vmem:[#allocation17_spill] sm:$0xff] }
 0x45f   : > { %4855 = vtanh.f32 %v1335_v15  ;;  %v1930_v15 = vmul.f32 %v6335_v2, %v6335_v2 }
 0x460   : > { %v1194_v45 = vsel %vm1193_vm9, %v4852_v5, %v1190_v0  ;;  %4857 = vtanh.f32 %v1341_v57  ;;  %v6340_v5 = vadd.f32 %v8913_v20, %v5925_v51  ;;  %v1464_v49 = vmul.f32 %v1432_v62, %v6294_v11 }
 0x461   : > { %v1244_v1 = vmul.f32 %v1194_v45, %v860_v58  ;;  %v6345_v58 = vpop.xlane.xlu0 %1969  ;;  %v1827_v11 = vadd.f32 %v6108_v30, %v6100_v41 }
 0x462   : > { %1816 = vadd.xlane.f32.xlu2 %v1815_v18  ;;  %8914 = vst [vmem:[#allocation12_spill] sm:$0xff] %v6340_v5  ;;  %v1818_v32 = vadd.f32 %v6340_v5, %v6335_v2  ;;  %v1931_v57 = vmul.f32 %v6340_v5, %v6340_v5  ;;  %v2060_v41 = vmul.f32 0.00390625, %v6345_v58 }
 0x463   : > { %v1277_v44 = vmul.f32 %v5455_v42, %v1244_v1 }
 0x464   : > { %2008 = vadd.xlane.f32.xlu1 %v2007_v17  ;;  %v2010_v21 = vadd.f32 %v1931_v57, %v1930_v15  ;;  %v8917_v15 = vld [vmem:[#allocation19_spill] sm:$0xff] }
 0x465   : > { %v4856_v36 = vpop.eup %4855  ;;  %v1310_v56 = vadd.f32 %v5458_v19, %v1277_v44  ;;  %v1932_v44 = vmul.f32 %v8915_v28, %v8915_v28  ;;  %v1934_v62 = vmul.f32 %v8917_v15, %v8917_v15  ;;  %v4691_v15 = vld [vmem:[%s8793_s4 + $0x50] sm:$0xff] }
 0x466   : > { %v1399_v0 = vmul.f32 0.5, %v4856_v36  ;;  %v4858_v18 = vpop.eup %4857  ;;  %v8916_v36 = vld [vmem:[#allocation18_spill] sm:$0xff] }
 0x467   : > { %v1342_v4 = vmul.f32 0.5, %v1310_v56  ;;  %v1405_v20 = vmul.f32 0.5, %v4858_v18  ;;  %v1933_v2 = vmul.f32 %v8916_v36, %v8916_v36  ;;  %v8918_v18 = vld [vmem:[#allocation20_spill] sm:$0xff] }
 0x468   : > { %v1431_v45 = vadd.f32 0.5, %v1399_v0 }
 0x469   : > { %4859 = vtanh.f32 %v1342_v4  ;;  %v2013_v0 = vadd.f32 %v1933_v2, %v1932_v44  ;;  %v1437_v4 = vadd.f32 0.5, %v1405_v20  ;;  %v4688_v2 = vld [vmem:[%s8793_s4 + $0x38] sm:$0xff] }
 0x46a   : > { %1819 = vadd.xlane.f32.xlu2 %v1818_v32  ;;  %v1463_v1 = vmul.f32 %v1431_v45, %v1303_v59  ;;  %v6356_v32 = vpop.xlane.xlu0 %1786  ;;  %3255 = vmatpush.bf16.msrb.mxu2 %v4688_v2  ;;  %v6395_v2 = vmul.f32 0.0078125, %v6274_v22 }
 0x46b   : > { %v1469_v57 = vmul.f32 %v1437_v4, %v1309_v40  ;;  %v1742_v40 = vpop.f32.mrf.mxu1 }
 0x46c   : > { %2011 = vadd.xlane.f32.xlu1 %v2010_v21  ;;  %v1484_v17 = vpack.c.bf16 %v1464_v49, %v1463_v1  ;;  %v1935_v21 = vmul.f32 %v8918_v18, %v8918_v18  ;;  %v6381_v20 = vadd.f32 %v1742_v40, %v5925_v51  ;;  %v798_v22 = vmul.f32 %v6395_v2, %v6395_v2 }
 0x46e   : > { %1655 = vmatmul.bf16.gmra.mxu2 %v1484_v17  ;;  %1744 = vmatmul.bf16.gmra.mxu1 %v1484_v17  ;;  %v2016_v49 = vadd.f32 %v1935_v21, %v1934_v62  ;;  %v1830_v17 = vadd.f32 %v6246_v61, %v6256_v14  ;;  %8920 = vst [vmem:[#allocation32_spill] sm:$0xff] %v6381_v20 }
 0x46f   : > { %v4860_v5 = vpop.eup %4859 }
 0x470   : > { %v1406_v27 = vmul.f32 0.5, %v4860_v5  ;;  %v4696_v5 = vld [vmem:[%s8793_s4 + $0x78] sm:$0xff] }
 0x471   : > { %3344 = vmatpush.bf16.msrb.mxu3 %v4696_v5 }
 0x472   : > { %2014 = vadd.xlane.f32.xlu2 %v2013_v0  ;;  %v1438_v59 = vadd.f32 0.5, %v1406_v27  ;;  %v1653_v27 = vpop.f32.mrf.mxu2  ;;  %v6378_v44 = vpop.xlane.xlu0 %1789 }
 0x474   : > { %1828 = vadd.xlane.f32.xlu1 %v1827_v11  ;;  %v1470_v45 = vmul.f32 %v1438_v59, %v1310_v56  ;;  %v6374_v56 = vadd.f32 %v1653_v27, %v5931_v6  ;;  %v4687_v27 = vld [vmem:[%s8793_s4 + $0x30] sm:$0xff] }
 0x475   : > { %3256 = vmatpush.bf16.msrb.mxu2 %v4687_v27 }
 0x476   : > { %v6364_v1 = vpack.c.bf16 %v1470_v45, %v1469_v57  ;;  %8919 = vst [vmem:[#allocation14_spill] sm:$0xff] %v6374_v56  ;;  %v1940_v11 = vmul.f32 %v6374_v56, %v6374_v56  ;;  %v1833_v57 = vadd.f32 %v6381_v20, %v6374_v56  ;;  %v1941_v45 = vmul.f32 %v6381_v20, %v6381_v20 }
 0x478   : > { %1670 = vmatmul.bf16.gmra.mxu3 %v6364_v1  ;;  %v2025_v5 = vadd.f32 %v1941_v45, %v1940_v11  ;;  %v4686_v45 = vld [vmem:[%s8793_s4 + $0x28] sm:$0xff] }
 0x479   : > { %3257 = vmatpush.bf16.msrb.mxu2 %v4686_v45 }
 0x47a   : > { %2017 = vadd.xlane.f32.xlu2 %v2016_v49  ;;  %v4695_v49 = vld [vmem:[%s8793_s4 + $0x70] sm:$0xff]  ;;  %v6403_v40 = vpop.xlane.xlu0 %1984 }
 0x47b   : > { %3345 = vmatpush.bf16.msrb.mxu3 %v4695_v49  ;;  %v4694_v49 = vld [vmem:[%s8793_s4 + $0x68] sm:$0xff] }
 0x47c   : > { %1831 = vadd.xlane.f32.xlu1 %v1830_v17 }
 0x47d   : > { %v604_v0 = vpop.xlane.xlu2 %603 }
 0x47e   : > { %v6383_v4 = vmul.f32 0.0078125, %v604_v0  ;;  %1749 = vmatmul.bf16.gmra.mxu1 %v6177_v3 }
 0x47f   : > { %v732_v59 = vpop.xlane.xlu1 %731  ;;  %3346 = vmatpush.bf16.msrb.mxu3 %v4694_v49 }
 0x480   : > { %v797_v62 = vmul.f32 %v6383_v4, %v6383_v4  ;;  %v765_v21 = vmul.f32 0.0078125, %v732_v59 }
 0x482   : > { %1834 = vadd.xlane.f32.xlu2 %v1833_v57  ;;  %v829_v3 = vsub.f32 %v765_v21, %v797_v62  ;;  %v6416_v21 = vmul.f32 0.00390625, %v6298_v25  ;;  %v4685_v25 = vld [vmem:[%s8793_s4 + $0x20] sm:$0xff] }
 0x483   : > { %3258 = vmatpush.bf16.msrb.mxu2 %v4685_v25 }
 0x484   : > { %2026 = vadd.xlane.f32.xlu1 %v2025_v5  ;;  %v6405_v17 = vadd.f32 1e-05, %v829_v3  ;;  %v2059_v5 = vmul.f32 0.00390625, %v6323_v12  ;;  %v2090_v45 = vmul.f32 %v6416_v21, %v6416_v21 }
 0x485   : > { %v734_v0 = vpop.xlane.xlu2 %733 }
 0x486   : > { %v766_v59 = vmul.f32 0.0078125, %v734_v0  ;;  %4861 = vrsqrt.f32 %v6405_v17  ;;  %vm1201_vm11 = vweird.f32 %v6405_v17 }
 0x487   : > { %v1775_v11 = vpop.xlane.xlu1 %1774 }
 0x488   : > { %v830_v62 = vsub.f32 %v766_v59, %v798_v22  ;;  %v6410_v57 = vmul.f32 0.00390625, %v1775_v11  ;;  %v4693_v59 = vld [vmem:[%s8793_s4 + $0x60] sm:$0xff] }
 0x489   : > { %3347 = vmatpush.bf16.msrb.mxu3 %v4693_v59 }
 0x48a   : > { %v6419_v3 = vadd.f32 1e-05, %v830_v62  ;;  %v2091_v27 = vmul.f32 %v6410_v57, %v6410_v57 }
 0x48c   : > { %4863 = vrsqrt.f32 %v6419_v3  ;;  %v2123_v0 = vsub.f32 %v2059_v5, %v2091_v27  ;;  %v6430_v22 = vpop.eup %4861  ;;  %v6442_v27 = vpop.xlane.xlu0 %1987  ;;  %vm1211_vm14 = vweird.f32 %v6419_v3 }
 0x48d   : > { %v1964_v12 = vpop.xlane.xlu2 %1963  ;;  %v1196_v11 = vmul.f32 %v6430_v22, %v6405_v17  ;;  %vm1202_vm10 = vweird.f32 %v6430_v22  ;;  %v8923_v17 = vld [vmem:[#allocation22_spill] sm:$0xff] }
 0x48e   : > { %v6437_v62 = vadd.f32 1e-05, %v2123_v0  ;;  %v2058_v5 = vmul.f32 0.00390625, %v1964_v12  ;;  %1754 = vmatmul.bf16.gmra.mxu1 %v6291_v50  ;;  %v4684_v0 = vld [vmem:[%s8793_s4 + $0x18] sm:$0xff]  ;;  %vm6475_vm13 = vmor %vm1201_vm11, %vm1202_vm10 }
 0x48f   : > { %v1778_v61 = vpop.xlane.xlu1 %1777  ;;  %v1197_v49 = vmul.f32 %v6430_v22, %v1196_v11  ;;  %3259 = vmatpush.bf16.msrb.mxu2 %v4684_v0  ;;  %v4683_v11 = vld [vmem:[%s8793_s4 + $0x10] sm:$0xff] }
 0x490   : > { %4865 = vrsqrt.f32 %v6437_v62  ;;  %v2122_v20 = vsub.f32 %v2058_v5, %v2090_v45  ;;  %v6451_v12 = vmul.f32 0.00390625, %v1778_v61  ;;  %vm2266_vm1 = vweird.f32 %v6437_v62 }
 0x491   : > { %v1198_v56 = vmul.f32 0.5, %v1197_v49 }
 0x492   : > { %v4864_v14 = vpop.eup %4863  ;;  %v6449_v30 = vadd.f32 1e-05, %v2122_v20  ;;  %v2092_v61 = vmul.f32 %v6451_v12, %v6451_v12  ;;  %v2159_v38 = vsub.f32 %v8924_v16, %v6451_v12  ;;  %v8925_v16 = vld [vmem:[#allocation24_spill] sm:$0xff] }
 0x493   : > { %v1206_v50 = vmul.f32 %v4864_v14, %v6419_v3  ;;  %v1199_v25 = vsub.f32 1.5, %v1198_v56  ;;  %v4692_v56 = vld [vmem:[%s8793_s4 + $0x58] sm:$0xff]  ;;  %3260 = vmatpush.bf16.msrb.mxu2 %v4683_v11  ;;  %vm1212_vm12 = vweird.f32 %v4864_v14 }
 0x494   : > { %4867 = vrsqrt.f32 %v6449_v30  ;;  %3348 = vmatpush.bf16.msrb.mxu3 %v4692_v56  ;;  %v861_v56 = vsub.f32 %v8923_v17, %v6383_v4  ;;  %v2124_v34 = vsub.f32 %v2060_v41, %v2092_v61  ;;  %vm1213_vm15 = vmor %vm1211_vm14, %vm1212_vm12  ;;  %v6494_v41 = vld [vmem:[%s8792_s3] sm:$0x77]  ;;  %vm2256_vm4 = vweird.f32 %v6449_v30 }
 0x495   : > { %v1207_v45 = vmul.f32 %v4864_v14, %v1206_v50  ;;  %v1781_v5 = vpop.xlane.xlu2 %1780  ;;  %v1200_v59 = vmul.f32 %v6430_v22, %v1199_v25  ;;  %v4682_v25 = vld [vmem:[%s8793_s4 + $0x8] sm:$0xff]  ;;  %v2634_v4 = vperm.slane %v6494_v41, 1 }
 0x496   : > { %v4866_v18 = vpop.eup %4865  ;;  %v6462_v20 = vmul.f32 0.00390625, %v1781_v5  ;;  %v6473_v5 = vpop.xlane.xlu0 %1804 }
 0x497   : > { %v1208_v49 = vmul.f32 0.5, %v1207_v45  ;;  %v2261_v0 = vmul.f32 %v4866_v18, %v6437_v62  ;;  %v1973_v50 = vpop.xlane.xlu1 %1972  ;;  %3261 = vmatpush.bf16.msrb.mxu2 %v4682_v25  ;;  %v1204_v39 = vsel %vm6475_vm13, %v6430_v22, %v1200_v59  ;;  %vm2267_vm0 = vweird.f32 %v4866_v18 }
 0x498   : > { %v2061_v36 = vmul.f32 0.00390625, %v1973_v50  ;;  %v2093_v58 = vmul.f32 %v6462_v20, %v6462_v20  ;;  %v1245_v3 = vmul.f32 %v1204_v39, %v861_v56  ;;  %3349 = vmatpush.bf16.msrb.mxu3 %v4691_v15  ;;  %v6505_v17 = vperm.slane %v2634_v4, 1  ;;  %vm2268_vm2 = vmor %vm2266_vm1, %vm2267_vm0 }
 0x499   : > { %v1209_v11 = vsub.f32 1.5, %v1208_v49  ;;  %v2262_v45 = vmul.f32 %v4866_v18, %v2261_v0  ;;  %v862_v0 = vsub.f32 %v5928_v53, %v6395_v2  ;;  %v6500_v53 = vadd.f32 1e-05, %v2124_v34 }
 0x49a   : > { %v4868_v28 = vpop.eup %4867  ;;  %v2125_v61 = vsub.f32 %v2061_v36, %v2093_v58 }
 0x49b   : > { %v1210_v51 = vmul.f32 %v4864_v14, %v1209_v11  ;;  %v2263_v63 = vmul.f32 0.5, %v2262_v45  ;;  %v2251_v49 = vmul.f32 %v4868_v28, %v6449_v30  ;;  %v1278_v45 = vmul.f32 %v5455_v42, %v1245_v3  ;;  %v4681_v30 = vld [vmem:[%s8793_s4] sm:$0xff] }
 0x49c   : > { %vm2257_vm3 = vweird.f32 %v4868_v28  ;;  %v6511_v39 = vadd.f32 1e-05, %v2125_v61  ;;  %4869 = vrsqrt.f32 %v6500_v53  ;;  %3262 = vmatpush.bf16.msrb.mxu2 %v4681_v30  ;;  %vm2276_vm7 = vweird.f32 %v6500_v53 }
 0x49d   : > { %v2264_v22 = vsub.f32 1.5, %v2263_v63  ;;  %v2252_v59 = vmul.f32 %v4868_v28, %v2251_v49  ;;  %v1214_v50 = vsel %vm1213_vm15, %v4864_v14, %v1210_v51  ;;  %v2156_v63 = vsub.f32 %v5952_v55, %v6410_v57  ;;  %v1784_v36 = vpop.xlane.xlu2 %1783  ;;  %vm2258_vm5 = vmor %vm2256_vm4, %vm2257_vm3 }
 0x49e   : > { %1759 = vmatmul.bf16.gmra.mxu1 %v6364_v1  ;;  %v1246_v2 = vmul.f32 %v1214_v50, %v862_v0  ;;  %v2704_v51 = vperm.slane %v6494_v41, 2  ;;  %v6515_v56 = vpop.xlane.xlu0 %1807  ;;  %v6519_v55 = vadd.f32 %v5458_v19, %v1278_v45  ;;  %4871 = vrsqrt.f32 %v6511_v39 }
 0x49f   : > { %v2265_v25 = vmul.f32 %v4866_v18, %v2264_v22  ;;  %v2253_v11 = vmul.f32 0.5, %v2252_v59  ;;  %v1976_v1 = vpop.xlane.xlu1 %1975  ;;  %v6536_v59 = vmul.f32 0.00390625, %v1784_v36  ;;  %vm2286_vm10 = vweird.f32 %v6511_v39 }
 0x4a0   : > { %v1279_v58 = vmul.f32 %v5455_v42, %v1246_v2  ;;  %v6523_v0 = vperm.slane %v2704_v51, 2  ;;  %v1343_v22 = vmul.f32 0.5, %v6519_v55  ;;  %v2635_v2 = vperm.slane %v6494_v41, 5 }
 0x4a1   : > { %v2269_v14 = vsel %vm2268_vm2, %v4866_v18, %v2265_v25  ;;  %v2254_v34 = vsub.f32 1.5, %v2253_v11  ;;  %v2154_v18 = vsub.f32 %v5937_v60, %v6416_v21  ;;  %v2155_v11 = vsub.f32 %v5941_v24, %v6416_v21 }
 0x4a2   : > { %v2572_v62 = vmul.f32 %v2269_v14, %v2156_v63  ;;  %v6528_v42 = vadd.f32 %v5458_v19, %v1279_v58  ;;  %v6534_v60 = vpop.eup %4869  ;;  %4873 = vtanh.f32 %v1343_v22  ;;  %v4690_v19 = vld [vmem:[%s8793_s4 + $0x48] sm:$0xff]  ;;  %v2062_v36 = vmul.f32 0.00390625, %v1976_v1 }
 0x4a3   : > { %v2255_v49 = vmul.f32 %v4868_v28, %v2254_v34  ;;  %v2271_v45 = vmul.f32 %v6534_v60, %v6500_v53  ;;  %3350 = vmatpush.bf16.msrb.mxu3 %v4690_v19  ;;  %v6554_v34 = vmul.f32 0.00390625, %v6356_v32  ;;  %v2157_v24 = vsub.f32 %v5956_v52, %v6410_v57 }
 0x4a4   : > { %v2642_v4 = vmul.f32 %v6505_v17, %v2572_v62  ;;  %v1344_v61 = vmul.f32 0.5, %v6528_v42  ;;  %v6547_v25 = vpop.eup %4871  ;;  %v2094_v62 = vmul.f32 %v6536_v59, %v6536_v59  ;;  %v6569_v1 = vperm.slane %v2635_v2, 1 }
 0x4a5   : > { %v2259_v15 = vsel %vm2258_vm5, %v4868_v28, %v2255_v49  ;;  %v1979_v63 = vpop.xlane.xlu2 %1978  ;;  %v2573_v22 = vmul.f32 %v2269_v14, %v2157_v24  ;;  %v2272_v19 = vmul.f32 %v6534_v60, %v2271_v45  ;;  %v2705_v57 = vperm.slane %v6494_v41, 6 }
 0x4a6   : > { %v2570_v3 = vmul.f32 %v2259_v15, %v2154_v18  ;;  %v6544_v50 = vadd.f32 %v6523_v0, %v2642_v4  ;;  %v6561_v49 = vpop.xlane.xlu0 %2002  ;;  %v2571_v21 = vmul.f32 %v2259_v15, %v2155_v11  ;;  %4875 = vtanh.f32 %v1344_v61  ;;  %v4689_v18 = vld [vmem:[%s8793_s4 + $0x40] sm:$0xff] }
 0x4a7   : > { %v1793_v51 = vpop.xlane.xlu1 %1792  ;;  %v2281_v4 = vmul.f32 %v6547_v25, %v6511_v39  ;;  %v2063_v30 = vmul.f32 0.00390625, %v1979_v63  ;;  %3351 = vmatpush.bf16.msrb.mxu3 %v4689_v18  ;;  %v2126_v15 = vsub.f32 %v2062_v36, %v2094_v62  ;;  %v2095_v61 = vmul.f32 %v6554_v34, %v6554_v34 }
 0x4a8   : > { %v2640_v28 = vmul.f32 %v6505_v17, %v2570_v3  ;;  %v2776_v32 = vmul.f32 0.5, %v6544_v50  ;;  %v4874_v3 = vpop.eup %4873  ;;  %v2643_v14 = vmul.f32 %v6569_v1, %v2573_v22  ;;  %v2273_v45 = vmul.f32 0.5, %v2272_v19 }
 0x4a9   : > { %v2282_v2 = vmul.f32 %v6547_v25, %v2281_v4  ;;  %v2127_v11 = vsub.f32 %v2063_v30, %v2095_v61  ;;  %v1407_v63 = vmul.f32 0.5, %v4874_v3  ;;  %v6581_v24 = vperm.slane %v2705_v57, 2 }
 0x4aa   : > { %v6559_v58 = vadd.f32 %v6523_v0, %v2640_v28  ;;  %4877 = vtanh.f32 %v2776_v32  ;;  %v2641_v28 = vmul.f32 %v6569_v1, %v2571_v21  ;;  %v6583_v18 = vadd.f32 1e-05, %v2126_v15 }
 0x4ab   : > { %v2283_v32 = vmul.f32 0.5, %v2282_v2  ;;  %v6590_v4 = vadd.f32 1e-05, %v2127_v11  ;;  %v1439_v3 = vadd.f32 0.5, %v1407_v63  ;;  %v2274_v22 = vsub.f32 1.5, %v2273_v45 }
 0x4ac   : > { %v2774_v52 = vmul.f32 0.5, %v6559_v58  ;;  %v4876_v37 = vpop.eup %4875  ;;  %v6588_v62 = vadd.f32 %v6581_v24, %v2641_v28  ;;  %v6595_v19 = vadd.f32 %v6581_v24, %v2643_v14  ;;  %vm2277_vm6 = vweird.f32 %v6534_v60 }
 0x4ad   : > { %v1408_v36 = vmul.f32 0.5, %v4876_v37  ;;  %v1982_v30 = vpop.xlane.xlu2 %1981  ;;  %v6598_v37 = vmul.f32 0.00390625, %v1793_v51  ;;  %v2284_v2 = vsub.f32 1.5, %v2283_v32  ;;  %v1471_v11 = vmul.f32 %v1439_v3, %v6519_v55  ;;  %vm2278_vm8 = vmor %vm2276_vm7, %vm2277_vm6 }
 0x4ae   : > { %4879 = vtanh.f32 %v2774_v52  ;;  %v6592_v61 = vpop.xlane.xlu0 %2005  ;;  %v2775_v28 = vmul.f32 0.5, %v6588_v62  ;;  %v2275_v45 = vmul.f32 %v6534_v60, %v2274_v22  ;;  %v2777_v14 = vmul.f32 0.5, %v6595_v19 }
 0x4af   : > { %v6585_v41 = vpop.xlane.xlu1 %1795  ;;  %4881 = vrsqrt.f32 %v6583_v18  ;;  %v1440_v52 = vadd.f32 0.5, %v1408_v36  ;;  %v2097_v51 = vmul.f32 %v6598_v37, %v6598_v37  ;;  %v2285_v55 = vmul.f32 %v6547_v25, %v2284_v2 }
 0x4b0   : > { %v4878_v21 = vpop.eup %4877  ;;  %4883 = vrsqrt.f32 %v6590_v4  ;;  %vm2287_vm9 = vweird.f32 %v6547_v25  ;;  %v2065_v3 = vmul.f32 0.00390625, %v6403_v40  ;;  %v2279_v22 = vsel %vm2278_vm8, %v6534_v60, %v2275_v45 }
 0x4b1   : > { %v2904_v15 = vmul.f32 0.5, %v4878_v21  ;;  %v1472_v63 = vmul.f32 %v1440_v52, %v6528_v42  ;;  %4885 = vtanh.f32 %v2775_v28  ;;  %vm2288_vm11 = vmor %vm2286_vm10, %vm2287_vm9  ;;  %vm2296_vm14 = vweird.f32 %v6583_v18 }
 0x4b2   : > { %4887 = vtanh.f32 %v2777_v14  ;;  %v2129_v60 = vsub.f32 %v2065_v3, %v2097_v51  ;;  %v2064_v14 = vmul.f32 0.00390625, %v1982_v30  ;;  %vm2306_vm0 = vweird.f32 %v6590_v4 }
 0x4b3   : > { %v1488_v36 = vpack.c.bf16 %v1472_v63, %v1471_v11  ;;  %v2968_v21 = vadd.f32 0.5, %v2904_v15  ;;  %v2158_v15 = vsub.f32 %v5969_v47, %v6451_v12  ;;  %v2289_v63 = vsel %vm2288_vm11, %v6547_v25, %v2285_v55 }
 0x4b4   : > { %v4880_v57 = vpop.eup %4879  ;;  %v2160_v47 = vsub.f32 %v6137_v13, %v6462_v20  ;;  %v2575_v13 = vmul.f32 %v2279_v22, %v2159_v38  ;;  %v2161_v12 = vsub.f32 %v8925_v16, %v6462_v20 }
 0x4b5   : > { %v2902_v9 = vmul.f32 0.5, %v4880_v57  ;;  %v6610_v32 = vpop.eup %4881  ;;  %1675 = vmatmul.bf16.gmra.mxu3 %v1488_v36  ;;  %1764 = vmatmul.bf16.gmra.mxu1 %v1488_v36  ;;  %v6621_v57 = vmul.f32 0.00390625, %v6378_v44  ;;  %v6626_v28 = vpop.xlane.xlu2 %1798  ;;  %v3032_v11 = vmul.f32 %v2968_v21, %v6544_v50  ;;  %v2574_v44 = vmul.f32 %v2279_v22, %v2158_v15 }
 0x4b6   : > { %v6618_v52 = vpop.eup %4883  ;;  %v2291_v40 = vmul.f32 %v6610_v32, %v6583_v18  ;;  %v6642_v50 = vadd.f32 1e-05, %v2129_v60  ;;  %v2576_v21 = vmul.f32 %v2289_v63, %v2160_v47  ;;  %v2577_v20 = vmul.f32 %v2289_v63, %v2161_v12 }
 0x4b7   : > { %v2966_v42 = vadd.f32 0.5, %v2902_v9  ;;  %v6616_v53 = vpop.xlane.xlu1 %1990  ;;  %v6628_v9 = vpop.xlane.xlu0 %1822  ;;  %v2301_v39 = vmul.f32 %v6618_v52, %v6590_v4  ;;  %v2096_v25 = vmul.f32 %v6621_v57, %v6621_v57  ;;  %v2644_v30 = vmul.f32 %v6505_v17, %v2574_v44 }
 0x4b8   : > { %v4886_v45 = vpop.eup %4885  ;;  %4889 = vrsqrt.f32 %v6642_v50  ;;  %v2646_v22 = vmul.f32 %v6505_v17, %v2576_v21  ;;  %v6677_v63 = vmul.f32 0.00390625, %v6515_v56  ;;  %vm2297_vm12 = vweird.f32 %v6610_v32 }
 0x4b9   : > { %v3030_v2 = vmul.f32 %v2966_v42, %v6559_v58  ;;  %v2903_v51 = vmul.f32 0.5, %v4886_v45  ;;  %v4888_v3 = vpop.eup %4887  ;;  %v2292_v58 = vmul.f32 %v6610_v32, %v2291_v40  ;;  %v2302_v15 = vmul.f32 %v6618_v52, %v2301_v39  ;;  %vm2298_vm15 = vmor %vm2296_vm14, %vm2297_vm12 }
 0x4ba   : > { %v2905_v55 = vmul.f32 0.5, %v4888_v3  ;;  %v6653_v45 = vmul.f32 0.00390625, %v6585_v41  ;;  %v6662_v39 = vadd.f32 %v6523_v0, %v2644_v30  ;;  %v6668_v41 = vmul.f32 0.00390625, %v6473_v5  ;;  %8927 = vst [vmem:[#allocation4_spill] sm:$0xff] %v6677_v63 }
 0x4bb   : > { %v3094_v36 = vpack.c.bf16 %v3032_v11, %v3030_v2  ;;  %v2967_v42 = vadd.f32 0.5, %v2903_v51  ;;  %v2128_v2 = vsub.f32 %v2064_v14, %v2096_v25  ;;  %v2293_v60 = vmul.f32 0.5, %v2292_v58 }
 0x4bc   : > { %v2969_v11 = vadd.f32 0.5, %v2905_v55  ;;  %v2164_v14 = vsub.f32 %v5987_v29, %v6554_v34  ;;  %8926 = vst [vmem:[#allocation22_spill] sm:$0xff] %v6668_v41  ;;  %v2303_v51 = vmul.f32 0.5, %v2302_v15  ;;  %v2066_v5 = vmul.f32 0.00390625, %v6442_v27 }
 0x4bd   : > { %3263 = vmatmul.bf16.vlgmr.msrb.gmra.mxu2 %v3094_v36  ;;  %v3031_v40 = vmul.f32 %v2967_v42, %v6588_v62  ;;  %v6658_v44 = vpop.xlane.xlu2 %1801  ;;  %v2645_v62 = vmul.f32 %v6569_v1, %v2575_v13  ;;  %v6670_v3 = vadd.f32 1e-05, %v2128_v2  ;;  %v2098_v13 = vmul.f32 %v6653_v45, %v6653_v45 }
 0x4be   : > { %v3033_v47 = vmul.f32 %v2969_v11, %v6595_v19  ;;  %v6685_v55 = vadd.f32 %v6523_v0, %v2646_v22  ;;  %v2294_v42 = vsub.f32 1.5, %v2293_v60  ;;  %v2778_v30 = vmul.f32 0.5, %v6662_v39  ;;  %v6692_v2 = vpop.eup %4889 }
 0x4bf   : > { %v6655_v38 = vpop.xlane.xlu1 %1993  ;;  %v1826_v36 = vpop.xlane.xlu0 %1825  ;;  %v2647_v15 = vmul.f32 %v6569_v1, %v2577_v20  ;;  %v6690_v56 = vadd.f32 %v6581_v24, %v2645_v62  ;;  %v2304_v16 = vsub.f32 1.5, %v2303_v51  ;;  %4891 = vrsqrt.f32 %v6670_v3 }
 0x4c0   : > { %v3095_v25 = vpack.c.bf16 %v3033_v47, %v3031_v40  ;;  %v2780_v12 = vmul.f32 0.5, %v6685_v55  ;;  %v6704_v60 = vmul.f32 %v6668_v41, %v6668_v41  ;;  %4893 = vtanh.f32 %v2778_v30 }
 0x4c1   : > { %v2130_v47 = vsub.f32 %v2066_v5, %v2098_v13  ;;  %v6710_v20 = vadd.f32 %v6581_v24, %v2647_v15  ;;  %v2295_v62 = vmul.f32 %v6610_v32, %v2294_v42  ;;  %v6714_v51 = vmul.f32 0.00390625, %v6626_v28 }
 0x4c2   : > { %4895 = vtanh.f32 %v2780_v12  ;;  %v2305_v40 = vmul.f32 %v6618_v52, %v2304_v16  ;;  %vm2307_vm13 = vweird.f32 %v6618_v52  ;;  %v2321_v30 = vmul.f32 %v6692_v2, %v6642_v50 }
 0x4c3   : > { %v6723_v5 = vmul.f32 %v6677_v63, %v6677_v63  ;;  %v6726_v13 = vmul.f32 0.00390625, %v6561_v49  ;;  %v6729_v28 = vmul.f32 0.00390625, %v6628_v9  ;;  %v6731_v42 = vmul.f32 0.00390625, %v1826_v36  ;;  %vm2308_vm1 = vmor %vm2306_vm0, %vm2307_vm13 }
 0x4c4   : > { %v2162_v11 = vsub.f32 %v6160_v8, %v6536_v59  ;;  %v2781_v49 = vmul.f32 0.5, %v6710_v20  ;;  %v6744_v18 = vadd.f32 1e-05, %v2130_v47  ;;  %v2067_v36 = vmul.f32 0.00390625, %v6616_v53 }
 0x4c5   : > { %3352 = vmatmul.bf16.vlgmr.msrb.gmra.mxu3 %v3095_v25  ;;  %v2779_v25 = vmul.f32 0.5, %v6690_v56  ;;  %8928 = vst [vmem:[#allocation24_spill] sm:$0xff] %v6729_v28  ;;  %v1997_v15 = vpop.xlane.xlu2 %1996  ;;  %v6734_v16 = vpop.eup %4891  ;;  %v2099_v27 = vmul.f32 %v6714_v51, %v6714_v51  ;;  %v6750_v8 = vsel %vm2298_vm15, %v6610_v32, %v2295_v62  ;;  %v2322_v21 = vmul.f32 %v6692_v2, %v2321_v30 }
 0x4c6   : > { %8929 = vst [vmem:[#allocation33_spill] sm:$0xff] %v6731_v42  ;;  %v4894_v9 = vpop.eup %4893  ;;  %v6757_v58 = vmul.f32 0.00390625, %v6592_v61  ;;  %v2311_v53 = vmul.f32 %v6734_v16, %v6670_v3  ;;  %v6765_v32 = vmul.f32 %v6729_v28, %v6729_v28  ;;  %vm2326_vm2 = vweird.f32 %v6642_v50 }
 0x4c7   : > { %v1811_v22 = vpop.xlane.xlu1 %1810  ;;  %v2021_v12 = vpop.xlane.xlu0 %2020  ;;  %4897 = vtanh.f32 %v2779_v25  ;;  %v2906_v4 = vmul.f32 0.5, %v4894_v9  ;;  %v6754_v25 = vsel %vm2308_vm1, %v6618_v52, %v2305_v40  ;;  %v2578_v52 = vmul.f32 %v6750_v8, %v2162_v11 }
 0x4c8   : > { %4899 = vtanh.f32 %v2781_v49  ;;  %v4896_v19 = vpop.eup %4895  ;;  %v6759_v47 = vmul.f32 0.00390625, %v2021_v12  ;;  %v6767_v62 = vmul.f32 0.00390625, %v1811_v22  ;;  %v2131_v40 = vsub.f32 %v2067_v36, %v2099_v27  ;;  %v8930_v22 = vld [vmem:[#allocation25_spill] sm:$0xff] }
 0x4c9   : > { %v2908_v30 = vmul.f32 0.5, %v4896_v19  ;;  %v2970_v49 = vadd.f32 0.5, %v2906_v4  ;;  %4901 = vrsqrt.f32 %v6744_v18  ;;  %v2580_v61 = vmul.f32 %v6754_v25, %v2164_v14 }
 0x4ca   : > { %v6777_v12 = vmul.f32 %v6731_v42, %v6731_v42  ;;  %v2163_v28 = vsub.f32 %v8930_v22, %v6536_v59  ;;  %v2323_v11 = vmul.f32 0.5, %v2322_v21  ;;  %v2312_v29 = vmul.f32 %v6734_v16, %v2311_v53 }
 0x4cb   : > { %v2972_v4 = vadd.f32 0.5, %v2908_v30  ;;  %v6787_v14 = vmul.f32 0.00390625, %v6658_v44  ;;  %v2103_v33 = vmul.f32 %v6767_v62, %v6767_v62  ;;  %v3034_v59 = vmul.f32 %v2970_v49, %v6662_v39 }
 0x4cc   : > { %v2648_v21 = vmul.f32 %v6505_v17, %v2578_v52  ;;  %v6794_v30 = vadd.f32 1e-05, %v2131_v40  ;;  %v2650_v44 = vmul.f32 %v6505_v17, %v2580_v61  ;;  %v2324_v48 = vsub.f32 1.5, %v2323_v11 }
 0x4cd   : > { %v4898_v9 = vpop.eup %4897  ;;  %8931 = vst [vmem:[#allocation25_spill] sm:$0xff] %v6787_v14  ;;  %v3036_v22 = vmul.f32 %v2972_v4, %v6685_v55  ;;  %v2000_v27 = vpop.xlane.xlu2 %1999  ;;  %v2068_v49 = vmul.f32 0.00390625, %v6655_v38  ;;  %v2100_v52 = vmul.f32 %v6787_v14, %v6787_v14  ;;  %v2313_v4 = vmul.f32 0.5, %v2312_v29  ;;  %v8952_v14 = vld [vmem:[#allocation3_spill] sm:$0xff] }
 0x4ce   : > { %v2907_v36 = vmul.f32 0.5, %v4898_v9  ;;  %v4900_v42 = vpop.eup %4899  ;;  %v6799_v7 = vadd.f32 %v6523_v0, %v2648_v21  ;;  %v1661_v55 = vpop.f32.mrf.mxu3  ;;  %v2069_v61 = vmul.f32 0.00390625, %v1997_v15  ;;  %v2135_v11 = vsub.f32 %v6726_v13, %v2103_v33 }
 0x4cf   : > { %v1814_v19 = vpop.xlane.xlu1 %1813  ;;  %v2909_v63 = vmul.f32 0.5, %v4900_v42  ;;  %v3096_v9 = vpack.c.bf16 %v3036_v22, %v3034_v59  ;;  %v6801_v39 = vpop.eup %4901  ;;  %4903 = vrsqrt.f32 %v6794_v30  ;;  %vm2327_vm3 = vweird.f32 %v6692_v2 }
 0x4d0   : > { %v2971_v53 = vadd.f32 0.5, %v2907_v36  ;;  %v6806_v40 = vmul.f32 0.00390625, %v1814_v19  ;;  %v6810_v36 = vadd.f32 %v6523_v0, %v2650_v44  ;;  %v2782_v22 = vmul.f32 0.5, %v6799_v7  ;;  %vm2328_vm4 = vmor %vm2326_vm2, %vm2327_vm3 }
 0x4d1   : > { %v2973_v42 = vadd.f32 0.5, %v2909_v63  ;;  %3268 = vmatmul.bf16.gmra.mxu2 %v3096_v9  ;;  %v2325_v19 = vmul.f32 %v6692_v2, %v2324_v48  ;;  %v2331_v63 = vmul.f32 %v6801_v39, %v6744_v18  ;;  %v6821_v33 = vadd.f32 %v1661_v55, %v5931_v6 }
 0x4d2   : > { %v3035_v59 = vmul.f32 %v2971_v53, %v6690_v56  ;;  %v2132_v13 = vsub.f32 %v2068_v49, %v2100_v52  ;;  %v2104_v15 = vmul.f32 %v6806_v40, %v6806_v40  ;;  %v2784_v56 = vmul.f32 0.5, %v6810_v36 }
 0x4d3   : > { %v3037_v38 = vmul.f32 %v2973_v42, %v6710_v20  ;;  %8932 = vst [vmem:[#allocation34_spill] sm:$0xff] %v6821_v33  ;;  %v2133_v20 = vsub.f32 %v2069_v61, %v6704_v60  ;;  %v6827_v21 = vadd.f32 1e-05, %v2135_v11  ;;  %v2070_v48 = vmul.f32 0.00390625, %v2000_v27 }
 0x4d4   : > { %4905 = vtanh.f32 %v2782_v22  ;;  %v2314_v53 = vsub.f32 1.5, %v2313_v4  ;;  %v2579_v44 = vmul.f32 %v6750_v8, %v2163_v28  ;;  %v8933_v9 = vsub.f32 %v5991_v26, %v6554_v34 }
 0x4d5   : > { %v3097_v29 = vpack.c.bf16 %v3037_v38, %v3035_v59  ;;  %4907 = vtanh.f32 %v2784_v56  ;;  %v6837_v49 = vsel %vm2328_vm4, %v6692_v2, %v2325_v19  ;;  %vm2316_vm5 = vweird.f32 %v6670_v3  ;;  %v6843_v27 = vpop.eup %4903  ;;  %v1817_v8 = vpop.xlane.xlu2 %1816 }
 0x4d6   : > { %v2581_v55 = vmul.f32 %v6754_v25, %v8933_v9  ;;  %v2332_v50 = vmul.f32 %v6801_v39, %v2331_v63  ;;  %v6845_v52 = vadd.f32 1e-05, %v2132_v13  ;;  %v2136_v28 = vsub.f32 %v6757_v58, %v2104_v15 }
 0x4d7   : > { %3357 = vmatmul.bf16.gmra.mxu3 %v3097_v29  ;;  %v2649_v26 = vmul.f32 %v6569_v1, %v2579_v44  ;;  %v6852_v25 = vadd.f32 1e-05, %v2133_v20  ;;  %4909 = vrsqrt.f32 %v6827_v21  ;;  %v2134_v42 = vsub.f32 %v2070_v48, %v6723_v5  ;;  %v2009_v15 = vpop.xlane.xlu1 %2008 }
 0x4d8   : > { %v2651_v34 = vmul.f32 %v6569_v1, %v2581_v55  ;;  %v8934_v4 = vsub.f32 %v6005_v43, %v6598_v37  ;;  %v2315_v58 = vmul.f32 %v6734_v16, %v2314_v53  ;;  %vm2317_vm6 = vweird.f32 %v6734_v16 }
 0x4d9   : > { %v6863_v11 = vadd.f32 %v6581_v24, %v2649_v26  ;;  %v2333_v38 = vmul.f32 0.5, %v2332_v50  ;;  %v2341_v22 = vmul.f32 %v6843_v27, %v6794_v30  ;;  %v6867_v19 = vmul.f32 0.00390625, %v1817_v8  ;;  %vm2318_vm7 = vmor %vm2316_vm5, %vm2317_vm6 }
 0x4da   : > { %v2584_v61 = vmul.f32 %v6837_v49, %v8934_v4  ;;  %v4906_v59 = vpop.eup %4905  ;;  %v6870_v5 = vadd.f32 %v6581_v24, %v2651_v34  ;;  %4911 = vrsqrt.f32 %v6845_v52  ;;  %v6875_v13 = vadd.f32 1e-05, %v2136_v28 }
 0x4db   : > { %v4908_v63 = vpop.eup %4907  ;;  %v2910_v29 = vmul.f32 0.5, %v4906_v59  ;;  %v2783_v56 = vmul.f32 0.5, %v6863_v11  ;;  %4913 = vrsqrt.f32 %v6852_v25  ;;  %v6881_v20 = vadd.f32 1e-05, %v2134_v42 }
 0x4dc   : > { %v2912_v48 = vmul.f32 0.5, %v4908_v63  ;;  %v2785_v53 = vmul.f32 0.5, %v6870_v5  ;;  %v6885_v9 = vsel %vm2318_vm7, %v6734_v16, %v2315_v58  ;;  %v2654_v55 = vmul.f32 %v6505_v17, %v2584_v61 }
 0x4dd   : > { %8935 = vst [vmem:[#allocation35_spill] sm:$0xff] %v6881_v20  ;;  %v2974_v44 = vadd.f32 0.5, %v2910_v29  ;;  %4915 = vtanh.f32 %v2783_v56  ;;  %v6888_v50 = vpop.eup %4909  ;;  %v2073_v28 = vmul.f32 0.00390625, %v2009_v15  ;;  %v2105_v3 = vmul.f32 %v6867_v19, %v6867_v19  ;;  %v1663_v29 = vpop.f32.mrf.mxu3 }
 0x4de   : > { %v2976_v8 = vadd.f32 0.5, %v2912_v48  ;;  %4917 = vtanh.f32 %v2785_v53  ;;  %v2334_v26 = vsub.f32 1.5, %v2333_v38  ;;  %v6894_v34 = vmul.f32 %v6821_v33, %v6821_v33  ;;  %v8938_v38 = vld [vmem:[#allocation27_spill] sm:$0xff]  ;;  %v1820_v23 = vpop.xlane.xlu2 %1819 }
 0x4df   : > { %v2342_v42 = vmul.f32 %v6843_v27, %v2341_v22  ;;  %4919 = vrsqrt.f32 %v6875_v13  ;;  %v3038_v16 = vmul.f32 %v2974_v44, %v6799_v7  ;;  %v8937_v61 = vsub.f32 %v5998_v31, %v6621_v57  ;;  %v8939_v22 = vld [vmem:[#allocation26_spill] sm:$0xff]  ;;  %v2024_v31 = vpop.xlane.xlu0 %2023 }
 0x4e0   : > { %8936 = vst [vmem:[#allocation36_spill] sm:$0xff] %v6894_v34  ;;  %4921 = vrsqrt.f32 %v6881_v20  ;;  %v3040_v4 = vmul.f32 %v2976_v8, %v6810_v36  ;;  %v6905_v59 = vpop.eup %4911  ;;  %v2381_v56 = vmul.f32 %v6888_v50, %v6827_v21  ;;  %v6914_v7 = vadd.f32 %v6523_v0, %v2654_v55 }
 0x4e1   : > { %v2582_v58 = vmul.f32 %v6885_v9, %v8937_v61  ;;  %v6916_v36 = vpop.eup %4913  ;;  %vm2336_vm8 = vweird.f32 %v6744_v18  ;;  %v2137_v48 = vsub.f32 %v2073_v28, %v2105_v3  ;;  %v2335_v61 = vmul.f32 %v6801_v39, %v2334_v26 }
 0x4e2   : > { %v3098_v53 = vpack.c.bf16 %v3040_v4, %v3038_v16  ;;  %vm2337_vm9 = vweird.f32 %v6801_v39  ;;  %v2343_v15 = vmul.f32 0.5, %v2342_v42  ;;  %v2788_v63 = vmul.f32 0.5, %v6914_v7 }
 0x4e3   : > { %v2652_v44 = vmul.f32 %v6505_v17, %v2582_v58  ;;  %v4916_v8 = vpop.eup %4915  ;;  %v6924_v55 = vadd.f32 %v1663_v29, %v5931_v6  ;;  %v2351_v60 = vmul.f32 %v6905_v59, %v6845_v52  ;;  %v6935_v4 = vmul.f32 0.00390625, %v2024_v31  ;;  %vm2338_vm10 = vmor %vm2336_vm8, %vm2337_vm9 }
 0x4e4   : > { %v4918_v2 = vpop.eup %4917  ;;  %3273 = vmatmul.bf16.gmra.mxu2 %v3098_v53  ;;  %v2911_v28 = vmul.f32 0.5, %v4916_v8  ;;  %v2382_v42 = vmul.f32 %v6888_v50, %v2381_v56  ;;  %4923 = vtanh.f32 %v2788_v63  ;;  %v6946_v8 = vadd.f32 1e-05, %v2137_v48 }
 0x4e5   : > { %8940 = vst [vmem:[#allocation27_spill] sm:$0xff] %v6924_v55  ;;  %v6929_v3 = vadd.f32 %v6523_v0, %v2652_v44  ;;  %v6933_v26 = vpop.eup %4919  ;;  %v2913_v58 = vmul.f32 0.5, %v4918_v2  ;;  %v8943_v56 = vsub.f32 %v6009_v46, %v6598_v37  ;;  %v2339_v63 = vsel %vm2338_vm10, %v6801_v39, %v2335_v61 }
 0x4e6   : > { %8941 = vst [vmem:[#allocation26_spill] sm:$0xff] %v6935_v4  ;;  %v6938_v29 = vpop.eup %4921  ;;  %v2975_v41 = vadd.f32 0.5, %v2911_v28  ;;  %v2344_v4 = vsub.f32 1.5, %v2343_v15  ;;  %v2352_v18 = vmul.f32 %v6905_v59, %v2351_v60  ;;  %v2361_v44 = vmul.f32 %v6916_v36, %v6852_v25 }
 0x4e7   : > { %v2786_v31 = vmul.f32 0.5, %v6929_v3  ;;  %v2585_v2 = vmul.f32 %v6837_v49, %v8943_v56  ;;  %v2977_v34 = vadd.f32 0.5, %v2913_v58  ;;  %v2391_v48 = vmul.f32 %v6933_v26, %v6875_v13 }
 0x4e8   : > { %v2383_v28 = vmul.f32 0.5, %v2382_v42  ;;  %v2371_v46 = vmul.f32 %v6938_v29, %v6881_v20  ;;  %v3039_v37 = vmul.f32 %v2975_v41, %v6863_v11  ;;  %v6966_v60 = vmul.f32 0.00390625, %v1820_v23  ;;  %v8951_v23 = vld [vmem:[#allocation16_spill] sm:$0xff]  ;;  %v2015_v20 = vpop.xlane.xlu2 %2014 }
 0x4e9   : > { %4925 = vtanh.f32 %v2786_v31  ;;  %v3041_v39 = vmul.f32 %v2977_v34, %v6870_v5  ;;  %v8946_v61 = vsub.f32 %v6002_v54, %v6621_v57  ;;  %v8947_v31 = vsub.f32 %v6025_v35, %v6653_v45  ;;  %v8949_v5 = vld [vmem:[#allocation13_spill] sm:$0xff]  ;;  %v2012_v34 = vpop.xlane.xlu1 %2011 }
 0x4ea   : > { %4927 = vrsqrt.f32 %v6946_v8  ;;  %8945 = vst [vmem:[#allocation37_spill] sm:$0xff] %v6966_v60  ;;  %v4924_v42 = vpop.eup %4923  ;;  %v8948_v41 = vsub.f32 %v6021_v10, %v6653_v45  ;;  %v2353_v49 = vmul.f32 0.5, %v2352_v18  ;;  %v2362_v54 = vmul.f32 %v6916_v36, %v2361_v44  ;;  %v1666_v18 = vpop.f32.mrf.mxu3 }
 0x4eb   : > { %v6872_v43 = vpop.f32.mrf.mxu1  ;;  %v2583_v58 = vmul.f32 %v6885_v9, %v8946_v61  ;;  %v6975_v56 = vmul.f32 %v2339_v63, %v8947_v31  ;;  %v3099_v15 = vpack.c.bf16 %v3041_v39, %v3039_v37  ;;  %v2392_v57 = vmul.f32 %v6933_v26, %v2391_v48  ;;  %v8950_v31 = vld [vmem:[#allocation11_spill] sm:$0xff] }
 0x4ec   : > { %v6980_v11 = vmul.f32 %v2339_v63, %v8948_v41  ;;  %v2916_v9 = vmul.f32 0.5, %v4924_v42  ;;  %v6987_v35 = vmul.f32 %v6843_v27, %v2344_v4  ;;  %v2384_v45 = vsub.f32 1.5, %v2383_v28 }
 0x4ed   : > { %v2372_v63 = vmul.f32 %v6938_v29, %v2371_v46  ;;  %3362 = vmatmul.bf16.gmra.mxu3 %v3099_v15  ;;  %vm2347_vm11 = vweird.f32 %v6843_v27  ;;  %v2074_v37 = vmul.f32 0.00390625, %v2012_v34  ;;  %v2106_v44 = vmul.f32 %v6966_v60, %v6966_v60 }
 0x4ee   : > { %v2653_v48 = vmul.f32 %v6569_v1, %v2583_v58  ;;  %v2655_v4 = vmul.f32 %v6569_v1, %v2585_v2  ;;  %vm2386_vm12 = vweird.f32 %v6827_v21  ;;  %v2980_v42 = vadd.f32 0.5, %v2916_v9 }
 0x4ef   : > { %v4926_v41 = vpop.eup %4925  ;;  %vm2346_vm13 = vweird.f32 %v6794_v30  ;;  %v2354_v34 = vsub.f32 1.5, %v2353_v49  ;;  %v2363_v10 = vmul.f32 0.5, %v2362_v54  ;;  %v2393_v60 = vmul.f32 0.5, %v2392_v57 }
 0x4f0   : > { %v2914_v28 = vmul.f32 0.5, %v4926_v41  ;;  %v7003_v15 = vpop.eup %4927  ;;  %vm2387_vm14 = vweird.f32 %v6888_v50  ;;  %v2373_v2 = vmul.f32 0.5, %v2372_v63  ;;  %v7011_v9 = vadd.f32 %v6872_v43, %v8952_v14  ;;  %vm2348_vm2 = vmor %vm2346_vm13, %vm2347_vm11 }
 0x4f1   : > { %v1656_v61 = vpop.f32.mrf.mxu2  ;;  %v2385_v41 = vmul.f32 %v6888_v50, %v2384_v45  ;;  %v2138_v53 = vsub.f32 %v2074_v37, %v2106_v44  ;;  %v7015_v55 = vadd.f32 %v6581_v24, %v2653_v48  ;;  %v7018_v49 = vadd.f32 %v6581_v24, %v2655_v4  ;;  %vm2388_vm15 = vmor %vm2386_vm12, %vm2387_vm14  ;;  %v1829_v4 = vpop.xlane.xlu1 %1828 }
 0x4f2   : > { %v7001_v46 = vadd.f32 %v1656_v61, %v5931_v6  ;;  %v2978_v61 = vadd.f32 0.5, %v2914_v28  ;;  %v2401_v54 = vmul.f32 %v7003_v15, %v6946_v8  ;;  %v3044_v63 = vmul.f32 %v2980_v42, %v6914_v7  ;;  %v8953_v7 = vld [vmem:[#allocation2_spill] sm:$0xff] }
 0x4f3   : > { %v6931_v16 = vpop.f32.mrf.mxu1  ;;  %v2394_v28 = vsub.f32 1.5, %v2393_v60  ;;  %v2075_v58 = vmul.f32 0.00390625, %v2015_v20  ;;  %v2787_v45 = vmul.f32 0.5, %v7015_v55  ;;  %v2789_v37 = vmul.f32 0.5, %v7018_v49 }
 0x4f4   : > { %v3042_v57 = vmul.f32 %v2978_v61, %v6929_v3  ;;  %v1836_v43 = vadd.f32 %v7011_v9, %v7001_v46  ;;  %v7029_v44 = vmul.f32 %v6905_v59, %v2354_v34  ;;  %v2364_v48 = vsub.f32 1.5, %v2363_v10 }
 0x4f5   : > { %v2389_v20 = vsel %vm2388_vm15, %v6888_v50, %v2385_v41  ;;  %vm2396_vm0 = vweird.f32 %v6875_v13  ;;  %vm2397_vm1 = vweird.f32 %v6933_v26  ;;  %4929 = vtanh.f32 %v2787_v45 }
 0x4f6   : > { %v3100_v42 = vpack.c.bf16 %v3044_v63, %v3042_v57  ;;  %1837 = vadd.xlane.f32.xlu2 %v1836_v43  ;;  %v2374_v10 = vsub.f32 1.5, %v2373_v2  ;;  %v2402_v34 = vmul.f32 %v7003_v15, %v2401_v54  ;;  %v7043_v21 = vadd.f32 1e-05, %v2138_v53  ;;  %v1668_v63 = vpop.f32.mrf.mxu3  ;;  %vm2398_vm5 = vmor %vm2396_vm0, %vm2397_vm1 }
 0x4f7   : > { %4931 = vtanh.f32 %v2789_v37  ;;  %v2395_v57 = vmul.f32 %v6933_v26, %v2394_v28  ;;  %v2139_v50 = vsub.f32 %v2075_v58, %v6765_v32  ;;  %v7047_v41 = vmul.f32 0.00390625, %v1829_v4 }
 0x4f8   : > { %3278 = vmatmul.bf16.gmra.mxu2 %v3100_v42  ;;  %v1942_v43 = vmul.f32 %v7001_v46, %v7001_v46  ;;  %v7056_v53 = vmul.f32 %v6916_v36, %v2364_v48  ;;  %v8954_v2 = vsub.f32 %v8949_v5, %v6767_v62  ;;  %v7064_v32 = vadd.f32 %v1666_v18, %v5931_v6  ;;  %v2018_v42 = vpop.xlane.xlu2 %2017 }
 0x4f9   : > { %v1658_v61 = vpop.f32.mrf.mxu2  ;;  %v7068_v58 = vadd.f32 %v6931_v16, %v8952_v14  ;;  %vm2357_vm3 = vweird.f32 %v6905_v59  ;;  %v8956_v30 = vsub.f32 %v8950_v31, %v6767_v62  ;;  %v1943_v45 = vmul.f32 %v7011_v9, %v7011_v9 }
 0x4fa   : > { %v7061_v54 = vmul.f32 %v2389_v20, %v8954_v2  ;;  %v7079_v5 = vadd.f32 %v1658_v61, %v5931_v6  ;;  %v2349_v18 = vsel %vm2348_vm2, %v6843_v27, %v6987_v35  ;;  %vm2367_vm4 = vweird.f32 %v6916_v36 }
 0x4fb   : > { %v6997_v39 = vpop.f32.mrf.mxu1  ;;  %8955 = vst [vmem:[#allocation13_spill] sm:$0xff] %v7068_v58  ;;  %v7074_v28 = vmul.f32 %v2389_v20, %v8956_v30  ;;  %v7085_v16 = vmul.f32 %v6938_v29, %v2374_v10  ;;  %v2403_v62 = vmul.f32 0.5, %v2402_v34  ;;  %v7092_v31 = vadd.f32 %v1668_v63, %v5931_v6  ;;  %v4930_v37 = vpop.eup %4929 }
 0x4fc   : > { %4933 = vrsqrt.f32 %v7043_v21  ;;  %vm2356_vm6 = vweird.f32 %v6845_v52  ;;  %v7097_v27 = vsel %vm2398_vm5, %v6933_v26, %v2395_v57  ;;  %v7099_v35 = vadd.f32 1e-05, %v2139_v50 }
 0x4fd   : > { %v2109_v48 = vmul.f32 %v7047_v41, %v7047_v41  ;;  %v2028_v4 = vadd.f32 %v1943_v45, %v1942_v43  ;;  %v4932_v13 = vpop.eup %4931  ;;  %vm2366_vm7 = vweird.f32 %v6852_v25  ;;  %v1945_v20 = vmul.f32 %v7068_v58, %v7068_v58  ;;  %vm2358_vm8 = vmor %vm2356_vm6, %vm2357_vm3 }
 0x4fe   : > { %v2915_v10 = vmul.f32 0.5, %v4930_v37  ;;  %v8957_v34 = vsub.f32 %v8938_v38, %v6714_v51  ;;  %v2656_v26 = vmul.f32 %v6505_v17, %v6975_v56  ;;  %v2917_v57 = vmul.f32 0.5, %v4932_v13  ;;  %vm2368_vm9 = vmor %vm2366_vm7, %vm2367_vm4 }
 0x4ff   : > { %2029 = vadd.xlane.f32.xlu1 %v2028_v4  ;;  %v7113_v63 = vadd.f32 %v6997_v39, %v8952_v14  ;;  %v1839_v50 = vadd.f32 %v7068_v58, %v7079_v5  ;;  %v1944_v43 = vmul.f32 %v7079_v5, %v7079_v5  ;;  %v2404_v30 = vsub.f32 1.5, %v2403_v62 }
 0x500   : > { %v2588_v61 = vmul.f32 %v2349_v18, %v8957_v34  ;;  %v2979_v45 = vadd.f32 0.5, %v2915_v10  ;;  %v7121_v37 = vadd.f32 %v6523_v0, %v2656_v26  ;;  %v2141_v56 = vsub.f32 %v6759_v47, %v2109_v48 }
 0x501   : > { %8958 = vst [vmem:[#allocation11_spill] sm:$0xff] %v7113_v63  ;;  %v2076_v4 = vmul.f32 0.00390625, %v2018_v42  ;;  %v2981_v13 = vadd.f32 0.5, %v2917_v57  ;;  %1840 = vadd.xlane.f32.xlu0 %v1839_v50  ;;  %v2031_v39 = vadd.f32 %v1945_v20, %v1944_v43  ;;  %v8959_v10 = vsub.f32 %v8939_v22, %v6714_v51  ;;  %v1832_v51 = vpop.xlane.xlu1 %1831 }
 0x502   : > { %v2658_v38 = vmul.f32 %v6505_v17, %v2588_v61  ;;  %v7124_v34 = vpop.eup %4933  ;;  %v3043_v3 = vmul.f32 %v2979_v45, %v7015_v55  ;;  %v2790_v62 = vmul.f32 0.5, %v7121_v37  ;;  %4935 = vrsqrt.f32 %v7099_v35 }
 0x503   : > { %v7040_v60 = vpop.f32.mrf.mxu1  ;;  %v2589_v61 = vmul.f32 %v2349_v18, %v8959_v10  ;;  %v3045_v47 = vmul.f32 %v2981_v13, %v7018_v49  ;;  %v1947_v48 = vmul.f32 %v7113_v63, %v7113_v63  ;;  %2032 = vadd.xlane.f32.xlu2 %v2031_v39  ;;  %v8961_v42 = vsub.f32 %v8951_v23, %v6806_v40  ;;  %v8964_v10 = vld [vmem:[#allocation30_spill] sm:$0xff] }
 0x504   : > { %v7128_v58 = vadd.f32 %v6523_v0, %v2658_v38  ;;  %v7140_v55 = vadd.f32 %v7040_v60, %v8952_v14  ;;  %4937 = vtanh.f32 %v2790_v62  ;;  %v2657_v49 = vmul.f32 %v6569_v1, %v6980_v11 }
 0x505   : > { %v7146_v20 = vmul.f32 %v7097_v27, %v8961_v42  ;;  %v7152_v18 = vmul.f32 %v7003_v15, %v2404_v30  ;;  %v2411_v60 = vmul.f32 %v7124_v34, %v7043_v21  ;;  %v7156_v26 = vadd.f32 1e-05, %v2141_v56  ;;  %v8963_v30 = vld [vmem:[#allocation36_spill] sm:$0xff]  ;;  %v8967_v42 = vld [vmem:[#allocation7_spill] sm:$0xff] }
 0x506   : > { %8960 = vst [vmem:[#allocation16_spill] sm:$0xff] %v7140_v55  ;;  %v2792_v22 = vmul.f32 0.5, %v7128_v58  ;;  %v3101_v57 = vpack.c.bf16 %v3045_v47, %v3043_v3  ;;  %v2140_v23 = vsub.f32 %v2076_v4, %v6777_v12  ;;  %v2659_v50 = vmul.f32 %v6569_v1, %v2589_v61  ;;  %v8962_v3 = vld [vmem:[#allocation27_spill] sm:$0xff]  ;;  %v8965_v61 = vld [vmem:[#allocation25_spill] sm:$0xff] }
 0x507   : > { %v7165_v11 = vadd.f32 %v6581_v24, %v2657_v49  ;;  %v7171_v43 = vmul.f32 0.00390625, %v1832_v51  ;;  %v1842_v52 = vadd.f32 %v7113_v63, %v6821_v33  ;;  %v1845_v12 = vadd.f32 %v7140_v55, %v8962_v3  ;;  %v8974_v63 = vld [vmem:[#allocation6_spill] sm:$0xff] }
 0x508   : > { %4939 = vtanh.f32 %v2792_v22  ;;  %3367 = vmatmul.bf16.gmra.mxu3 %v3101_v57  ;;  %v2034_v45 = vadd.f32 %v1947_v48, %v8963_v30  ;;  %v7179_v56 = vadd.f32 %v6581_v24, %v2659_v50  ;;  %v2359_v25 = vsel %vm2358_vm8, %v6905_v59, %v7029_v44  ;;  %v7186_v39 = vpop.eup %4935  ;;  %v8968_v59 = vld [vmem:[#allocation22_spill] sm:$0xff]  ;;  %v8970_v57 = vld [vmem:[#allocation35_spill] sm:$0xff] }
 0x509   : > { %v2791_v4 = vmul.f32 0.5, %v7165_v11  ;;  %v2369_v13 = vsel %vm2368_vm9, %v6916_v36, %v7056_v53  ;;  %vm2377_vm10 = vweird.f32 %v6938_v29  ;;  %4941 = vrsqrt.f32 %v7156_v26  ;;  %1843 = vadd.xlane.f32.xlu0 %v1842_v52  ;;  %1846 = vadd.xlane.f32.xlu1 %v1845_v12 }
 0x50a   : > { %v8966_v47 = vsub.f32 %v8964_v10, %v8965_v61  ;;  %v8969_v44 = vsub.f32 %v8967_v42, %v8968_v59  ;;  %v4938_v36 = vpop.eup %4937  ;;  %v7200_v53 = vmul.f32 %v7124_v34, %v2411_v60  ;;  %v7202_v22 = vadd.f32 1e-05, %v2140_v23 }
 0x50b   : > { %v1755_v2 = vpop.f32.mrf.mxu1  ;;  %v2793_v49 = vmul.f32 0.5, %v7179_v56  ;;  %4943 = vtanh.f32 %v2791_v4  ;;  %vm2376_vm11 = vweird.f32 %v8970_v57  ;;  %v2918_v50 = vmul.f32 0.5, %v4938_v36  ;;  %2035 = vadd.xlane.f32.xlu2 %v2034_v45  ;;  %v8971_v4 = vld [vmem:[#allocation28_spill] sm:$0xff] }
 0x50c   : > { %v7191_v62 = vadd.f32 %v1755_v2, %v8952_v14  ;;  %v2590_v48 = vmul.f32 %v2359_v25, %v8966_v47  ;;  %v2592_v51 = vmul.f32 %v2369_v13, %v8969_v44  ;;  %v1671_v2 = vpop.f32.mrf.mxu3  ;;  %v1949_v30 = vmul.f32 %v7140_v55, %v7140_v55  ;;  %vm2378_vm13 = vmor %vm2376_vm11, %vm2377_vm10 }
 0x50d   : > { %v7212_v60 = vmul.f32 %v7186_v39, %v7099_v35  ;;  %4945 = vtanh.f32 %v2793_v49  ;;  %v1948_v23 = vmul.f32 %v8962_v3, %v8962_v3  ;;  %v8972_v47 = vsub.f32 %v8971_v4, %v8965_v61 }
 0x50e   : > { %v2660_v52 = vmul.f32 %v6505_v17, %v2590_v48  ;;  %v2662_v12 = vmul.f32 %v6505_v17, %v2592_v51  ;;  %v4940_v10 = vpop.eup %4939  ;;  %v2982_v48 = vadd.f32 0.5, %v2918_v50  ;;  %v1848_v51 = vadd.f32 %v7191_v62, %v7064_v32 }
 0x50f   : > { %v2591_v45 = vmul.f32 %v2359_v25, %v8972_v47  ;;  %v2920_v42 = vmul.f32 0.5, %v4940_v10  ;;  %v7225_v36 = vadd.f32 %v1671_v2, %v5931_v6  ;;  %v8975_v25 = vsub.f32 %v8974_v63, %v8968_v59  ;;  %v7236_v50 = vpop.eup %4941 }
 0x510   : > { %v7220_v44 = vadd.f32 %v6523_v0, %v2660_v52  ;;  %v7228_v49 = vadd.f32 %v6523_v0, %v2662_v12  ;;  %v2037_v4 = vadd.f32 %v1949_v30, %v1948_v23  ;;  %v3046_v12 = vmul.f32 %v2982_v48, %v7121_v37 }
 0x511   : > { %v2593_v61 = vmul.f32 %v2369_v13, %v8975_v25  ;;  %v2984_v52 = vadd.f32 0.5, %v2920_v42  ;;  %v2661_v47 = vmul.f32 %v6569_v1, %v2591_v45  ;;  %v4944_v3 = vpop.eup %4943  ;;  %v1951_v63 = vmul.f32 %v7191_v62, %v7191_v62  ;;  %1849 = vadd.xlane.f32.xlu1 %v1848_v51 }
 0x512   : > { %v2794_v10 = vmul.f32 0.5, %v7220_v44  ;;  %v2796_v33 = vmul.f32 0.5, %v7228_v49  ;;  %v2919_v59 = vmul.f32 0.5, %v4944_v3  ;;  %2038 = vadd.xlane.f32.xlu0 %v2037_v4  ;;  %v1950_v45 = vmul.f32 %v7064_v32, %v7064_v32 }
 0x513   : > { %v1757_v38 = vpop.f32.mrf.mxu1  ;;  %v3048_v13 = vmul.f32 %v2984_v52, %v7128_v58  ;;  %v7247_v30 = vadd.f32 %v6581_v24, %v2661_v47  ;;  %v4946_v23 = vpop.eup %4945  ;;  %vm2407_vm12 = vweird.f32 %v7003_v15  ;;  %v1952_v25 = vmul.f32 %v7092_v31, %v7092_v31 }
 0x514   : > { %v7231_v55 = vadd.f32 %v1757_v38, %v8952_v14  ;;  %v2663_v38 = vmul.f32 %v6569_v1, %v2593_v61  ;;  %4947 = vtanh.f32 %v2794_v10  ;;  %v2921_v3 = vmul.f32 0.5, %v4946_v23 }
 0x515   : > { %4949 = vtanh.f32 %v2796_v33  ;;  %v3102_v58 = vpack.c.bf16 %v3048_v13, %v3046_v12  ;;  %v2983_v48 = vadd.f32 0.5, %v2919_v59  ;;  %v2795_v51 = vmul.f32 0.5, %v7247_v30  ;;  %v8977_v13 = vld [vmem:[#allocation4_spill] sm:$0xff] }
 0x516   : > { %8973 = vst [vmem:[#allocation3_spill] sm:$0xff] %v7231_v55  ;;  %v7250_v37 = vadd.f32 %v6581_v24, %v2663_v38  ;;  %v1851_v42 = vadd.f32 %v7231_v55, %v7092_v31  ;;  %v1953_v61 = vmul.f32 %v7231_v55, %v7231_v55  ;;  %vm2406_vm14 = vweird.f32 %v6946_v8  ;;  %v8976_v38 = vld [vmem:[#allocation10_spill] sm:$0xff] }
 0x517   : > { %3283 = vmatmul.bf16.gmra.mxu2 %v3102_v58  ;;  %v2985_v10 = vadd.f32 0.5, %v2921_v3  ;;  %4951 = vtanh.f32 %v2795_v51  ;;  %v2040_v4 = vadd.f32 %v1951_v63, %v1950_v45  ;;  %v2379_v57 = vsel %vm2378_vm13, %v6938_v29, %v7085_v16  ;;  %v8979_v29 = vld [vmem:[#allocation9_spill] sm:$0xff]  ;;  %vm2408_vm15 = vmor %vm2406_vm14, %vm2407_vm12 }
 0x518   : > { %v2797_v33 = vmul.f32 0.5, %v7250_v37  ;;  %1852 = vadd.xlane.f32.xlu2 %v1851_v42  ;;  %v3047_v47 = vmul.f32 %v2983_v48, %v7165_v11  ;;  %v2043_v12 = vadd.f32 %v1953_v61, %v1952_v25  ;;  %v8978_v59 = vsub.f32 %v8976_v38, %v8977_v13  ;;  %v1835_v48 = vpop.xlane.xlu2 %1834 }
 0x519   : > { %v3049_v55 = vmul.f32 %v2985_v10, %v7179_v56  ;;  %v2666_v63 = vmul.f32 %v6505_v17, %v7061_v54  ;;  %v8980_v16 = vsub.f32 %v8979_v29, %v8977_v13  ;;  %vm2426_vm0 = vweird.f32 %v7099_v35 }
 0x51a   : > { %4953 = vtanh.f32 %v2797_v33  ;;  %v2594_v23 = vmul.f32 %v2379_v57, %v8978_v59  ;;  %v4948_v42 = vpop.eup %4947  ;;  %2041 = vadd.xlane.f32.xlu0 %v2040_v4  ;;  %2044 = vadd.xlane.f32.xlu1 %v2043_v12  ;;  %v2667_v59 = vmul.f32 %v6569_v1, %v7074_v28  ;;  %v2422_v4 = vmul.f32 %v7186_v39, %v7212_v60 }
 0x51b   : > { %v1760_v2 = vpop.f32.mrf.mxu1  ;;  %v2595_v11 = vmul.f32 %v2379_v57, %v8980_v16  ;;  %v4950_v3 = vpop.eup %4949  ;;  %v2922_v51 = vmul.f32 0.5, %v4948_v42  ;;  %v3103_v61 = vpack.c.bf16 %v3049_v55, %v3047_v47  ;;  %v7292_v54 = vadd.f32 %v6523_v0, %v2666_v63 }
 0x51c   : > { %v7268_v52 = vadd.f32 %v1760_v2, %v8952_v14  ;;  %v1673_v2 = vpop.f32.mrf.mxu3  ;;  %v2664_v33 = vmul.f32 %v6505_v17, %v2594_v23  ;;  %v2924_v10 = vmul.f32 0.5, %v4950_v3  ;;  %4955 = vrsqrt.f32 %v7202_v22 }
 0x51d   : > { %v2665_v57 = vmul.f32 %v6569_v1, %v2595_v11  ;;  %v7297_v38 = vadd.f32 %v1673_v2, %v5931_v6  ;;  %v4952_v55 = vpop.eup %4951  ;;  %v7306_v47 = vmul.f32 0.00390625, %v1835_v48  ;;  %v1954_v12 = vmul.f32 %v7225_v36, %v7225_v36  ;;  %3372 = vmatmul.bf16.gmra.mxu3 %v3103_v61  ;;  %v2027_v48 = vpop.xlane.xlu1 %2026 }
 0x51e   : > { %v1955_v58 = vmul.f32 %v7268_v52, %v7268_v52  ;;  %v1854_v25 = vadd.f32 %v7268_v52, %v7225_v36  ;;  %v7300_v13 = vadd.f32 %v6523_v0, %v2664_v33  ;;  %v2988_v23 = vadd.f32 0.5, %v2924_v10 }
 0x51f   : > { %v2800_v63 = vmul.f32 0.5, %v7292_v54  ;;  %v2986_v60 = vadd.f32 0.5, %v2922_v51  ;;  %v2413_v3 = vmul.f32 0.5, %v7200_v53  ;;  %v7325_v33 = vadd.f32 %v6581_v24, %v2667_v59 }
 0x520   : > { %v4954_v42 = vpop.eup %4953  ;;  %v2798_v2 = vmul.f32 0.5, %v7300_v13  ;;  %1855 = vadd.xlane.f32.xlu2 %v1854_v25  ;;  %v2046_v16 = vadd.f32 %v1955_v58, %v1954_v12  ;;  %v1956_v51 = vmul.f32 %v7297_v38, %v7297_v38  ;;  %v2423_v25 = vmul.f32 0.5, %v2422_v4 }
 0x521   : > { %v2925_v29 = vmul.f32 0.5, %v4954_v42  ;;  %v3052_v58 = vmul.f32 %v2988_v23, %v7228_v49  ;;  %v2923_v61 = vmul.f32 0.5, %v4952_v55  ;;  %v2409_v10 = vsel %vm2408_vm15, %v7003_v15, %v7152_v18  ;;  %v8982_v15 = vld [vmem:[#allocation8_spill] sm:$0xff] }
 0x522   : > { %4957 = vtanh.f32 %v2798_v2  ;;  %v8981_v59 = vsub.f32 %v8953_v7, %v6867_v19  ;;  %v2079_v42 = vmul.f32 0.00390625, %v2027_v48  ;;  %v2111_v4 = vmul.f32 %v7306_v47, %v7306_v47  ;;  %2047 = vadd.xlane.f32.xlu1 %v2046_v16 }
 0x523   : > { %v1762_v45 = vpop.f32.mrf.mxu1  ;;  %4959 = vtanh.f32 %v2800_v63  ;;  %v3050_v49 = vmul.f32 %v2986_v60, %v7220_v44  ;;  %v2989_v55 = vadd.f32 0.5, %v2925_v29  ;;  %v2185_v18 = vsub.f32 %v8982_v15, %v6867_v19  ;;  %v8983_v63 = vld [vmem:[#allocation15_spill] sm:$0xff] }
 0x524   : > { %v7289_v56 = vadd.f32 %v1762_v45, %v8952_v14  ;;  %v7315_v45 = vadd.f32 %v6581_v24, %v2665_v57  ;;  %v7332_v57 = vpop.eup %4955  ;;  %v2600_v12 = vmul.f32 %v2409_v10, %v8981_v59  ;;  %v2110_v23 = vmul.f32 %v7171_v43, %v7171_v43 }
 0x525   : > { %v2801_v2 = vmul.f32 0.5, %v7325_v33  ;;  %v2424_v48 = vsub.f32 1.5, %v2423_v25  ;;  %v2987_v59 = vadd.f32 0.5, %v2923_v61  ;;  %v2414_v60 = vsub.f32 1.5, %v2413_v3  ;;  %v8984_v25 = vld [vmem:[#allocation26_spill] sm:$0xff] }
 0x526   : > { %v1957_v28 = vmul.f32 %v7289_v56, %v7289_v56  ;;  %v1857_v11 = vadd.f32 %v7289_v56, %v7297_v38  ;;  %v2799_v8 = vmul.f32 0.5, %v7315_v45  ;;  %v2670_v7 = vmul.f32 %v6505_v17, %v2600_v12 }
 0x527   : > { %v2668_v19 = vmul.f32 %v6505_v17, %v7146_v20  ;;  %v2601_v29 = vmul.f32 %v2409_v10, %v2185_v18  ;;  %v3053_v12 = vmul.f32 %v2989_v55, %v7250_v37  ;;  %vm2427_vm1 = vweird.f32 %v7186_v39 }
 0x528   : > { %v2049_v53 = vadd.f32 %v1957_v28, %v1956_v51  ;;  %1858 = vadd.xlane.f32.xlu0 %v1857_v11  ;;  %v2183_v28 = vsub.f32 %v8983_v63, %v6806_v40  ;;  %v3104_v51 = vpack.c.bf16 %v3052_v58, %v3050_v49  ;;  %v4958_v44 = vpop.eup %4957  ;;  %4961 = vtanh.f32 %v2799_v8  ;;  %vm2428_vm4 = vmor %vm2426_vm0, %vm2427_vm1 }
 0x529   : > { %v2143_v11 = vsub.f32 %v2079_v42, %v2111_v4  ;;  %v4960_v40 = vpop.eup %4959  ;;  %v2142_v58 = vsub.f32 %v8984_v25, %v2110_v23  ;;  %4963 = vtanh.f32 %v2801_v2  ;;  %v7357_v3 = vadd.f32 %v6523_v0, %v2670_v7 }
 0x52a   : > { %2050 = vadd.xlane.f32.xlu2 %v2049_v53  ;;  %v2599_v16 = vmul.f32 %v7097_v27, %v2183_v28  ;;  %3288 = vmatmul.bf16.gmra.mxu2 %v3104_v51  ;;  %v2425_v20 = vmul.f32 %v7186_v39, %v2424_v48  ;;  %v2431_v27 = vmul.f32 %v7332_v57, %v7202_v22  ;;  %v2926_v10 = vmul.f32 0.5, %v4958_v44  ;;  %v8986_v48 = vld [vmem:[#allocation17_spill] sm:$0xff] }
 0x52b   : > { %v3051_v61 = vmul.f32 %v2987_v59, %v7247_v30  ;;  %v2415_v8 = vmul.f32 %v7124_v34, %v2414_v60  ;;  %vm2417_vm2 = vweird.f32 %v7124_v34  ;;  %v7366_v37 = vadd.f32 %v6523_v0, %v2668_v19 }
 0x52c   : > { %v2671_v53 = vmul.f32 %v6569_v1, %v2601_v29  ;;  %v2441_v42 = vmul.f32 %v7236_v50, %v7156_v26  ;;  %v7371_v4 = vadd.f32 1e-05, %v2143_v11  ;;  %v2928_v55 = vmul.f32 0.5, %v4960_v40  ;;  %v8987_v29 = vld [vmem:[#allocation37_spill] sm:$0xff] }
 0x52d   : > { %v3105_v49 = vpack.c.bf16 %v3053_v12, %v3051_v61  ;;  %vm2416_vm3 = vweird.f32 %v7043_v21  ;;  %v2804_v30 = vmul.f32 0.5, %v7357_v3  ;;  %v2669_v18 = vmul.f32 %v6569_v1, %v2599_v16  ;;  %v8985_v21 = vld [vmem:[#allocation24_spill] sm:$0xff]  ;;  %v8988_v16 = vld [vmem:[#allocation5_spill] sm:$0xff] }
 0x52e   : > { %v4962_v15 = vpop.eup %4961  ;;  %vm2418_vm5 = vmor %vm2416_vm3, %vm2417_vm2  ;;  %v2429_v23 = vsel %vm2428_vm4, %v7186_v39, %v2425_v20  ;;  %v2432_v2 = vmul.f32 %v7332_v57, %v2431_v27  ;;  %v7382_v7 = vadd.f32 1e-05, %v2142_v58  ;;  %v2990_v63 = vadd.f32 0.5, %v2926_v10 }
 0x52f   : > { %3377 = vmatmul.bf16.gmra.mxu3 %v3105_v49  ;;  %v4964_v28 = vpop.eup %4963  ;;  %v2188_v51 = vsub.f32 %v8986_v48, %v8985_v21  ;;  %v2419_v35 = vsel %vm2418_vm5, %v7124_v34, %v2415_v8  ;;  %v2802_v59 = vmul.f32 0.5, %v7366_v37  ;;  %v7389_v44 = vadd.f32 %v6581_v24, %v2671_v53 }
 0x530   : > { %v2442_v60 = vmul.f32 %v7236_v50, %v2441_v42  ;;  %4965 = vrsqrt.f32 %v7371_v4  ;;  %v2992_v39 = vadd.f32 0.5, %v2928_v55  ;;  %v2927_v19 = vmul.f32 0.5, %v4962_v15  ;;  %v8989_v42 = vld [vmem:[#allocation18_spill] sm:$0xff] }
 0x531   : > { %v2186_v11 = vsub.f32 %v8988_v16, %v8987_v29  ;;  %v2604_v12 = vmul.f32 %v2429_v23, %v2188_v51  ;;  %4967 = vtanh.f32 %v2804_v30  ;;  %v7396_v40 = vadd.f32 %v6581_v24, %v2669_v18 }
 0x532   : > { %v2433_v34 = vmul.f32 0.5, %v2432_v2  ;;  %4969 = vrsqrt.f32 %v7382_v7  ;;  %v3054_v25 = vmul.f32 %v2990_v63, %v7300_v13  ;;  %v2929_v58 = vmul.f32 0.5, %v4964_v28  ;;  %v8990_v28 = vld [vmem:[#allocation12_spill] sm:$0xff] }
 0x533   : > { %v2602_v20 = vmul.f32 %v2419_v35, %v2186_v11  ;;  %4971 = vtanh.f32 %v2802_v59  ;;  %v2805_v27 = vmul.f32 0.5, %v7389_v44  ;;  %v2443_v61 = vmul.f32 0.5, %v2442_v60 }
 0x534   : > { %v3056_v10 = vmul.f32 %v2992_v39, %v7292_v54  ;;  %v2991_v8 = vadd.f32 0.5, %v2927_v19  ;;  %v2189_v49 = vsub.f32 %v8989_v42, %v8985_v21  ;;  %v2803_v55 = vmul.f32 0.5, %v7396_v40 }
 0x535   : > { %v2674_v15 = vmul.f32 %v6505_v17, %v2604_v12  ;;  %v2434_v13 = vsub.f32 1.5, %v2433_v34  ;;  %v2993_v2 = vadd.f32 0.5, %v2929_v58  ;;  %v2187_v48 = vsub.f32 %v8990_v28, %v8987_v29 }
 0x536   : > { %v7408_v30 = vpop.eup %4965  ;;  %v3106_v18 = vpack.c.bf16 %v3056_v10, %v3054_v25  ;;  %v2605_v54 = vmul.f32 %v2429_v23, %v2189_v49  ;;  %4973 = vtanh.f32 %v2805_v27  ;;  %v2672_v51 = vmul.f32 %v6505_v17, %v2602_v20 }
 0x537   : > { %v4968_v63 = vpop.eup %4967  ;;  %v2444_v21 = vsub.f32 1.5, %v2443_v61  ;;  %v3055_v60 = vmul.f32 %v2991_v8, %v7315_v45  ;;  %v2603_v19 = vmul.f32 %v2419_v35, %v2187_v48  ;;  %vm2437_vm6 = vweird.f32 %v7332_v57 }
 0x538   : > { %v7402_v53 = vpop.f32.mrf.mxu3  ;;  %v7413_v59 = vpop.eup %4969  ;;  %4975 = vtanh.f32 %v2803_v55  ;;  %v7418_v16 = vadd.f32 %v6523_v0, %v2674_v15  ;;  %v2435_v29 = vmul.f32 %v7332_v57, %v2434_v13  ;;  %v2461_v23 = vmul.f32 %v7408_v30, %v7371_v4  ;;  %v8991_v13 = vld [vmem:[#allocation33_spill] sm:$0xff] }
 0x539   : > { %v4972_v39 = vpop.eup %4971  ;;  %v3057_v11 = vmul.f32 %v2993_v2, %v7325_v33  ;;  %v2932_v12 = vmul.f32 0.5, %v4968_v63  ;;  %vm2447_vm7 = vweird.f32 %v7236_v50  ;;  %vm2436_vm8 = vweird.f32 %v7202_v22  ;;  %v316_v33 = vld [vmem:[%s8794_s5] sm:$0xf] }
 0x53a   : > { %3293 = vmatmul.bf16.gmra.mxu2 %v3106_v18  ;;  %v7427_v45 = vadd.f32 %v6523_v0, %v2672_v51  ;;  %v2675_v35 = vmul.f32 %v6569_v1, %v2605_v54  ;;  %v2445_v34 = vmul.f32 %v7236_v50, %v2444_v21  ;;  %v2451_v25 = vmul.f32 %v7413_v59, %v7382_v7  ;;  %vm2438_vm9 = vmor %vm2436_vm8, %vm2437_vm6  ;;  %v8992_v18 = vld [vmem:[#allocation19_spill] sm:$0xff]  ;;  %v7457_v51 = vpop.f32.mrf.mxu1 }
 0x53b   : > { %v3107_v58 = vpack.c.bf16 %v3057_v11, %v3055_v60  ;;  %v2930_v20 = vmul.f32 0.5, %v4972_v39  ;;  %v2808_v22 = vmul.f32 0.5, %v7418_v16  ;;  %v2673_v10 = vmul.f32 %v6569_v1, %v2603_v19  ;;  %v8993_v60 = vld [vmem:[#allocation21_spill] sm:$0xff] }
 0x53c   : > { %v4974_v61 = vpop.eup %4973  ;;  %vm2446_vm10 = vweird.f32 %v7156_v26  ;;  %v2439_v8 = vsel %vm2438_vm9, %v7332_v57, %v2435_v29  ;;  %v2462_v42 = vmul.f32 %v7408_v30, %v2461_v23  ;;  %v2996_v49 = vadd.f32 0.5, %v2932_v12 }
 0x53d   : > { %v2190_v2 = vsub.f32 %v8992_v18, %v8991_v13  ;;  %vm2448_vm11 = vmor %vm2446_vm10, %vm2447_vm7  ;;  %v2806_v63 = vmul.f32 0.5, %v7427_v45  ;;  %v7450_v28 = vperm.slane %v316_v33, 0  ;;  %v7453_v26 = vadd.f32 %v6581_v24, %v2675_v35 }
 0x53e   : > { %v4976_v15 = vpop.eup %4975  ;;  %v2449_v57 = vsel %vm2448_vm11, %v7236_v50, %v2445_v34  ;;  %v2452_v48 = vmul.f32 %v7413_v59, %v2451_v25  ;;  %v2994_v54 = vadd.f32 0.5, %v2930_v20  ;;  %v2933_v21 = vmul.f32 0.5, %v4974_v61  ;;  %v8994_v61 = vld [vmem:[#allocation20_spill] sm:$0xff] }
 0x53f   : > { %3382 = vmatmul.bf16.gmra.mxu3 %v3107_v58  ;;  %v2192_v39 = vsub.f32 %v8993_v60, %v7047_v41  ;;  %v2606_v19 = vmul.f32 %v2439_v8, %v2190_v2  ;;  %4977 = vtanh.f32 %v2808_v22  ;;  %v7462_v29 = vadd.f32 %v6581_v24, %v2673_v10 }
 0x540   : > { %v7433_v27 = vpop.f32.mrf.mxu3  ;;  %v3264_v55 = vpop.f32.mrf.mxu2  ;;  %v2463_v23 = vmul.f32 0.5, %v2462_v42  ;;  %v3060_v11 = vmul.f32 %v2996_v49, %v7357_v3  ;;  %v2931_v12 = vmul.f32 0.5, %v4976_v15  ;;  %4979 = vtanh.f32 %v2806_v63  ;;  %v8995_v49 = vld [vmem:[#allocation23_spill] sm:$0xff] }
 0x541   : > { %v2608_v35 = vmul.f32 %v2449_v57, %v2192_v39  ;;  %v3265_v50 = vadd.f32 %v3264_v55, %v7450_v28  ;;  %v2809_v34 = vmul.f32 0.5, %v7453_v26  ;;  %v2453_v25 = vmul.f32 0.5, %v2452_v48 }
 0x542   : > { %v3058_v58 = vmul.f32 %v2994_v54, %v7366_v37  ;;  %v2997_v20 = vadd.f32 0.5, %v2933_v21  ;;  %v2191_v22 = vsub.f32 %v8994_v61, %v8991_v13  ;;  %v2807_v10 = vmul.f32 0.5, %v7462_v29 }
 0x543   : > { %v2676_v3 = vmul.f32 %v6505_v17, %v2606_v19  ;;  %v2193_v15 = vsub.f32 %v8995_v49, %v7047_v41  ;;  %v2464_v55 = vsub.f32 1.5, %v2463_v23  ;;  %v2995_v2 = vadd.f32 0.5, %v2931_v12 }
 0x544   : > { %v3108_v18 = vpack.c.bf16 %v3060_v11, %v3058_v58  ;;  %v2678_v37 = vmul.f32 %v6505_v17, %v2608_v35  ;;  %v2607_v48 = vmul.f32 %v2439_v8, %v2191_v22  ;;  %4981 = vtanh.f32 %v2809_v34  ;;  %v1767_v11 = vpop.f32.mrf.mxu1 }
 0x545   : > { %v4978_v63 = vpop.eup %4977  ;;  %v2454_v54 = vsub.f32 1.5, %v2453_v25  ;;  %vm2456_vm12 = vweird.f32 %v7382_v7  ;;  %v3061_v21 = vmul.f32 %v2997_v20, %v7389_v44  ;;  %v2609_v39 = vmul.f32 %v2449_v57, %v2193_v15 }
 0x546   : > { %v4980_v60 = vpop.eup %4979  ;;  %vm2457_vm13 = vweird.f32 %v7413_v59  ;;  %4983 = vtanh.f32 %v2807_v10  ;;  %v7484_v8 = vadd.f32 %v6523_v0, %v2676_v3  ;;  %v2465_v19 = vmul.f32 %v7408_v30, %v2464_v55  ;;  %v8996_v10 = vld [vmem:[#allocation14_spill] sm:$0xff] }
 0x547   : > { %vm2467_vm14 = vweird.f32 %v7408_v30  ;;  %v3059_v23 = vmul.f32 %v2995_v2, %v7396_v40  ;;  %v2936_v12 = vmul.f32 0.5, %v4978_v63  ;;  %v7491_v44 = vadd.f32 %v7433_v27, %v5931_v6  ;;  %vm2458_vm1 = vmor %vm2456_vm12, %vm2457_vm13 }
 0x548   : > { %v3353_v33 = vpop.f32.mrf.mxu3  ;;  %v3266_v41 = vpop.f32.mrf.mxu2  ;;  %v7495_v35 = vadd.f32 %v6523_v0, %v2678_v37  ;;  %v2455_v34 = vmul.f32 %v7413_v59, %v2454_v54  ;;  %vm2466_vm15 = vweird.f32 %v7371_v4  ;;  %v2934_v58 = vmul.f32 0.5, %v4980_v60 }
 0x549   : > { %v7471_v42 = vadd.f32 %v3353_v33, %v3265_v50  ;;  %v3267_v57 = vadd.f32 %v3266_v41, %v7450_v28  ;;  %v2677_v50 = vmul.f32 %v6569_v1, %v2607_v48  ;;  %v3109_v25 = vpack.c.bf16 %v3061_v21, %v3059_v23  ;;  %vm2468_vm0 = vmor %vm2466_vm15, %vm2467_vm14  ;;  %v8998_v23 = vld [vmem:[#allocation32_spill] sm:$0xff] }
 0x54a   : > { %3298 = vmatmul.bf16.gmra.mxu2 %v3108_v18  ;;  %v4982_v20 = vpop.eup %4981  ;;  %v2679_v33 = vmul.f32 %v6569_v1, %v2609_v39  ;;  %v7504_v27 = vadd.f32 %v1767_v11, %v8952_v14  ;;  %v2810_v61 = vmul.f32 0.5, %v7484_v8  ;;  %v2196_v3 = vsub.f32 %v8996_v10, %v7306_v47 }
 0x54b   : > { %3433 = vadd.xlane.f32.xlu0 %v7471_v42  ;;  %v3529_v13 = vmul.f32 %v7471_v42, %v7471_v42  ;;  %v2469_v4 = vsel %vm2468_vm0, %v7408_v30, %v2465_v19  ;;  %v7514_v49 = vadd.f32 %v7402_v53, %v5931_v6  ;;  %v3000_v15 = vadd.f32 0.5, %v2936_v12  ;;  %v8997_v53 = vld [vmem:[#allocation31_spill] sm:$0xff] }
 0x54c   : > { %v4984_v55 = vpop.eup %4983  ;;  %v2812_v18 = vmul.f32 0.5, %v7495_v35  ;;  %v1863_v30 = vadd.f32 %v7504_v27, %v7491_v44  ;;  %v7527_v6 = vadd.f32 %v6581_v24, %v2677_v50  ;;  %v2194_v63 = vsub.f32 %v8997_v53, %v7171_v43 }
 0x54d   : > { %3561 = vadd.xlane.f32.xlu2 %v3529_v13  ;;  %v2459_v37 = vsel %vm2458_vm1, %v7413_v59, %v2455_v34  ;;  %v2998_v7 = vadd.f32 0.5, %v2934_v58  ;;  %v2937_v48 = vmul.f32 0.5, %v4982_v20  ;;  %v2612_v13 = vmul.f32 %v2469_v4, %v2196_v3  ;;  %v8999_v34 = vld [vmem:[#allocation29_spill] sm:$0xff] }
 0x54e   : > { %v7534_v54 = vadd.f32 %v7457_v51, %v8952_v14  ;;  %4985 = vtanh.f32 %v2810_v61  ;;  %v7537_v21 = vadd.f32 %v6581_v24, %v2679_v33  ;;  %v3064_v41 = vmul.f32 %v3000_v15, %v7418_v16 }
 0x54f   : > { %3387 = vmatmul.bf16.gmra.mxu3 %v3109_v25  ;;  %v2935_v60 = vmul.f32 0.5, %v4984_v55  ;;  %v2610_v39 = vmul.f32 %v2459_v37, %v2194_v63  ;;  %v1958_v59 = vmul.f32 %v7514_v49, %v7514_v49  ;;  %4987 = vtanh.f32 %v2812_v18 }
 0x550   : > { %v3355_v40 = vpop.f32.mrf.mxu3  ;;  %v2811_v19 = vmul.f32 0.5, %v7527_v6  ;;  %v2197_v14 = vsub.f32 %v8998_v23, %v7306_v47  ;;  %v3062_v51 = vmul.f32 %v2998_v7, %v7427_v45  ;;  %v3001_v11 = vadd.f32 0.5, %v2937_v48 }
 0x551   : > { %v7507_v22 = vadd.f32 %v3355_v40, %v3267_v57  ;;  %v1959_v12 = vmul.f32 %v7534_v54, %v7534_v54  ;;  %v2813_v57 = vmul.f32 0.5, %v7537_v21  ;;  %v1860_v16 = vadd.f32 %v7534_v54, %v7514_v49 }
 0x552   : > { %v2682_v50 = vmul.f32 %v6505_v17, %v2612_v13  ;;  %v2195_v25 = vsub.f32 %v8999_v34, %v7171_v43  ;;  %v3110_v58 = vpack.c.bf16 %v3064_v41, %v3062_v51  ;;  %v2999_v40 = vadd.f32 0.5, %v2935_v60 }
 0x553   : > { %3435 = vadd.xlane.f32.xlu1 %v7507_v22  ;;  %v3530_v2 = vmul.f32 %v7507_v22, %v7507_v22  ;;  %v2680_v47 = vmul.f32 %v6505_v17, %v2610_v39  ;;  %v2613_v45 = vmul.f32 %v2469_v4, %v2197_v14  ;;  %4989 = vtanh.f32 %v2811_v19 }
 0x554   : > { %v4986_v20 = vpop.eup %4985  ;;  %v3269_v33 = vpop.f32.mrf.mxu2  ;;  %v2052_v61 = vadd.f32 %v1959_v12, %v1958_v59  ;;  %v3065_v10 = vmul.f32 %v3001_v11, %v7453_v26  ;;  %v2611_v15 = vmul.f32 %v2459_v37, %v2195_v25  ;;  %4991 = vtanh.f32 %v2813_v57 }
 0x555   : > { %3563 = vadd.xlane.f32.xlu0 %v3530_v2  ;;  %1864 = vadd.xlane.f32.xlu2 %v1863_v30  ;;  %v4988_v3 = vpop.eup %4987  ;;  %v7557_v55 = vadd.f32 %v6523_v0, %v2682_v50  ;;  %v1960_v43 = vmul.f32 %v7491_v44, %v7491_v44  ;;  %v3063_v18 = vmul.f32 %v2999_v40, %v7462_v29  ;;  %v2938_v4 = vmul.f32 0.5, %v4986_v20 }
 0x556   : > { %v1961_v2 = vmul.f32 %v7504_v27, %v7504_v27  ;;  %v3270_v30 = vadd.f32 %v3269_v33, %v7450_v28  ;;  %v2750_v26 = vadd.f32 %v6523_v0, %v2680_v47  ;;  %v2683_v53 = vmul.f32 %v6569_v1, %v2613_v45 }
 0x557   : > { %v3111_v63 = vpack.c.bf16 %v3065_v10, %v3063_v18  ;;  %v2940_v37 = vmul.f32 0.5, %v4988_v3  ;;  %v2681_v13 = vmul.f32 %v6569_v1, %v2611_v15  ;;  %v2816_v29 = vmul.f32 0.5, %v7557_v55 }
 0x558   : > { %v2055_v60 = vadd.f32 %v1961_v2, %v1960_v43  ;;  %v3002_v39 = vadd.f32 0.5, %v2938_v4  ;;  %v2814_v19 = vmul.f32 0.5, %v2750_v26  ;;  %v2753_v23 = vadd.f32 %v6581_v24, %v2683_v53 }
 0x559   : > { %v4990_v48 = vpop.eup %4989  ;;  %v3004_v14 = vadd.f32 0.5, %v2940_v37  ;;  %4993 = vtanh.f32 %v2816_v29  ;;  %v2751_v12 = vadd.f32 %v6581_v24, %v2681_v13 }
 0x55a   : > { %3303 = vmatmul.bf16.gmra.mxu2 %v3110_v58  ;;  %v3358_v7 = vpop.f32.mrf.mxu3  ;;  %v4992_v59 = vpop.eup %4991  ;;  %v2939_v51 = vmul.f32 0.5, %v4990_v48  ;;  %v3066_v57 = vmul.f32 %v3002_v39, %v7484_v8  ;;  %4995 = vtanh.f32 %v2814_v19  ;;  %v2817_v34 = vmul.f32 0.5, %v2753_v23 }
 0x55b   : > { %1861 = vadd.xlane.f32.xlu1 %v1860_v16  ;;  %v7568_v41 = vadd.f32 %v3358_v7, %v3270_v30  ;;  %v2941_v16 = vmul.f32 0.5, %v4992_v59  ;;  %v3068_v25 = vmul.f32 %v3004_v14, %v7495_v35  ;;  %v2815_v47 = vmul.f32 0.5, %v2751_v12 }
 0x55c   : > { %v3271_v11 = vpop.f32.mrf.mxu2  ;;  %v3003_v58 = vadd.f32 0.5, %v2939_v51  ;;  %4997 = vtanh.f32 %v2817_v34 }
 0x55d   : > { %2053 = vadd.xlane.f32.xlu0 %v2052_v61  ;;  %3437 = vadd.xlane.f32.xlu2 %v7568_v41  ;;  %v3272_v50 = vadd.f32 %v3271_v11, %v7450_v28  ;;  %v3112_v45 = vpack.c.bf16 %v3068_v25, %v3066_v57  ;;  %v3005_v33 = vadd.f32 0.5, %v2941_v16  ;;  %4999 = vtanh.f32 %v2815_v47 }
 0x55e   : > { %v3067_v10 = vmul.f32 %v3003_v58, %v7527_v6 }
 0x55f   : > { %3392 = vmatmul.bf16.gmra.mxu3 %v3111_v63  ;;  %v4994_v61 = vpop.eup %4993  ;;  %v3069_v35 = vmul.f32 %v3005_v33, %v7537_v21  ;;  %v3531_v63 = vmul.f32 %v7568_v41, %v7568_v41 }
 0x560   : > { %v4996_v3 = vpop.eup %4995  ;;  %v2944_v15 = vmul.f32 0.5, %v4994_v61 }
 0x561   : > { %v3113_v43 = vpack.c.bf16 %v3069_v35, %v3067_v10  ;;  %v2942_v18 = vmul.f32 0.5, %v4996_v3 }
 0x562   : > { %v3360_v40 = vpop.f32.mrf.mxu3  ;;  %v4998_v4 = vpop.eup %4997  ;;  %v3008_v30 = vadd.f32 0.5, %v2944_v15 }
 0x563   : > { %2056 = vadd.xlane.f32.xlu1 %v2055_v60  ;;  %v7577_v20 = vadd.f32 %v3360_v40, %v3272_v50  ;;  %v5000_v37 = vpop.eup %4999  ;;  %v3006_v7 = vadd.f32 0.5, %v2942_v18  ;;  %v2945_v48 = vmul.f32 0.5, %v4998_v4 }
 0x564   : > { %v3072_v13 = vmul.f32 %v3008_v30, %v7557_v55  ;;  %v2943_v21 = vmul.f32 0.5, %v5000_v37 }
 0x565   : > { %3439 = vadd.xlane.f32.xlu0 %v7577_v20  ;;  %v3532_v8 = vmul.f32 %v7577_v20, %v7577_v20  ;;  %v3070_v60 = vmul.f32 %v3006_v7, %v2750_v26  ;;  %v3009_v39 = vadd.f32 0.5, %v2945_v48 }
 0x566   : > { %v3007_v57 = vadd.f32 0.5, %v2943_v21 }
 0x567   : > { %3567 = vadd.xlane.f32.xlu2 %v3532_v8  ;;  %v3274_v53 = vpop.f32.mrf.mxu2  ;;  %v3114_v11 = vpack.c.bf16 %v3072_v13, %v3070_v60  ;;  %v3073_v34 = vmul.f32 %v3009_v39, %v2753_v23 }
 0x568   : > { %v3275_v29 = vadd.f32 %v3274_v53, %v7450_v28  ;;  %v3071_v47 = vmul.f32 %v3007_v57, %v2751_v12 }
 0x569   : > { %v1838_v2 = vpop.xlane.xlu2 %1837 }
 0x56a   : > { %3308 = vmatmul.bf16.gmra.mxu2 %v3112_v45  ;;  %v7586_v6 = vmul.f32 0.00390625, %v1838_v2  ;;  %v3115_v10 = vpack.c.bf16 %v3073_v34, %v3071_v47 }
 0x56b   : > { %3565 = vadd.xlane.f32.xlu1 %v3531_v63 }
 0x56c   : > { %v2112_v19 = vmul.f32 %v7586_v6, %v7586_v6 }
 0x56f   : > { %3397 = vmatmul.bf16.gmra.mxu3 %v3113_v43  ;;  %v3276_v26 = vpop.f32.mrf.mxu2 }
 0x570   : > { %v3363_v59 = vpop.f32.mrf.mxu3  ;;  %v3277_v61 = vadd.f32 %v3276_v26, %v7450_v28 }
 0x571   : > { %v7592_v14 = vadd.f32 %v3363_v59, %v3275_v29 }
 0x572   : > { %v2030_v51 = vpop.xlane.xlu1 %2029 }
 0x573   : > { %v2080_v16 = vmul.f32 0.00390625, %v2030_v51  ;;  %3441 = vadd.xlane.f32.xlu0 %v7592_v14  ;;  %v3533_v55 = vmul.f32 %v7592_v14, %v7592_v14 }
 0x574   : > { %v1841_v50 = vpop.xlane.xlu0 %1840 }
 0x575   : > { %v2144_v25 = vsub.f32 %v2080_v16, %v2112_v19  ;;  %v7597_v58 = vmul.f32 0.00390625, %v1841_v50  ;;  %3569 = vadd.xlane.f32.xlu2 %v3533_v55 }
 0x576   : > { %v2033_v40 = vpop.xlane.xlu2 %2032 }
 0x577   : > { %v7599_v45 = vadd.f32 1e-05, %v2144_v25  ;;  %v2113_v33 = vmul.f32 %v7597_v58, %v7597_v58  ;;  %v2081_v8 = vmul.f32 0.00390625, %v2033_v40 }
 0x578   : > { %v3365_v3 = vpop.f32.mrf.mxu3 }
 0x579   : > { %5001 = vrsqrt.f32 %v7599_v45  ;;  %v7605_v23 = vadd.f32 %v3365_v3, %v3277_v61  ;;  %v2145_v35 = vsub.f32 %v2081_v8, %v2113_v33  ;;  %vm2476_vm3 = vweird.f32 %v7599_v45 }
 0x57a   : > { %3313 = vmatmul.bf16.gmra.mxu2 %v3114_v11 }
 0x57b   : > { %3443 = vadd.xlane.f32.xlu1 %v7605_v23  ;;  %v7608_v15 = vadd.f32 1e-05, %v2145_v35  ;;  %v3534_v12 = vmul.f32 %v7605_v23, %v7605_v23  ;;  %v3279_v21 = vpop.f32.mrf.mxu2 }
 0x57c   : > { %v1844_v43 = vpop.xlane.xlu0 %1843  ;;  %v1847_v18 = vpop.xlane.xlu1 %1846  ;;  %v3280_v25 = vadd.f32 %v3279_v21, %v7450_v28 }
 0x57d   : > { %v7612_v4 = vmul.f32 0.00390625, %v1844_v43  ;;  %5003 = vrsqrt.f32 %v7608_v15  ;;  %3571 = vadd.xlane.f32.xlu0 %v3534_v12  ;;  %v7618_v7 = vmul.f32 0.00390625, %v1847_v18  ;;  %vm2486_vm6 = vweird.f32 %v7608_v15 }
 0x57e   : > { %v2036_v2 = vpop.xlane.xlu2 %2035 }
 0x57f   : > { %3402 = vmatmul.bf16.gmra.mxu3 %v3115_v10  ;;  %v5002_v30 = vpop.eup %5001  ;;  %v2114_v63 = vmul.f32 %v7612_v4, %v7612_v4  ;;  %v2082_v37 = vmul.f32 0.00390625, %v2036_v2  ;;  %v2115_v57 = vmul.f32 %v7618_v7, %v7618_v7 }
 0x580   : > { %v2471_v53 = vmul.f32 %v5002_v30, %v7599_v45  ;;  %vm2477_vm2 = vweird.f32 %v5002_v30 }
 0x581   : > { %v2146_v13 = vsub.f32 %v2082_v37, %v2114_v63  ;;  %vm2478_vm5 = vmor %vm2476_vm3, %vm2477_vm2 }
 0x582   : > { %v2472_v48 = vmul.f32 %v5002_v30, %v2471_v53 }
 0x583   : > { %v5004_v29 = vpop.eup %5003  ;;  %v7620_v60 = vadd.f32 1e-05, %v2146_v13  ;;  %v3281_v53 = vpop.f32.mrf.mxu2 }
 0x584   : > { %v1850_v59 = vpop.xlane.xlu1 %1849  ;;  %v2473_v19 = vmul.f32 0.5, %v2472_v48  ;;  %v2481_v51 = vmul.f32 %v5004_v29, %v7608_v15  ;;  %vm2487_vm4 = vweird.f32 %v5004_v29 }
 0x585   : > { %v2039_v39 = vpop.xlane.xlu0 %2038  ;;  %5005 = vrsqrt.f32 %v7620_v60  ;;  %v7631_v61 = vmul.f32 0.00390625, %v1850_v59  ;;  %vm2488_vm7 = vmor %vm2486_vm6, %vm2487_vm4  ;;  %vm2496_vm8 = vweird.f32 %v7620_v60 }
 0x586   : > { %v2083_v11 = vmul.f32 0.00390625, %v2039_v39  ;;  %v2482_v16 = vmul.f32 %v5004_v29, %v2481_v51  ;;  %v2474_v26 = vsub.f32 1.5, %v2473_v19 }
 0x587   : > { %v2116_v48 = vmul.f32 %v7631_v61, %v7631_v61 }
 0x588   : > { %v2147_v55 = vsub.f32 %v2083_v11, %v2115_v57  ;;  %v2483_v40 = vmul.f32 0.5, %v2482_v16  ;;  %v2475_v18 = vmul.f32 %v5002_v30, %v2474_v26  ;;  %v3282_v11 = vadd.f32 %v3281_v53, %v7450_v28 }
 0x58a   : > { %v7629_v47 = vadd.f32 1e-05, %v2147_v55  ;;  %v2484_v8 = vsub.f32 1.5, %v2483_v40  ;;  %v2479_v51 = vsel %vm2478_vm5, %v5002_v30, %v2475_v18 }
 0x58b   : > { %v1853_v50 = vpop.xlane.xlu2 %1852  ;;  %v3368_v33 = vpop.f32.mrf.mxu3 }
 0x58c   : > { %v7626_v34 = vmul.f32 0.00390625, %v1853_v50  ;;  %v7633_v10 = vadd.f32 %v3368_v33, %v3280_v25  ;;  %v7635_v3 = vpop.eup %5005  ;;  %5007 = vrsqrt.f32 %v7629_v47  ;;  %v2485_v21 = vmul.f32 %v5004_v29, %v2484_v8 }
 0x58d   : > { %v2042_v35 = vpop.xlane.xlu0 %2041  ;;  %v2045_v12 = vpop.xlane.xlu1 %2044  ;;  %v2491_v63 = vmul.f32 %v7635_v3, %v7620_v60  ;;  %v2198_v25 = vsub.f32 %v7001_v46, %v7586_v6  ;;  %v2199_v33 = vsub.f32 %v7011_v9, %v7586_v6  ;;  %v2200_v8 = vsub.f32 %v7079_v5, %v7597_v58 }
 0x58e   : > { %v2117_v43 = vmul.f32 %v7626_v34, %v7626_v34  ;;  %3445 = vadd.xlane.f32.xlu1 %v7633_v10  ;;  %v3535_v2 = vmul.f32 %v7633_v10, %v7633_v10  ;;  %v2084_v37 = vmul.f32 0.00390625, %v2042_v35  ;;  %v2085_v13 = vmul.f32 0.00390625, %v2045_v12 }
 0x58f   : > { %v2492_v16 = vmul.f32 %v7635_v3, %v2491_v63  ;;  %v2489_v30 = vsel %vm2488_vm7, %v5004_v29, %v2485_v21  ;;  %v2615_v63 = vmul.f32 %v2479_v51, %v2199_v33  ;;  %vm2497_vm9 = vweird.f32 %v7635_v3 }
 0x590   : > { %3573 = vadd.xlane.f32.xlu0 %v3535_v2  ;;  %v2148_v59 = vsub.f32 %v2084_v37, %v2116_v48  ;;  %v2149_v19 = vsub.f32 %v2085_v13, %v2117_v43  ;;  %v2614_v43 = vmul.f32 %v2479_v51, %v2198_v25  ;;  %v2616_v29 = vmul.f32 %v2489_v30, %v2200_v8  ;;  %vm2498_vm12 = vmor %vm2496_vm8, %vm2497_vm9 }
 0x591   : > { %v2493_v2 = vmul.f32 0.5, %v2492_v16  ;;  %vm2506_vm11 = vweird.f32 %v7629_v47 }
 0x592   : > { %v7650_v57 = vpop.eup %5007  ;;  %v7653_v50 = vadd.f32 1e-05, %v2148_v59  ;;  %v7655_v45 = vadd.f32 1e-05, %v2149_v19  ;;  %v2686_v16 = vmul.f32 %v6505_v17, %v2616_v29 }
 0x593   : > { %v1856_v39 = vpop.xlane.xlu2 %1855  ;;  %v3370_v55 = vpop.f32.mrf.mxu3  ;;  %v2501_v15 = vmul.f32 %v7650_v57, %v7629_v47  ;;  %v2494_v19 = vsub.f32 1.5, %v2493_v2  ;;  %vm2507_vm10 = vweird.f32 %v7650_v57 }
 0x594   : > { %v7657_v26 = vmul.f32 0.00390625, %v1856_v39  ;;  %v7661_v40 = vadd.f32 %v3370_v55, %v3282_v11  ;;  %5009 = vrsqrt.f32 %v7653_v50  ;;  %v9000_v39 = vld [vmem:[#allocation13_spill] sm:$0xff]  ;;  %v2684_v11 = vmul.f32 %v6505_v17, %v2614_v43  ;;  %vm2508_vm13 = vmor %vm2506_vm11, %vm2507_vm10 }
 0x595   : > { %v2048_v35 = vpop.xlane.xlu1 %2047  ;;  %v2502_v18 = vmul.f32 %v7650_v57, %v2501_v15  ;;  %5011 = vrsqrt.f32 %v7655_v45  ;;  %v2201_v59 = vsub.f32 %v9000_v39, %v7597_v58  ;;  %v7705_v29 = vadd.f32 %v6523_v0, %v2686_v16 }
 0x596   : > { %3447 = vadd.xlane.f32.xlu2 %v7661_v40  ;;  %v3536_v46 = vmul.f32 %v7661_v40, %v7661_v40  ;;  %v2086_v9 = vmul.f32 0.00390625, %v2048_v35  ;;  %v2118_v5 = vmul.f32 %v7657_v26, %v7657_v26  ;;  %v2685_v35 = vmul.f32 %v6569_v1, %v2615_v63 }
 0x597   : > { %v2503_v6 = vmul.f32 0.5, %v2502_v18  ;;  %v2617_v33 = vmul.f32 %v2489_v30, %v2201_v59  ;;  %v7699_v18 = vadd.f32 %v6523_v0, %v2684_v11  ;;  %vm2516_vm14 = vweird.f32 %v7653_v50 }
 0x598   : > { %3575 = vadd.xlane.f32.xlu1 %v3536_v46  ;;  %v2150_v13 = vsub.f32 %v2086_v9, %v2118_v5  ;;  %v2495_v46 = vmul.f32 %v7635_v3, %v2494_v19  ;;  %vm2526_vm2 = vweird.f32 %v7655_v45 }
 0x599   : > { %v2504_v25 = vsub.f32 1.5, %v2503_v6  ;;  %v2818_v6 = vmul.f32 0.5, %v7699_v18 }
 0x59a   : > { %v3284_v37 = vpop.f32.mrf.mxu2  ;;  %v7679_v21 = vpop.eup %5009  ;;  %v7696_v43 = vadd.f32 1e-05, %v2150_v13  ;;  %v7715_v13 = vadd.f32 %v6581_v24, %v2685_v35  ;;  %v2499_v60 = vsel %vm2498_vm12, %v7635_v3, %v2495_v46 }
 0x59b   : > { %v1859_v12 = vpop.xlane.xlu0 %1858  ;;  %v7685_v55 = vpop.eup %5011  ;;  %v3285_v8 = vadd.f32 %v3284_v37, %v7450_v28  ;;  %v2511_v58 = vmul.f32 %v7679_v21, %v7653_v50  ;;  %v2505_v2 = vmul.f32 %v7650_v57, %v2504_v25  ;;  %v2820_v37 = vmul.f32 0.5, %v7705_v29  ;;  %v9002_v25 = vld [vmem:[#allocation34_spill] sm:$0xff] }
 0x59c   : > { %v7677_v53 = vmul.f32 0.00390625, %v1859_v12  ;;  %v2521_v12 = vmul.f32 %v7685_v55, %v7655_v45  ;;  %5013 = vrsqrt.f32 %v7696_v43  ;;  %vm2517_vm15 = vweird.f32 %v7679_v21 }
 0x59d   : > { %v2051_v48 = vpop.xlane.xlu2 %2050  ;;  %v2512_v39 = vmul.f32 %v7679_v21, %v2511_v58  ;;  %5015 = vtanh.f32 %v2818_v6  ;;  %v2509_v11 = vsel %vm2508_vm13, %v7650_v57, %v2505_v2  ;;  %v9004_v58 = vld [vmem:[#allocation11_spill] sm:$0xff]  ;;  %vm2527_vm0 = vweird.f32 %v7685_v55  ;;  %vm2518_vm1 = vmor %vm2516_vm14, %vm2517_vm15 }
 0x59e   : > { %v2119_v15 = vmul.f32 %v7677_v53, %v7677_v53  ;;  %v2087_v51 = vmul.f32 0.00390625, %v2051_v48  ;;  %v2687_v48 = vmul.f32 %v6569_v1, %v2617_v33  ;;  %v2522_v59 = vmul.f32 %v7685_v55, %v2521_v12  ;;  %vm2528_vm3 = vmor %vm2526_vm2, %vm2527_vm0 }
 0x59f   : > { %5017 = vtanh.f32 %v2820_v37  ;;  %v2203_v12 = vsub.f32 %v9004_v58, %v7612_v4  ;;  %v2513_v57 = vmul.f32 0.5, %v2512_v39  ;;  %v2208_v50 = vsub.f32 %v7092_v31, %v7626_v34 }
 0x5a0   : > { %v3373_v30 = vpop.f32.mrf.mxu3  ;;  %v2151_v5 = vsub.f32 %v2087_v51, %v2119_v15  ;;  %v7728_v19 = vadd.f32 %v6581_v24, %v2687_v48  ;;  %v2202_v15 = vsub.f32 %v9002_v25, %v7612_v4  ;;  %v9003_v51 = vld [vmem:[#allocation27_spill] sm:$0xff]  ;;  %v2523_v46 = vmul.f32 0.5, %v2522_v59 }
 0x5a1   : > { %v7708_v9 = vadd.f32 %v3373_v30, %v3285_v8  ;;  %v2204_v33 = vsub.f32 %v9003_v51, %v7618_v7  ;;  %v2819_v8 = vmul.f32 0.5, %v7715_v13  ;;  %v9005_v30 = vld [vmem:[#allocation16_spill] sm:$0xff]  ;;  %v2514_v59 = vsub.f32 1.5, %v2513_v57 }
 0x5a2   : > { %v3286_v63 = vpop.f32.mrf.mxu2  ;;  %v7732_v16 = vadd.f32 1e-05, %v2151_v5  ;;  %v2821_v35 = vmul.f32 0.5, %v7728_v19  ;;  %v2205_v2 = vsub.f32 %v9005_v30, %v7618_v7  ;;  %v2618_v5 = vmul.f32 %v2499_v60, %v2202_v15  ;;  %v7745_v48 = vpop.eup %5013 }
 0x5a3   : > { %9001 = vst [vmem:[#allocation2_spill] sm:$0xff] %v7708_v9  ;;  %3449 = vadd.xlane.f32.xlu2 %v7708_v9  ;;  %v3537_v47 = vmul.f32 %v7708_v9, %v7708_v9  ;;  %v3287_v3 = vadd.f32 %v3286_v63, %v7450_v28  ;;  %v2620_v6 = vmul.f32 %v2509_v11, %v2204_v33  ;;  %5019 = vtanh.f32 %v2819_v8  ;;  %v5016_v51 = vpop.eup %5015 }
 0x5a4   : > { %5021 = vrsqrt.f32 %v7732_v16  ;;  %v2621_v4 = vmul.f32 %v2509_v11, %v2205_v2  ;;  %v2524_v7 = vsub.f32 1.5, %v2523_v46  ;;  %v2946_v33 = vmul.f32 0.5, %v5016_v51 }
 0x5a5   : > { %3577 = vadd.xlane.f32.xlu1 %v3537_v47  ;;  %v2619_v47 = vmul.f32 %v2499_v60, %v2203_v12  ;;  %5023 = vtanh.f32 %v2821_v35  ;;  %v5018_v39 = vpop.eup %5017  ;;  %v2531_v60 = vmul.f32 %v7745_v48, %v7696_v43  ;;  %v2688_v58 = vmul.f32 %v6505_v17, %v2618_v5 }
 0x5a6   : > { %v2948_v8 = vmul.f32 0.5, %v5018_v39  ;;  %v2690_v11 = vmul.f32 %v6505_v17, %v2620_v6  ;;  %v3010_v35 = vadd.f32 0.5, %v2946_v33  ;;  %v2691_v2 = vmul.f32 %v6569_v1, %v2621_v4 }
 0x5a7   : > { %v2689_v12 = vmul.f32 %v6569_v1, %v2619_v47  ;;  %v7762_v46 = vadd.f32 %v6523_v0, %v2688_v58  ;;  %v2515_v6 = vmul.f32 %v7679_v21, %v2514_v59  ;;  %vm2536_vm4 = vweird.f32 %v7696_v43 }
 0x5a8   : > { %v3375_v37 = vpop.f32.mrf.mxu3  ;;  %v3012_v57 = vadd.f32 0.5, %v2948_v8  ;;  %v7765_v30 = vadd.f32 %v6523_v0, %v2690_v11  ;;  %v3074_v8 = vmul.f32 %v3010_v35, %v7699_v18  ;;  %v7786_v18 = vadd.f32 %v6581_v24, %v2691_v2 }
 0x5a9   : > { %v7747_v25 = vadd.f32 %v3375_v37, %v3287_v3  ;;  %v5020_v3 = vpop.eup %5019  ;;  %v2525_v37 = vmul.f32 %v7685_v55, %v2524_v7  ;;  %v7777_v11 = vadd.f32 %v6581_v24, %v2689_v12  ;;  %v2822_v7 = vmul.f32 0.5, %v7762_v46 }
 0x5aa   : > { %v7768_v5 = vpop.eup %5021  ;;  %v2947_v39 = vmul.f32 0.5, %v5020_v3  ;;  %v3076_v58 = vmul.f32 %v3012_v57, %v7705_v29  ;;  %v2206_v29 = vsub.f32 %v7064_v32, %v7631_v61  ;;  %v2519_v57 = vsel %vm2518_vm1, %v7679_v21, %v2515_v6 }
 0x5ab   : > { %9006 = vst [vmem:[#allocation36_spill] sm:$0xff] %v7747_v25  ;;  %3451 = vadd.xlane.f32.xlu0 %v7747_v25  ;;  %v3538_v15 = vmul.f32 %v7747_v25, %v7747_v25  ;;  %v5024_v47 = vpop.eup %5023  ;;  %5025 = vtanh.f32 %v2822_v7  ;;  %v2823_v2 = vmul.f32 0.5, %v7777_v11  ;;  %v2825_v32 = vmul.f32 0.5, %v7786_v18 }
 0x5ac   : > { %v2949_v9 = vmul.f32 0.5, %v5024_v47  ;;  %v3011_v59 = vadd.f32 0.5, %v2947_v39  ;;  %v3116_v3 = vpack.c.bf16 %v3076_v58, %v3074_v8  ;;  %v2529_v21 = vsel %vm2528_vm3, %v7685_v55, %v2525_v37  ;;  %v9007_v55 = vld [vmem:[#allocation3_spill] sm:$0xff] }
 0x5ad   : > { %v3289_v63 = vpop.f32.mrf.mxu2  ;;  %3579 = vadd.xlane.f32.xlu2 %v3538_v15  ;;  %v2532_v15 = vmul.f32 %v7745_v48, %v2531_v60  ;;  %v2824_v60 = vmul.f32 0.5, %v7765_v30  ;;  %v2622_v39 = vmul.f32 %v2519_v57, %v2206_v29  ;;  %v2207_v8 = vsub.f32 %v7191_v62, %v7631_v61 }
 0x5ae   : > { %v3290_v51 = vadd.f32 %v3289_v63, %v7450_v28  ;;  %v2541_v63 = vmul.f32 %v7768_v5, %v7732_v16  ;;  %v3013_v12 = vadd.f32 0.5, %v2949_v9  ;;  %3318 = vmatmul.bf16.gmra.mxu2 %v3116_v3  ;;  %v3075_v45 = vmul.f32 %v3011_v59, %v7715_v13 }
 0x5af   : > { %5027 = vtanh.f32 %v2824_v60  ;;  %v2533_v9 = vmul.f32 0.5, %v2532_v15  ;;  %v2624_v58 = vmul.f32 %v2529_v21, %v2208_v50  ;;  %v2209_v37 = vsub.f32 %v9007_v55, %v7626_v34 }
 0x5b0   : > { %v2542_v6 = vmul.f32 %v7768_v5, %v2541_v63  ;;  %5029 = vtanh.f32 %v2823_v2  ;;  %v2623_v3 = vmul.f32 %v2519_v57, %v2207_v8  ;;  %v2692_v62 = vmul.f32 %v6505_v17, %v2622_v39 }
 0x5b1   : > { %5031 = vtanh.f32 %v2825_v32  ;;  %v2534_v15 = vsub.f32 1.5, %v2533_v9  ;;  %v2625_v29 = vmul.f32 %v2529_v21, %v2209_v37  ;;  %vm2537_vm5 = vweird.f32 %v7745_v48 }
 0x5b2   : > { %v3378_v33 = vpop.f32.mrf.mxu3  ;;  %v2543_v59 = vmul.f32 0.5, %v2542_v6  ;;  %v2694_v57 = vmul.f32 %v6505_v17, %v2624_v58  ;;  %v7824_v32 = vadd.f32 %v6523_v0, %v2692_v62  ;;  %vm2538_vm6 = vmor %vm2536_vm4, %vm2537_vm5  ;;  %vm2547_vm7 = vweird.f32 %v7768_v5 }
 0x5b3   : > { %v7779_v4 = vadd.f32 %v3378_v33, %v3290_v51  ;;  %v3077_v51 = vmul.f32 %v3013_v12, %v7728_v19  ;;  %v5026_v19 = vpop.eup %5025  ;;  %v2535_v50 = vmul.f32 %v7745_v48, %v2534_v15  ;;  %vm2546_vm8 = vweird.f32 %v7732_v16 }
 0x5b4   : > { %v2950_v60 = vmul.f32 0.5, %v5026_v19  ;;  %v7829_v6 = vadd.f32 %v6523_v0, %v2694_v57  ;;  %v2826_v39 = vmul.f32 0.5, %v7824_v32  ;;  %v2695_v19 = vmul.f32 %v6569_v1, %v2625_v29  ;;  %vm2548_vm9 = vmor %vm2546_vm8, %vm2547_vm7 }
 0x5b5   : > { %v3291_v25 = vpop.f32.mrf.mxu2  ;;  %3453 = vadd.xlane.f32.xlu0 %v7779_v4  ;;  %v3539_v35 = vmul.f32 %v7779_v4, %v7779_v4  ;;  %v3117_v33 = vpack.c.bf16 %v3077_v51, %v3075_v45  ;;  %v5028_v63 = vpop.eup %5027  ;;  %v2544_v45 = vsub.f32 1.5, %v2543_v59  ;;  %v2212_v16 = vsub.f32 %v7297_v38, %v7677_v53 }
 0x5b6   : > { %v3292_v47 = vadd.f32 %v3291_v25, %v7450_v28  ;;  %v5030_v61 = vpop.eup %5029  ;;  %v2952_v34 = vmul.f32 0.5, %v5028_v63  ;;  %v3014_v12 = vadd.f32 0.5, %v2950_v60  ;;  %v2828_v59 = vmul.f32 0.5, %v7829_v6 }
 0x5b7   : > { %3581 = vadd.xlane.f32.xlu2 %v3539_v35  ;;  %3407 = vmatmul.bf16.gmra.mxu3 %v3117_v33  ;;  %v5032_v35 = vpop.eup %5031  ;;  %v2951_v2 = vmul.f32 0.5, %v5030_v61  ;;  %5033 = vtanh.f32 %v2826_v39  ;;  %v7856_v60 = vadd.f32 %v6581_v24, %v2695_v19 }
 0x5b8   : > { %v3016_v51 = vadd.f32 0.5, %v2952_v34  ;;  %v2953_v9 = vmul.f32 0.5, %v5032_v35  ;;  %5035 = vtanh.f32 %v2828_v59 }
 0x5b9   : > { %v3015_v37 = vadd.f32 0.5, %v2951_v2  ;;  %v2829_v35 = vmul.f32 0.5, %v7856_v60 }
 0x5ba   : > { %v3380_v31 = vpop.f32.mrf.mxu3  ;;  %v3080_v8 = vmul.f32 %v3016_v51, %v7765_v30  ;;  %v3017_v58 = vadd.f32 0.5, %v2953_v9 }
 0x5bb   : > { %v7812_v13 = vadd.f32 %v3380_v31, %v3292_v47  ;;  %v2693_v47 = vmul.f32 %v6569_v1, %v2623_v3  ;;  %v3078_v31 = vmul.f32 %v3014_v12, %v7762_v46  ;;  %v2545_v46 = vmul.f32 %v7768_v5, %v2544_v45 }
 0x5bc   : > { %v3081_v3 = vmul.f32 %v3017_v58, %v7786_v18  ;;  %v3079_v62 = vmul.f32 %v3015_v37, %v7777_v11 }
 0x5bd   : > { %v3294_v7 = vpop.f32.mrf.mxu2  ;;  %3455 = vadd.xlane.f32.xlu1 %v7812_v13  ;;  %v3540_v25 = vmul.f32 %v7812_v13, %v7812_v13  ;;  %v3118_v63 = vpack.c.bf16 %v3080_v8, %v3078_v31  ;;  %v2549_v12 = vsel %vm2548_vm9, %v7768_v5, %v2545_v46  ;;  %v2211_v31 = vsub.f32 %v7268_v52, %v7657_v26  ;;  %v4704_v8 = vld [vmem:[%s8795_s6 + $0x38] sm:$0xff] }
 0x5be   : > { %v3295_v21 = vadd.f32 %v3294_v7, %v7450_v28  ;;  %v3434_v15 = vpop.xlane.xlu0 %3433  ;;  %v2539_v7 = vsel %vm2538_vm6, %v7745_v48, %v2535_v50  ;;  %v2210_v48 = vsub.f32 %v7225_v36, %v7657_v26  ;;  %v5034_v36 = vpop.eup %5033  ;;  %v3119_v57 = vpack.c.bf16 %v3081_v3, %v3079_v62  ;;  %4316 = vmatpush.bf16.msrb.mxu0 %v4704_v8 }
 0x5bf   : > { %3583 = vadd.xlane.f32.xlu0 %v3540_v25  ;;  %v7851_v25 = vadd.f32 %v6581_v24, %v2693_v47  ;;  %3323 = vmatmul.bf16.gmra.mxu2 %v3118_v63  ;;  %v7868_v50 = vmul.f32 0.03125, %v3434_v15  ;;  %v2954_v45 = vmul.f32 0.5, %v5034_v36  ;;  %v5036_v51 = vpop.eup %5035  ;;  %v2628_v5 = vmul.f32 %v2549_v12, %v2212_v16 }
 0x5c0   : > { %v3562_v61 = vpop.xlane.xlu2 %3561  ;;  %v2626_v34 = vmul.f32 %v2539_v7, %v2210_v48  ;;  %v2213_v36 = vsub.f32 %v7289_v56, %v7677_v53 }
 0x5c1   : > { %v2827_v29 = vmul.f32 0.5, %v7851_v25  ;;  %v3657_v19 = vmul.f32 %v7868_v50, %v7868_v50  ;;  %v3625_v37 = vmul.f32 0.03125, %v3562_v61  ;;  %v3018_v15 = vadd.f32 0.5, %v2954_v45 }
 0x5c2   : > { %v3383_v33 = vpop.f32.mrf.mxu3  ;;  %v2696_v58 = vmul.f32 %v6505_v17, %v2626_v34  ;;  %v2698_v62 = vmul.f32 %v6505_v17, %v2628_v5 }
 0x5c3   : > { %v7840_v55 = vadd.f32 %v3383_v33, %v3295_v21  ;;  %5037 = vtanh.f32 %v2827_v29  ;;  %v2956_v33 = vmul.f32 0.5, %v5036_v51 }
 0x5c4   : > { %5039 = vtanh.f32 %v2829_v35  ;;  %v7894_v35 = vadd.f32 %v6523_v0, %v2696_v58 }
 0x5c5   : > { %v3296_v30 = vpop.f32.mrf.mxu2  ;;  %3457 = vadd.xlane.f32.xlu1 %v7840_v55  ;;  %v3541_v43 = vmul.f32 %v7840_v55, %v7840_v55  ;;  %v3020_v59 = vadd.f32 0.5, %v2956_v33 }
 0x5c6   : > { %v3436_v18 = vpop.xlane.xlu1 %3435  ;;  %v3297_v2 = vadd.f32 %v3296_v30, %v7450_v28  ;;  %v4703_v30 = vld [vmem:[%s8795_s6 + $0x30] sm:$0xff]  ;;  %v2830_v33 = vmul.f32 0.5, %v7894_v35 }
 0x5c7   : > { %3585 = vadd.xlane.f32.xlu0 %v3541_v43  ;;  %3412 = vmatmul.bf16.gmra.mxu3 %v3119_v57  ;;  %v7872_v21 = vmul.f32 0.03125, %v3436_v18  ;;  %v2627_v43 = vmul.f32 %v2539_v7, %v2211_v31  ;;  %v3084_v3 = vmul.f32 %v3020_v59, %v7829_v6  ;;  %v3689_v57 = vsub.f32 %v3625_v37, %v3657_v19 }
 0x5c8   : > { %v3564_v39 = vpop.xlane.xlu0 %3563  ;;  %v1865_v18 = vpop.xlane.xlu2 %1864  ;;  %v3082_v7 = vmul.f32 %v3018_v15, %v7824_v32  ;;  %v7900_v6 = vadd.f32 %v6523_v0, %v2698_v62  ;;  %4317 = vmatpush.bf16.msrb.mxu0 %v4703_v30  ;;  %5041 = vtanh.f32 %v2830_v33 }
 0x5c9   : > { %v5038_v46 = vpop.eup %5037  ;;  %v3658_v52 = vmul.f32 %v7872_v21, %v7872_v21  ;;  %v3626_v26 = vmul.f32 0.03125, %v3564_v39  ;;  %v2629_v39 = vmul.f32 %v2549_v12, %v2213_v36  ;;  %v2697_v56 = vmul.f32 %v6569_v1, %v2627_v43 }
 0x5ca   : > { %v3385_v11 = vpop.f32.mrf.mxu3  ;;  %v5040_v63 = vpop.eup %5039  ;;  %v2955_v48 = vmul.f32 0.5, %v5038_v46  ;;  %v7911_v8 = vadd.f32 1e-05, %v3689_v57 }
 0x5cb   : > { %v7870_v9 = vadd.f32 %v3385_v11, %v3297_v2  ;;  %v2957_v29 = vmul.f32 0.5, %v5040_v63  ;;  %v3690_v51 = vsub.f32 %v3626_v26, %v3658_v52  ;;  %v2699_v19 = vmul.f32 %v6569_v1, %v2629_v39  ;;  %v4701_v26 = vld [vmem:[%s8795_s6 + $0x20] sm:$0xff] }
 0x5cc   : > { %v3019_v11 = vadd.f32 0.5, %v2955_v48  ;;  %v7918_v37 = vadd.f32 %v6581_v24, %v2697_v56  ;;  %vm3791_vm12 = vweird.f32 %v7911_v8 }
 0x5cd   : > { %v3299_v47 = vpop.f32.mrf.mxu2  ;;  %3459 = vadd.xlane.f32.xlu2 %v7870_v9  ;;  %v3542_v38 = vmul.f32 %v7870_v9, %v7870_v9  ;;  %v3021_v45 = vadd.f32 0.5, %v2957_v29  ;;  %v7914_v58 = vadd.f32 1e-05, %v3690_v51 }
 0x5ce   : > { %v3300_v61 = vadd.f32 %v3299_v47, %v7450_v28  ;;  %v1862_v34 = vpop.xlane.xlu1 %1861  ;;  %v3120_v47 = vpack.c.bf16 %v3084_v3, %v3082_v7  ;;  %v3083_v12 = vmul.f32 %v3019_v11, %v7851_v25  ;;  %v7926_v25 = vadd.f32 %v6581_v24, %v2699_v19  ;;  %v5042_v29 = vpop.eup %5041 }
 0x5cf   : > { %3587 = vadd.xlane.f32.xlu1 %v3542_v38  ;;  %v3085_v32 = vmul.f32 %v3021_v45, %v7856_v60  ;;  %v2832_v38 = vmul.f32 0.5, %v7900_v6  ;;  %v4702_v60 = vld [vmem:[%s8795_s6 + $0x28] sm:$0xff]  ;;  %v2831_v52 = vmul.f32 0.5, %v7918_v37  ;;  %v7943_v11 = vmul.f32 0.00390625, %v1865_v18 }
 0x5d0   : > { %v2054_v31 = vpop.xlane.xlu0 %2053  ;;  %3328 = vmatmul.bf16.gmra.mxu2 %v3120_v47  ;;  %4318 = vmatpush.bf16.msrb.mxu0 %v4702_v60  ;;  %v3438_v63 = vpop.xlane.xlu2 %3437  ;;  %v2833_v48 = vmul.f32 0.5, %v7926_v25  ;;  %vm3801_vm14 = vweird.f32 %v7914_v58 }
 0x5d1   : > { %v3121_v59 = vpack.c.bf16 %v3085_v32, %v3083_v12  ;;  %5043 = vtanh.f32 %v2832_v38 }
 0x5d2   : > { %v3388_v2 = vpop.f32.mrf.mxu3  ;;  %5045 = vrsqrt.f32 %v7911_v8 }
 0x5d3   : > { %v7902_v16 = vadd.f32 %v3388_v2, %v3300_v61  ;;  %5047 = vrsqrt.f32 %v7914_v58  ;;  %v7939_v61 = vmul.f32 0.00390625, %v1862_v34  ;;  %v2958_v2 = vmul.f32 0.5, %v5042_v29 }
 0x5d4   : > { %5049 = vtanh.f32 %v2831_v52  ;;  %4319 = vmatpush.bf16.msrb.mxu0 %v4701_v26  ;;  %v2121_v52 = vmul.f32 %v7943_v11, %v7943_v11 }
 0x5d5   : > { %v3301_v5 = vpop.f32.mrf.mxu2  ;;  %3461 = vadd.xlane.f32.xlu2 %v7902_v16  ;;  %v3543_v53 = vmul.f32 %v7902_v16, %v7902_v16  ;;  %5051 = vtanh.f32 %v2833_v48  ;;  %v2120_v34 = vmul.f32 %v7939_v61, %v7939_v61  ;;  %v3022_v47 = vadd.f32 0.5, %v2958_v2 }
 0x5d6   : > { %v3302_v15 = vadd.f32 %v3301_v5, %v7450_v28  ;;  %v2057_v43 = vpop.xlane.xlu1 %2056  ;;  %v2088_v5 = vmul.f32 0.00390625, %v2054_v31 }
 0x5d7   : > { %3589 = vadd.xlane.f32.xlu1 %v3543_v53  ;;  %3417 = vmatmul.bf16.gmra.mxu3 %v3121_v59  ;;  %v5044_v36 = vpop.eup %5043  ;;  %v2089_v32 = vmul.f32 0.00390625, %v2057_v43  ;;  %v7956_v59 = vmul.f32 0.03125, %v3438_v63 }
 0x5d8   : > { %v3440_v57 = vpop.xlane.xlu0 %3439  ;;  %v7941_v7 = vpop.eup %5045  ;;  %v2960_v45 = vmul.f32 0.5, %v5044_v36 }
 0x5d9   : > { %v7945_v51 = vpop.eup %5047  ;;  %v7950_v38 = vmul.f32 0.03125, %v3440_v57  ;;  %v3786_v18 = vmul.f32 %v7941_v7, %v7911_v8  ;;  %vm3792_vm10 = vweird.f32 %v7941_v7 }
 0x5da   : > { %v3390_v46 = vpop.f32.mrf.mxu3  ;;  %v5050_v33 = vpop.eup %5049  ;;  %v3024_v53 = vadd.f32 0.5, %v2960_v45  ;;  %v3796_v26 = vmul.f32 %v7945_v51, %v7914_v58  ;;  %v3659_v45 = vmul.f32 %v7956_v59, %v7956_v59  ;;  %vm3802_vm11 = vweird.f32 %v7945_v51  ;;  %vm8038_vm13 = vmor %vm3791_vm12, %vm3792_vm10 }
 0x5db   : > { %v7932_v30 = vadd.f32 %v3390_v46, %v3302_v15  ;;  %v2959_v19 = vmul.f32 0.5, %v5050_v33  ;;  %v5052_v60 = vpop.eup %5051  ;;  %v3086_v46 = vmul.f32 %v3022_v47, %v7894_v35  ;;  %v2153_v35 = vsub.f32 %v2089_v32, %v2121_v52  ;;  %vm8045_vm15 = vmor %vm3801_vm14, %vm3802_vm11 }
 0x5dc   : > { %v3088_v31 = vmul.f32 %v3024_v53, %v7900_v6  ;;  %v2961_v48 = vmul.f32 0.5, %v5052_v60  ;;  %v3660_v6 = vmul.f32 %v7950_v38, %v7950_v38  ;;  %v3787_v57 = vmul.f32 %v7941_v7, %v3786_v18 }
 0x5dd   : > { %v3304_v3 = vpop.f32.mrf.mxu2  ;;  %3463 = vadd.xlane.f32.xlu0 %v7932_v30  ;;  %v3544_v62 = vmul.f32 %v7932_v30, %v7932_v30  ;;  %v3023_v36 = vadd.f32 0.5, %v2959_v19  ;;  %v3797_v32 = vmul.f32 %v7945_v51, %v3796_v26  ;;  %v7981_v19 = vadd.f32 1e-05, %v2153_v35 }
 0x5de   : > { %v3305_v39 = vadd.f32 %v3304_v3, %v7450_v28  ;;  %v2152_v3 = vsub.f32 %v2088_v5, %v2120_v34  ;;  %v3566_v63 = vpop.xlane.xlu1 %3565  ;;  %v3122_v29 = vpack.c.bf16 %v3088_v31, %v3086_v46  ;;  %v3025_v2 = vadd.f32 0.5, %v2961_v48  ;;  %v4700_v34 = vld [vmem:[%s8795_s6 + $0x18] sm:$0xff]  ;;  %v4699_v31 = vld [vmem:[%s8795_s6 + $0x10] sm:$0xff] }
 0x5df   : > { %3591 = vadd.xlane.f32.xlu2 %v3544_v62  ;;  %v3568_v62 = vpop.xlane.xlu2 %3567  ;;  %v3627_v47 = vmul.f32 0.03125, %v3566_v63  ;;  %4320 = vmatpush.bf16.msrb.mxu0 %v4700_v34  ;;  %v3798_v48 = vmul.f32 0.5, %v3797_v32  ;;  %vm2566_vm5 = vweird.f32 %v7981_v19 }
 0x5e0   : > { %3333 = vmatmul.bf16.gmra.mxu2 %v3122_v29  ;;  %v7976_v33 = vadd.f32 1e-05, %v2152_v3  ;;  %v3089_v53 = vmul.f32 %v3025_v2, %v7926_v25  ;;  %v3788_v25 = vmul.f32 0.5, %v3787_v57  ;;  %v4698_v29 = vld [vmem:[%s8795_s6 + $0x8] sm:$0xff] }
 0x5e1   : > { %v3691_v46 = vsub.f32 %v3627_v47, %v3659_v45  ;;  %v4697_v45 = vld [vmem:[%s8795_s6] sm:$0xff] }
 0x5e2   : > { %v3393_v56 = vpop.f32.mrf.mxu3  ;;  %5053 = vrsqrt.f32 %v7976_v33  ;;  %vm2556_vm0 = vweird.f32 %v7976_v33 }
 0x5e3   : > { %v7954_v12 = vadd.f32 %v3393_v56, %v3305_v39  ;;  %v3628_v39 = vmul.f32 0.03125, %v3568_v62  ;;  %v3087_v56 = vmul.f32 %v3023_v36, %v7918_v37  ;;  %v7988_v37 = vadd.f32 1e-05, %v3691_v46  ;;  %4321 = vmatpush.bf16.msrb.mxu0 %v4699_v31 }
 0x5e4   : > { %5055 = vrsqrt.f32 %v7981_v19  ;;  %v3789_v36 = vsub.f32 1.5, %v3788_v25 }
 0x5e5   : > { %v3306_v15 = vpop.f32.mrf.mxu2  ;;  %3465 = vadd.xlane.f32.xlu0 %v7954_v12  ;;  %v3545_v43 = vmul.f32 %v7954_v12, %v7954_v12  ;;  %v3692_v60 = vsub.f32 %v3628_v39, %v3660_v6  ;;  %5057 = vrsqrt.f32 %v7988_v37  ;;  %v3799_v6 = vsub.f32 1.5, %v3798_v48 }
 0x5e6   : > { %v3307_v5 = vadd.f32 %v3306_v15, %v7450_v28  ;;  %v3123_v15 = vpack.c.bf16 %v3089_v53, %v3087_v56  ;;  %vm3811_vm7 = vweird.f32 %v7988_v37 }
 0x5e7   : > { %3593 = vadd.xlane.f32.xlu2 %v3545_v43  ;;  %v3442_v43 = vpop.xlane.xlu0 %3441  ;;  %v7995_v62 = vadd.f32 1e-05, %v3692_v60  ;;  %4322 = vmatpush.bf16.msrb.mxu0 %v4698_v29  ;;  %v3790_v60 = vmul.f32 %v7941_v7, %v3789_v36 }
 0x5e8   : > { %3422 = vmatmul.bf16.gmra.mxu3 %v3123_v15  ;;  %v7998_v63 = vmul.f32 0.03125, %v3442_v43  ;;  %v3570_v57 = vpop.xlane.xlu2 %3569  ;;  %v8008_v39 = vpop.eup %5053  ;;  %v3800_v43 = vmul.f32 %v7945_v51, %v3799_v6 }
 0x5e9   : > { %5059 = vrsqrt.f32 %v7995_v62  ;;  %v3629_v31 = vmul.f32 0.03125, %v3570_v57  ;;  %vm2557_vm1 = vweird.f32 %v8008_v39  ;;  %vm3821_vm10 = vweird.f32 %v7995_v62 }
 0x5ea   : > { %v3395_v18 = vpop.f32.mrf.mxu3  ;;  %v3661_v34 = vmul.f32 %v7998_v63, %v7998_v63  ;;  %v8014_v56 = vpop.eup %5055  ;;  %vm2558_vm4 = vmor %vm2556_vm0, %vm2557_vm1 }
 0x5eb   : > { %v7986_v52 = vadd.f32 %v3395_v18, %v3307_v5  ;;  %v8018_v18 = vpop.eup %5057  ;;  %4323 = vmatpush.bf16.msrb.mxu0 %v4697_v45  ;;  %v3794_v45 = vsel %vm8038_vm13, %v7941_v7, %v3790_v60  ;;  %v3722_v7 = vsub.f32 %v7507_v22, %v7872_v21  ;;  %v5190_v22 = vld [vmem:[%s8794_s5] sm:$0xf]  ;;  %vm2567_vm2 = vweird.f32 %v8014_v56 }
 0x5ec   : > { %v3693_v48 = vsub.f32 %v3629_v31, %v3661_v34  ;;  %v3806_v6 = vmul.f32 %v8018_v18, %v7988_v37  ;;  %v3804_v34 = vsel %vm8045_vm15, %v7945_v51, %v3800_v43  ;;  %v8082_v21 = vperm.slane %v5190_v22, 2  ;;  %vm2568_vm6 = vmor %vm2566_vm5, %vm2567_vm2 }
 0x5ed   : > { %v3309_v3 = vpop.f32.mrf.mxu2  ;;  %3467 = vadd.xlane.f32.xlu1 %v7986_v52  ;;  %v3546_v26 = vmul.f32 %v7986_v52, %v7986_v52  ;;  %vm3812_vm3 = vweird.f32 %v8018_v18  ;;  %v3723_v37 = vsub.f32 %v7568_v41, %v7956_v59 }
 0x5ee   : > { %v3310_v35 = vadd.f32 %v3309_v3, %v7450_v28  ;;  %v3444_v5 = vpop.xlane.xlu1 %3443  ;;  %v2551_v3 = vmul.f32 %v8008_v39, %v7976_v33  ;;  %v3807_v51 = vmul.f32 %v8018_v18, %v3806_v6  ;;  %vm8135_vm9 = vmor %vm3811_vm7, %vm3812_vm3 }
 0x5ef   : > { %3595 = vadd.xlane.f32.xlu0 %v3546_v26  ;;  %v8016_v32 = vmul.f32 0.03125, %v3444_v5  ;;  %v2561_v26 = vmul.f32 %v8014_v56, %v7981_v19  ;;  %v8034_v36 = vpop.eup %5059 }
 0x5f0   : > { %v3572_v15 = vpop.xlane.xlu0 %3571  ;;  %v2552_v58 = vmul.f32 %v8008_v39, %v2551_v3  ;;  %v3816_v31 = vmul.f32 %v8034_v36, %v7995_v62  ;;  %vm3822_vm8 = vweird.f32 %v8034_v36 }
 0x5f1   : > { %v3662_v25 = vmul.f32 %v8016_v32, %v8016_v32  ;;  %v3630_v29 = vmul.f32 0.03125, %v3572_v15  ;;  %vm8157_vm11 = vmor %vm3821_vm10, %vm3822_vm8 }
 0x5f2   : > { %v3398_v2 = vpop.f32.mrf.mxu3  ;;  %v3817_v8 = vmul.f32 %v8034_v36, %v3816_v31 }
 0x5f3   : > { %v8010_v47 = vadd.f32 %v3398_v2, %v3310_v35  ;;  %v3694_v57 = vsub.f32 %v3630_v29, %v3662_v25  ;;  %v3721_v25 = vsub.f32 %v7471_v42, %v7868_v50  ;;  %v2553_v29 = vmul.f32 0.5, %v2552_v58 }
 0x5f4   : > { %v3808_v42 = vmul.f32 0.5, %v3807_v51  ;;  %v8080_v50 = vperm.slane %v5190_v22, 1  ;;  %v3818_v58 = vmul.f32 0.5, %v3817_v8 }
 0x5f5   : > { %v3311_v53 = vpop.f32.mrf.mxu2  ;;  %3469 = vadd.xlane.f32.xlu1 %v8010_v47  ;;  %v3547_v46 = vmul.f32 %v8010_v47, %v8010_v47  ;;  %v8069_v43 = vadd.f32 1e-05, %v3694_v57  ;;  %v4105_v3 = vmul.f32 %v3794_v45, %v3721_v25 }
 0x5f6   : > { %v3312_v2 = vadd.f32 %v3311_v53, %v7450_v28  ;;  %v8062_v53 = vadd.f32 1e-05, %v3693_v48  ;;  %v3809_v31 = vsub.f32 1.5, %v3808_v42 }
 0x5f7   : > { %3597 = vadd.xlane.f32.xlu0 %v3547_v46  ;;  %v2562_v46 = vmul.f32 %v8014_v56, %v2561_v26  ;;  %v4106_v26 = vmul.f32 %v3804_v34, %v3722_v7  ;;  %v4138_v45 = vmul.f32 %v8080_v50, %v4105_v3  ;;  %v2217_v3 = vsub.f32 %v7504_v27, %v7943_v11 }
 0x5f8   : > { %5061 = vrsqrt.f32 %v8062_v53  ;;  %v3819_v27 = vsub.f32 1.5, %v3818_v58  ;;  %v2214_v58 = vsub.f32 %v7514_v49, %v7939_v61  ;;  %vm3841_vm14 = vweird.f32 %v8069_v43 }
 0x5f9   : > { %v2563_v35 = vmul.f32 0.5, %v2562_v46  ;;  %5063 = vrsqrt.f32 %v8069_v43  ;;  %v4139_v34 = vmul.f32 %v8080_v50, %v4106_v26  ;;  %v4171_v7 = vadd.f32 %v8082_v21, %v4138_v45 }
 0x5fa   : > { %v3400_v5 = vpop.f32.mrf.mxu3  ;;  %vm3831_vm15 = vweird.f32 %v8062_v53 }
 0x5fb   : > { %v8060_v15 = vadd.f32 %v3400_v5, %v3312_v2  ;;  %v2554_v2 = vsub.f32 1.5, %v2553_v29  ;;  %v2564_v46 = vsub.f32 1.5, %v2563_v35  ;;  %v4172_v51 = vadd.f32 %v8082_v21, %v4139_v34 }
 0x5fc   : > { %5065 = vtanh.f32 %v4171_v7 }
 0x5fd   : > { %v3314_v60 = vpop.f32.mrf.mxu2  ;;  %3471 = vadd.xlane.f32.xlu2 %v8060_v15  ;;  %v3548_v48 = vmul.f32 %v8060_v15, %v8060_v15  ;;  %v2555_v29 = vmul.f32 %v8008_v39, %v2554_v2  ;;  %5067 = vtanh.f32 %v4172_v51  ;;  %v2565_v22 = vmul.f32 %v8014_v56, %v2564_v46 }
 0x5fe   : > { %v3315_v6 = vadd.f32 %v3314_v60, %v7450_v28  ;;  %v2216_v60 = vsub.f32 %v7491_v44, %v7943_v11  ;;  %v2215_v46 = vsub.f32 %v7534_v54, %v7939_v61 }
 0x5ff   : > { %3599 = vadd.xlane.f32.xlu1 %v3548_v48  ;;  %v8091_v48 = vpop.eup %5061  ;;  %v2569_v7 = vsel %vm2568_vm6, %v8014_v56, %v2565_v22 }
 0x600   : > { %v8100_v26 = vpop.eup %5063  ;;  %v2632_v22 = vmul.f32 %v2569_v7, %v2216_v60  ;;  %vm3832_vm12 = vweird.f32 %v8091_v48 }
 0x601   : > { %v3446_v25 = vpop.xlane.xlu1 %3445  ;;  %v3836_v45 = vmul.f32 %v8100_v26, %v8069_v43  ;;  %vm3842_vm13 = vweird.f32 %v8100_v26  ;;  %vm8222_vm1 = vmor %vm3831_vm15, %vm3832_vm12 }
 0x602   : > { %v3403_v57 = vpop.f32.mrf.mxu3  ;;  %v8105_v42 = vmul.f32 0.03125, %v3446_v25  ;;  %v3820_v25 = vmul.f32 %v8034_v36, %v3819_v27  ;;  %v5066_v61 = vpop.eup %5065  ;;  %vm8216_vm0 = vmor %vm3841_vm14, %vm3842_vm13 }
 0x603   : > { %v8087_v5 = vadd.f32 %v3403_v57, %v3315_v6  ;;  %v3574_v44 = vpop.xlane.xlu0 %3573  ;;  %v3810_v6 = vmul.f32 %v8018_v18, %v3809_v31  ;;  %v3826_v57 = vmul.f32 %v8091_v48, %v8062_v53  ;;  %v2559_v31 = vsel %vm2558_vm4, %v8008_v39, %v2555_v29  ;;  %v5068_v29 = vpop.eup %5067 }
 0x604   : > { %v3631_v11 = vmul.f32 0.03125, %v3574_v44  ;;  %v3663_v2 = vmul.f32 %v8105_v42, %v8105_v42  ;;  %v2630_v59 = vmul.f32 %v2559_v31, %v2214_v58  ;;  %v2631_v56 = vmul.f32 %v2559_v31, %v2215_v46 }
 0x605   : > { %3473 = vadd.xlane.f32.xlu2 %v8087_v5  ;;  %v3316_v35 = vpop.f32.mrf.mxu2  ;;  %v3549_v8 = vmul.f32 %v8087_v5, %v8087_v5  ;;  %v3814_v39 = vsel %vm8135_vm9, %v8018_v18, %v3810_v6  ;;  %v4235_v27 = vpack.c.bf16 %v5068_v29, %v5066_v61  ;;  %v3824_v6 = vsel %vm8157_vm11, %v8034_v36, %v3820_v25 }
 0x606   : > { %v3317_v34 = vadd.f32 %v3316_v35, %v7450_v28  ;;  %v3695_v33 = vsub.f32 %v3631_v11, %v3663_v2  ;;  %v3827_v35 = vmul.f32 %v8091_v48, %v3826_v57  ;;  %v4107_v58 = vmul.f32 %v3814_v39, %v3723_v37 }
 0x607   : > { %3601 = vadd.xlane.f32.xlu1 %v3549_v8  ;;  %v3837_v8 = vmul.f32 %v8100_v26, %v3836_v45  ;;  %v2633_v45 = vmul.f32 %v2569_v7, %v2217_v3  ;;  %4324 = vmatmul.bf16.vlgmr.msrb.gmra.mxu0 %v4235_v27  ;;  %v2700_v36 = vmul.f32 %v6505_v17, %v2630_v59 }
 0x608   : > { %v8161_v18 = vadd.f32 1e-05, %v3695_v33  ;;  %v3828_v46 = vmul.f32 0.5, %v3827_v35  ;;  %v2702_v25 = vmul.f32 %v6505_v17, %v2632_v22  ;;  %v2701_v49 = vmul.f32 %v6569_v1, %v2631_v56 }
 0x609   : > { %v3448_v51 = vpop.xlane.xlu2 %3447  ;;  %v3838_v33 = vmul.f32 0.5, %v3837_v8  ;;  %v2703_v3 = vmul.f32 %v6569_v1, %v2633_v45  ;;  %v8180_v37 = vadd.f32 %v6523_v0, %v2700_v36 }
 0x60a   : > { %v3405_v19 = vpop.f32.mrf.mxu3  ;;  %v8153_v41 = vmul.f32 0.03125, %v3448_v51  ;;  %5069 = vrsqrt.f32 %v8161_v18  ;;  %v8183_v7 = vadd.f32 %v6523_v0, %v2702_v25  ;;  %v8186_v39 = vadd.f32 %v6581_v24, %v2701_v49 }
 0x60b   : > { %v8139_v54 = vadd.f32 %v3405_v19, %v3317_v34  ;;  %v3576_v11 = vpop.xlane.xlu1 %3575  ;;  %v3724_v34 = vsub.f32 %v7577_v20, %v7950_v38  ;;  %v4140_v20 = vmul.f32 %v8080_v50, %v4107_v58  ;;  %v3829_v38 = vsub.f32 1.5, %v3828_v46 }
 0x60c   : > { %v3664_v2 = vmul.f32 %v8153_v41, %v8153_v41  ;;  %v3632_v57 = vmul.f32 0.03125, %v3576_v11  ;;  %v3839_v61 = vsub.f32 1.5, %v3838_v33  ;;  %v8189_v17 = vadd.f32 %v6581_v24, %v2703_v3 }
 0x60d   : > { %3475 = vadd.xlane.f32.xlu0 %v8139_v54  ;;  %v3550_v44 = vmul.f32 %v8139_v54, %v8139_v54  ;;  %v4108_v31 = vmul.f32 %v3824_v6, %v3724_v34  ;;  %v4173_v51 = vadd.f32 %v8082_v21, %v4140_v20  ;;  %v2834_v8 = vmul.f32 0.5, %v8180_v37 }
 0x60e   : > { %v3696_v19 = vsub.f32 %v3632_v57, %v3664_v2  ;;  %v3830_v0 = vmul.f32 %v8091_v48, %v3829_v38  ;;  %v2835_v24 = vmul.f32 0.5, %v8186_v39  ;;  %v3840_v56 = vmul.f32 %v8100_v26, %v3839_v61 }
 0x60f   : > { %3603 = vadd.xlane.f32.xlu2 %v3550_v44  ;;  %v4141_v1 = vmul.f32 %v8080_v50, %v4108_v31  ;;  %v2836_v44 = vmul.f32 0.5, %v8183_v7  ;;  %v2837_v27 = vmul.f32 0.5, %v8189_v17  ;;  %v3725_v25 = vsub.f32 %v7592_v14, %v7998_v63 }
 0x610   : > { %v8171_v60 = vadd.f32 1e-05, %v3696_v19  ;;  %v8193_v29 = vpop.eup %5069  ;;  %v3844_v43 = vsel %vm8216_vm0, %v8100_v26, %v3840_v56  ;;  %v3834_v53 = vsel %vm8222_vm1, %v8091_v48, %v3830_v0  ;;  %v3726_v19 = vsub.f32 %v7605_v23, %v8016_v32 }
 0x611   : > { %v4174_v2 = vadd.f32 %v8082_v21, %v4141_v1  ;;  %v3846_v57 = vmul.f32 %v8193_v29, %v8161_v18  ;;  %v4109_v48 = vmul.f32 %v3834_v53, %v3725_v25  ;;  %vm3852_vm3 = vweird.f32 %v8193_v29 }
 0x612   : > { %5071 = vrsqrt.f32 %v8171_v60  ;;  %v4110_v20 = vmul.f32 %v3844_v43, %v3726_v19  ;;  %vm3861_vm4 = vweird.f32 %v8171_v60  ;;  %vm3851_vm6 = vweird.f32 %v8161_v18 }
 0x613   : > { %5073 = vtanh.f32 %v2834_v8  ;;  %v3847_v49 = vmul.f32 %v8193_v29, %v3846_v57  ;;  %v4142_v43 = vmul.f32 %v8080_v50, %v4109_v48  ;;  %vm3853_vm7 = vmor %vm3851_vm6, %vm3852_vm3 }
 0x614   : > { %5075 = vtanh.f32 %v4173_v51 }
 0x615   : > { %5077 = vtanh.f32 %v2836_v44  ;;  %v3848_v44 = vmul.f32 0.5, %v3847_v49  ;;  %v4175_v48 = vadd.f32 %v8082_v21, %v4142_v43 }
 0x616   : > { %v3450_v35 = vpop.xlane.xlu2 %3449  ;;  %5079 = vtanh.f32 %v2835_v24 }
 0x617   : > { %v8199_v59 = vmul.f32 0.03125, %v3450_v35  ;;  %5081 = vtanh.f32 %v2837_v27 }
 0x618   : > { %v3578_v62 = vpop.xlane.xlu1 %3577  ;;  %v8205_v11 = vpop.eup %5071  ;;  %5083 = vtanh.f32 %v4174_v2 }
 0x619   : > { %v3665_v22 = vmul.f32 %v8199_v59, %v8199_v59  ;;  %v3633_v6 = vmul.f32 0.03125, %v3578_v62  ;;  %v3856_v45 = vmul.f32 %v8205_v11, %v8171_v60  ;;  %v5074_v36 = vpop.eup %5073  ;;  %vm3862_vm2 = vweird.f32 %v8205_v11 }
 0x61a   : > { %v5076_v3 = vpop.eup %5075  ;;  %v2962_v61 = vmul.f32 0.5, %v5074_v36  ;;  %vm3863_vm5 = vmor %vm3861_vm4, %vm3862_vm2 }
 0x61b   : > { %v3697_v58 = vsub.f32 %v3633_v6, %v3665_v22  ;;  %v3857_v33 = vmul.f32 %v8205_v11, %v3856_v45  ;;  %v5078_v1 = vpop.eup %5077  ;;  %v4143_v22 = vmul.f32 %v8080_v50, %v4110_v20 }
 0x61c   : > { %v5080_v23 = vpop.eup %5079  ;;  %v2964_v8 = vmul.f32 0.5, %v5078_v1  ;;  %v3026_v14 = vadd.f32 0.5, %v2962_v61 }
 0x61d   : > { %v8235_v31 = vadd.f32 1e-05, %v3697_v58  ;;  %v3858_v51 = vmul.f32 0.5, %v3857_v33  ;;  %v5082_v63 = vpop.eup %5081  ;;  %v2963_v0 = vmul.f32 0.5, %v5080_v23  ;;  %v3849_v33 = vsub.f32 1.5, %v3848_v44 }
 0x61e   : > { %v3452_v26 = vpop.xlane.xlu0 %3451  ;;  %v5084_v56 = vpop.eup %5083  ;;  %v3028_v62 = vadd.f32 0.5, %v2964_v8  ;;  %v2965_v27 = vmul.f32 0.5, %v5082_v63  ;;  %v3090_v34 = vmul.f32 %v3026_v14, %v8180_v37  ;;  %v4176_v37 = vadd.f32 %v8082_v21, %v4143_v22 }
 0x61f   : > { %v8240_v38 = vmul.f32 0.03125, %v3452_v26  ;;  %5085 = vrsqrt.f32 %v8235_v31  ;;  %v3859_v6 = vsub.f32 1.5, %v3858_v51  ;;  %v3027_v2 = vadd.f32 0.5, %v2963_v0 }
 0x620   : > { %v3580_v35 = vpop.xlane.xlu2 %3579  ;;  %v4236_v57 = vpack.c.bf16 %v5084_v56, %v5076_v3  ;;  %v3092_v58 = vmul.f32 %v3028_v62, %v8183_v7  ;;  %v3029_v46 = vadd.f32 0.5, %v2965_v27  ;;  %v3727_v0 = vsub.f32 %v7633_v10, %v8105_v42 }
 0x621   : > { %v3666_v32 = vmul.f32 %v8240_v38, %v8240_v38  ;;  %v3634_v24 = vmul.f32 0.03125, %v3580_v35  ;;  %v3091_v53 = vmul.f32 %v3027_v2, %v8186_v39  ;;  %v3860_v7 = vmul.f32 %v8205_v11, %v3859_v6 }
 0x622   : > { %4329 = vmatmul.bf16.gmra.mxu0 %v4236_v57  ;;  %v3124_v49 = vpack.c.bf16 %v3092_v58, %v3090_v34  ;;  %v3093_v26 = vmul.f32 %v3029_v46, %v8189_v17  ;;  %v3850_v17 = vmul.f32 %v8193_v29, %v3849_v33  ;;  %vm3871_vm12 = vweird.f32 %v8235_v31 }
 0x623   : > { %v3698_v45 = vsub.f32 %v3634_v24, %v3666_v32  ;;  %v3864_v23 = vsel %vm3863_vm5, %v8205_v11, %v3860_v7  ;;  %v3728_v32 = vsub.f32 %v7661_v40, %v8153_v41 }
 0x624   : > { %3338 = vmatmul.bf16.gmra.mxu2 %v3124_v49  ;;  %v3125_v20 = vpack.c.bf16 %v3093_v26, %v3091_v53  ;;  %v3854_v60 = vsel %vm3853_vm7, %v8193_v29, %v3850_v17 }
 0x625   : > { %v8250_v19 = vadd.f32 1e-05, %v3698_v45  ;;  %v8252_v25 = vpop.eup %5085  ;;  %v4112_v24 = vmul.f32 %v3864_v23, %v3728_v32  ;;  %v4111_v56 = vmul.f32 %v3854_v60, %v3727_v0 }
 0x626   : > { %v3866_v51 = vmul.f32 %v8252_v25, %v8235_v31  ;;  %3427 = vmatmul.bf16.gmra.mxu3 %v3125_v20  ;;  %vm3872_vm9 = vweird.f32 %v8252_v25  ;;  %v9025_v31 = vld [vmem:[#allocation2_spill] sm:$0xff] }
 0x627   : > { %5087 = vrsqrt.f32 %v8250_v19  ;;  %v4145_v10 = vmul.f32 %v8080_v50, %v4112_v24  ;;  %v4144_v58 = vmul.f32 %v8080_v50, %v4111_v56  ;;  %vm3881_vm10 = vweird.f32 %v8250_v19  ;;  %vm8312_vm13 = vmor %vm3871_vm12, %vm3872_vm9 }
 0x628   : > { %v3454_v36 = vpop.xlane.xlu0 %3453  ;;  %5089 = vtanh.f32 %v4176_v37  ;;  %v3867_v63 = vmul.f32 %v8252_v25, %v3866_v51 }
 0x629   : > { %v8255_v3 = vmul.f32 0.03125, %v3454_v36  ;;  %5091 = vtanh.f32 %v4175_v48  ;;  %v4178_v26 = vadd.f32 %v8082_v21, %v4145_v10 }
 0x62a   : > { %v3582_v39 = vpop.xlane.xlu2 %3581  ;;  %v3868_v22 = vmul.f32 0.5, %v3867_v63 }
 0x62b   : > { %v3667_v61 = vmul.f32 %v8255_v3, %v8255_v3  ;;  %v3635_v1 = vmul.f32 0.03125, %v3582_v39 }
 0x62c   : > { %v3869_v46 = vsub.f32 1.5, %v3868_v22 }
 0x62d   : > { %v3699_v35 = vsub.f32 %v3635_v1, %v3667_v61  ;;  %v5088_v14 = vpop.eup %5087  ;;  %v4177_v1 = vadd.f32 %v8082_v21, %v4144_v58 }
 0x62e   : > { %v3876_v18 = vmul.f32 %v5088_v14, %v8250_v19  ;;  %v5090_v41 = vpop.eup %5089  ;;  %vm3882_vm8 = vweird.f32 %v5088_v14  ;;  %v3870_v48 = vmul.f32 %v8252_v25, %v3869_v46  ;;  %v9024_v19 = vld [vmem:[#allocation36_spill] sm:$0xff] }
 0x62f   : > { %v8273_v8 = vadd.f32 1e-05, %v3699_v35  ;;  %v5092_v6 = vpop.eup %5091  ;;  %vm8304_vm11 = vmor %vm3881_vm10, %vm3882_vm8  ;;  %v3730_v63 = vsub.f32 %v9024_v19, %v8240_v38 }
 0x630   : > { %v3456_v44 = vpop.xlane.xlu1 %3455  ;;  %v3877_v62 = vmul.f32 %v5088_v14, %v3876_v18  ;;  %v4237_v42 = vpack.c.bf16 %v5090_v41, %v5092_v6  ;;  %v3729_v18 = vsub.f32 %v9025_v31, %v8199_v59 }
 0x631   : > { %5093 = vrsqrt.f32 %v8273_v8  ;;  %v8281_v11 = vmul.f32 0.03125, %v3456_v44  ;;  %v3319_v49 = vpop.f32.mrf.mxu2  ;;  %vm3891_vm1 = vweird.f32 %v8273_v8 }
 0x632   : > { %v3584_v40 = vpop.xlane.xlu0 %3583  ;;  %v3878_v2 = vmul.f32 0.5, %v3877_v62  ;;  %4334 = vmatmul.bf16.gmra.mxu0 %v4237_v42  ;;  %v3320_v61 = vadd.f32 %v3319_v49, %v7450_v28 }
 0x633   : > { %v3636_v27 = vmul.f32 0.03125, %v3584_v40  ;;  %v3668_v29 = vmul.f32 %v8281_v11, %v8281_v11 }
 0x634   : > { %v3879_v34 = vsub.f32 1.5, %v3878_v2 }
 0x635   : > { %v3700_v57 = vsub.f32 %v3636_v27, %v3668_v29 }
 0x636   : > { %v3880_v37 = vmul.f32 %v5088_v14, %v3879_v34 }
 0x637   : > { %v8286_v45 = vpop.eup %5093  ;;  %v8289_v43 = vadd.f32 1e-05, %v3700_v57 }
 0x638   : > { %v3458_v33 = vpop.xlane.xlu1 %3457  ;;  %v3886_v53 = vmul.f32 %v8286_v45, %v8273_v8  ;;  %v3884_v23 = vsel %vm8304_vm11, %v5088_v14, %v3880_v37  ;;  %v3874_v14 = vsel %vm8312_vm13, %v8252_v25, %v3870_v48  ;;  %vm3892_vm14 = vweird.f32 %v8286_v45 }
 0x639   : > { %v8293_v36 = vmul.f32 0.03125, %v3458_v33  ;;  %5095 = vrsqrt.f32 %v8289_v43  ;;  %v4114_v41 = vmul.f32 %v3884_v23, %v3730_v63  ;;  %v3321_v62 = vpop.f32.mrf.mxu2  ;;  %v4113_v6 = vmul.f32 %v3874_v14, %v3729_v18  ;;  %vm8370_vm3 = vmor %vm3891_vm1, %vm3892_vm14 }
 0x63a   : > { %v3586_v7 = vpop.xlane.xlu0 %3585  ;;  %v3887_v51 = vmul.f32 %v8286_v45, %v3886_v53  ;;  %5097 = vtanh.f32 %v4178_v26  ;;  %v3408_v32 = vpop.f32.mrf.mxu3  ;;  %v3322_v10 = vadd.f32 %v3321_v62, %v7450_v28  ;;  %vm3901_vm0 = vweird.f32 %v8289_v43 }
 0x63b   : > { %v3669_v39 = vmul.f32 %v8293_v36, %v8293_v36  ;;  %v3637_v20 = vmul.f32 0.03125, %v3586_v7  ;;  %v8320_v0 = vadd.f32 %v3408_v32, %v3320_v61  ;;  %5099 = vtanh.f32 %v4177_v1 }
 0x63c   : > { %v3888_v56 = vmul.f32 0.5, %v3887_v51  ;;  %v4147_v46 = vmul.f32 %v8080_v50, %v4114_v41  ;;  %v3732_v41 = vsub.f32 %v7812_v13, %v8281_v11 }
 0x63d   : > { %v3701_v35 = vsub.f32 %v3637_v20, %v3669_v39  ;;  %3477 = vadd.xlane.f32.xlu0 %v8320_v0  ;;  %v3551_v59 = vmul.f32 %v8320_v0, %v8320_v0  ;;  %v4146_v39 = vmul.f32 %v8080_v50, %v4113_v6 }
 0x63e   : > { %v3889_v34 = vsub.f32 1.5, %v3888_v56 }
 0x63f   : > { %v8318_v44 = vadd.f32 1e-05, %v3701_v35  ;;  %v8322_v24 = vpop.eup %5095  ;;  %3605 = vadd.xlane.f32.xlu2 %v3551_v59  ;;  %v4180_v35 = vadd.f32 %v8082_v21, %v4147_v46  ;;  %v4179_v18 = vadd.f32 %v8082_v21, %v4146_v39 }
 0x640   : > { %v3460_v40 = vpop.xlane.xlu2 %3459  ;;  %v3896_v38 = vmul.f32 %v8322_v24, %v8289_v43  ;;  %v5098_v29 = vpop.eup %5097  ;;  %v3890_v1 = vmul.f32 %v8286_v45, %v3889_v34  ;;  %vm3902_vm15 = vweird.f32 %v8322_v24 }
 0x641   : > { %5101 = vrsqrt.f32 %v8318_v44  ;;  %v8333_v27 = vmul.f32 0.03125, %v3460_v40  ;;  %v5100_v57 = vpop.eup %5099  ;;  %vm3903_vm2 = vmor %vm3901_vm0, %vm3902_vm15  ;;  %vm3911_vm7 = vweird.f32 %v8318_v44 }
 0x642   : > { %v3588_v22 = vpop.xlane.xlu1 %3587  ;;  %v3897_v25 = vmul.f32 %v8322_v24, %v3896_v38  ;;  %v4238_v33 = vpack.c.bf16 %v5098_v29, %v5100_v57  ;;  %v3410_v49 = vpop.f32.mrf.mxu3  ;;  %v3894_v8 = vsel %vm8370_vm3, %v8286_v45, %v3890_v1  ;;  %v3731_v29 = vsub.f32 %v7779_v4, %v8255_v3 }
 0x643   : > { %v3638_v2 = vmul.f32 0.03125, %v3588_v22  ;;  %v3670_v42 = vmul.f32 %v8333_v27, %v8333_v27  ;;  %v8344_v7 = vadd.f32 %v3410_v49, %v3322_v10  ;;  %v3324_v51 = vpop.f32.mrf.mxu2 }
 0x644   : > { %v3898_v58 = vmul.f32 0.5, %v3897_v25  ;;  %4339 = vmatmul.bf16.gmra.mxu0 %v4238_v33  ;;  %v3325_v31 = vadd.f32 %v3324_v51, %v7450_v28  ;;  %v4115_v25 = vmul.f32 %v3894_v8, %v3731_v29 }
 0x645   : > { %v3702_v53 = vsub.f32 %v3638_v2, %v3670_v42  ;;  %3479 = vadd.xlane.f32.xlu1 %v8344_v7  ;;  %v3552_v17 = vmul.f32 %v8344_v7, %v8344_v7 }
 0x646   : > { %v3899_v37 = vsub.f32 1.5, %v3898_v58  ;;  %v4148_v51 = vmul.f32 %v8080_v50, %v4115_v25 }
 0x647   : > { %v8342_v26 = vpop.eup %5101  ;;  %v8348_v20 = vadd.f32 1e-05, %v3702_v53  ;;  %3607 = vadd.xlane.f32.xlu0 %v3552_v17 }
 0x648   : > { %v3462_v61 = vpop.xlane.xlu2 %3461  ;;  %v3900_v23 = vmul.f32 %v8322_v24, %v3899_v37  ;;  %v3906_v32 = vmul.f32 %v8342_v26, %v8318_v44  ;;  %vm3912_vm4 = vweird.f32 %v8342_v26 }
 0x649   : > { %v8351_v48 = vmul.f32 0.03125, %v3462_v61  ;;  %5103 = vrsqrt.f32 %v8348_v20  ;;  %vm3921_vm6 = vweird.f32 %v8348_v20  ;;  %vm8430_vm9 = vmor %vm3911_vm7, %vm3912_vm4 }
 0x64a   : > { %v3590_v60 = vpop.xlane.xlu1 %3589  ;;  %5105 = vtanh.f32 %v4180_v35  ;;  %v3904_v56 = vsel %vm3903_vm2, %v8322_v24, %v3900_v23  ;;  %v3907_v38 = vmul.f32 %v8342_v26, %v3906_v32  ;;  %v3413_v62 = vpop.f32.mrf.mxu3 }
 0x64b   : > { %v3671_v19 = vmul.f32 %v8351_v48, %v8351_v48  ;;  %v3639_v63 = vmul.f32 0.03125, %v3590_v60  ;;  %v8383_v22 = vadd.f32 %v3413_v62, %v3325_v31  ;;  %5107 = vtanh.f32 %v4179_v18  ;;  %v3326_v6 = vpop.f32.mrf.mxu2 }
 0x64c   : > { %v4116_v11 = vmul.f32 %v3904_v56, %v3732_v41  ;;  %v3908_v45 = vmul.f32 0.5, %v3907_v38  ;;  %v3327_v3 = vadd.f32 %v3326_v6, %v7450_v28  ;;  %v4181_v62 = vadd.f32 %v8082_v21, %v4148_v51 }
 0x64d   : > { %v3703_v14 = vsub.f32 %v3639_v63, %v3671_v19  ;;  %3481 = vadd.xlane.f32.xlu1 %v8383_v22  ;;  %v3553_v42 = vmul.f32 %v8383_v22, %v8383_v22 }
 0x64e   : > { %v4149_v53 = vmul.f32 %v8080_v50, %v4116_v11  ;;  %v3909_v49 = vsub.f32 1.5, %v3908_v45  ;;  %v3734_v11 = vsub.f32 %v7870_v9, %v8333_v27 }
 0x64f   : > { %v8381_v43 = vadd.f32 1e-05, %v3703_v14  ;;  %v8385_v59 = vpop.eup %5103  ;;  %3609 = vadd.xlane.f32.xlu0 %v3553_v42 }
 0x650   : > { %v3464_v13 = vpop.xlane.xlu0 %3463  ;;  %v3916_v24 = vmul.f32 %v8385_v59, %v8348_v20  ;;  %v5106_v57 = vpop.eup %5105  ;;  %v4182_v31 = vadd.f32 %v8082_v21, %v4149_v53  ;;  %v3910_v18 = vmul.f32 %v8342_v26, %v3909_v49  ;;  %vm3922_vm5 = vweird.f32 %v8385_v59 }
 0x651   : > { %v8392_v2 = vmul.f32 0.03125, %v3464_v13  ;;  %5109 = vrsqrt.f32 %v8381_v43  ;;  %v5108_v46 = vpop.eup %5107  ;;  %vm3923_vm8 = vmor %vm3921_vm6, %vm3922_vm5  ;;  %vm3931_vm14 = vweird.f32 %v8381_v43 }
 0x652   : > { %v3592_v10 = vpop.xlane.xlu2 %3591  ;;  %v3917_v34 = vmul.f32 %v8385_v59, %v3916_v24  ;;  %v4239_v37 = vpack.c.bf16 %v5106_v57, %v5108_v46  ;;  %v3415_v61 = vpop.f32.mrf.mxu3  ;;  %v3914_v6 = vsel %vm8430_vm9, %v8342_v26, %v3910_v18 }
 0x653   : > { %v3640_v4 = vmul.f32 0.03125, %v3592_v10  ;;  %v3672_v58 = vmul.f32 %v8392_v2, %v8392_v2  ;;  %v8402_v17 = vadd.f32 %v3415_v61, %v3327_v3  ;;  %v3329_v63 = vpop.f32.mrf.mxu2  ;;  %v3733_v10 = vsub.f32 %v7840_v55, %v8293_v36 }
 0x654   : > { %v3918_v33 = vmul.f32 0.5, %v3917_v34  ;;  %4344 = vmatmul.bf16.gmra.mxu0 %v4239_v37  ;;  %v3330_v38 = vadd.f32 %v3329_v63, %v7450_v28 }
 0x655   : > { %v3704_v39 = vsub.f32 %v3640_v4, %v3672_v58  ;;  %3483 = vadd.xlane.f32.xlu2 %v8402_v17  ;;  %v3554_v19 = vmul.f32 %v8402_v17, %v8402_v17  ;;  %v4117_v57 = vmul.f32 %v3914_v6, %v3733_v10 }
 0x656   : > { %v3919_v1 = vsub.f32 1.5, %v3918_v33 }
 0x657   : > { %v8405_v35 = vadd.f32 1e-05, %v3704_v39  ;;  %v8407_v32 = vpop.eup %5109  ;;  %3611 = vadd.xlane.f32.xlu1 %v3554_v19  ;;  %v4150_v63 = vmul.f32 %v8080_v50, %v4117_v57 }
 0x658   : > { %v3466_v23 = vpop.xlane.xlu0 %3465  ;;  %v3920_v14 = vmul.f32 %v8385_v59, %v3919_v1  ;;  %v3926_v8 = vmul.f32 %v8407_v32, %v8381_v43  ;;  %vm3932_vm11 = vweird.f32 %v8407_v32 }
 0x659   : > { %v8410_v60 = vmul.f32 0.03125, %v3466_v23  ;;  %5111 = vrsqrt.f32 %v8405_v35  ;;  %vm3941_vm12 = vweird.f32 %v8405_v35  ;;  %vm3933_vm15 = vmor %vm3931_vm14, %vm3932_vm11 }
 0x65a   : > { %v3594_v40 = vpop.xlane.xlu2 %3593  ;;  %5113 = vtanh.f32 %v4182_v31  ;;  %v3924_v24 = vsel %vm3923_vm8, %v8385_v59, %v3920_v14  ;;  %v3418_v20 = vpop.f32.mrf.mxu3  ;;  %v3927_v42 = vmul.f32 %v8407_v32, %v3926_v8 }
 0x65b   : > { %v3673_v41 = vmul.f32 %v8410_v60, %v8410_v60  ;;  %v3641_v56 = vmul.f32 0.03125, %v3594_v40  ;;  %v8442_v25 = vadd.f32 %v3418_v20, %v3330_v38  ;;  %5115 = vtanh.f32 %v4181_v62  ;;  %v3331_v26 = vpop.f32.mrf.mxu2 }
 0x65c   : > { %v4118_v27 = vmul.f32 %v3924_v24, %v3734_v11  ;;  %v3332_v46 = vadd.f32 %v3331_v26, %v7450_v28  ;;  %v3928_v33 = vmul.f32 0.5, %v3927_v42  ;;  %v4183_v24 = vadd.f32 %v8082_v21, %v4150_v63 }
 0x65d   : > { %v3705_v29 = vsub.f32 %v3641_v56, %v3673_v41  ;;  %3485 = vadd.xlane.f32.xlu2 %v8442_v25  ;;  %v3555_v3 = vmul.f32 %v8442_v25, %v8442_v25 }
 0x65e   : > { %v4151_v39 = vmul.f32 %v8080_v50, %v4118_v27  ;;  %v3929_v31 = vsub.f32 1.5, %v3928_v33 }
 0x65f   : > { %v8440_v44 = vadd.f32 1e-05, %v3705_v29  ;;  %v8444_v45 = vpop.eup %5111  ;;  %3613 = vadd.xlane.f32.xlu1 %v3555_v3 }
 0x660   : > { %v3468_v9 = vpop.xlane.xlu1 %3467  ;;  %v3936_v59 = vmul.f32 %v8444_v45, %v8405_v35  ;;  %v5114_v58 = vpop.eup %5113  ;;  %v4184_v38 = vadd.f32 %v8082_v21, %v4151_v39  ;;  %vm3942_vm10 = vweird.f32 %v8444_v45  ;;  %v3930_v20 = vmul.f32 %v8407_v32, %v3929_v31 }
 0x661   : > { %v8452_v34 = vmul.f32 0.03125, %v3468_v9  ;;  %5117 = vrsqrt.f32 %v8440_v44  ;;  %v5116_v49 = vpop.eup %5115  ;;  %vm8486_vm13 = vmor %vm3941_vm12, %vm3942_vm10  ;;  %v3736_v35 = vsub.f32 %v7932_v30, %v8392_v2  ;;  %vm3951_vm4 = vweird.f32 %v8440_v44 }
 0x662   : > { %v3596_v4 = vpop.xlane.xlu0 %3595  ;;  %v3937_v55 = vmul.f32 %v8444_v45, %v3936_v59  ;;  %v4240_v61 = vpack.c.bf16 %v5114_v58, %v5116_v49  ;;  %v3420_v51 = vpop.f32.mrf.mxu3  ;;  %v3934_v57 = vsel %vm3933_vm15, %v8407_v32, %v3930_v20  ;;  %vm4405_vm10 = vcmask 261120  }
 0x663   : > { %v3642_v36 = vmul.f32 0.03125, %v3596_v4  ;;  %v3674_v53 = vmul.f32 %v8452_v34, %v8452_v34  ;;  %v8462_v19 = vadd.f32 %v3420_v51, %v3332_v46  ;;  %v3334_v11 = vpop.f32.mrf.mxu2 }
 0x664   : > { %v3938_v37 = vmul.f32 0.5, %v3937_v55  ;;  %4349 = vmatmul.bf16.gmra.mxu0 %v4240_v61  ;;  %v3335_v27 = vadd.f32 %v3334_v11, %v7450_v28 }
 0x665   : > { %v3706_v1 = vsub.f32 %v3642_v36, %v3674_v53  ;;  %3487 = vadd.xlane.f32.xlu0 %v8462_v19  ;;  %v3556_v56 = vmul.f32 %v8462_v19, %v8462_v19 }
 0x666   : > { %v3939_v23 = vsub.f32 1.5, %v3938_v37 }
 0x667   : > { %v8465_v18 = vadd.f32 1e-05, %v3706_v1  ;;  %v8467_v40 = vpop.eup %5117  ;;  %3615 = vadd.xlane.f32.xlu2 %v3556_v56 }
 0x668   : > { %v3470_v14 = vpop.xlane.xlu1 %3469  ;;  %v3940_v62 = vmul.f32 %v8444_v45, %v3939_v23  ;;  %v3946_v6 = vmul.f32 %v8467_v40, %v8440_v44  ;;  %vm3952_vm1 = vweird.f32 %v8467_v40  ;;  %v3737_v44 = vsub.f32 %v7954_v12, %v8410_v60 }
 0x669   : > { %v8469_v41 = vmul.f32 0.03125, %v3470_v14  ;;  %5119 = vrsqrt.f32 %v8465_v18  ;;  %vm3961_vm2 = vweird.f32 %v8465_v18  ;;  %vm3953_vm5 = vmor %vm3951_vm4, %vm3952_vm1 }
 0x66a   : > { %v3598_v8 = vpop.xlane.xlu0 %3597  ;;  %5121 = vtanh.f32 %v4184_v38  ;;  %v3944_v9 = vsel %vm8486_vm13, %v8444_v45, %v3940_v62  ;;  %v3947_v4 = vmul.f32 %v8467_v40, %v3946_v6  ;;  %v3735_v45 = vsub.f32 %v7902_v16, %v8351_v48 }
 0x66b   : > { %v3675_v29 = vmul.f32 %v8469_v41, %v8469_v41  ;;  %v3643_v13 = vmul.f32 0.03125, %v3598_v8  ;;  %5123 = vtanh.f32 %v4183_v24  ;;  %v3423_v43 = vpop.f32.mrf.mxu3  ;;  %v4120_v58 = vmul.f32 %v3944_v9, %v3736_v35  ;;  %v3336_v53 = vpop.f32.mrf.mxu2 }
 0x66c   : > { %v8507_v36 = vadd.f32 %v3423_v43, %v3335_v27  ;;  %v4119_v46 = vmul.f32 %v3934_v57, %v3735_v45  ;;  %v3948_v49 = vmul.f32 0.5, %v3947_v4  ;;  %v3337_v1 = vadd.f32 %v3336_v53, %v7450_v28 }
 0x66d   : > { %v3707_v42 = vsub.f32 %v3643_v13, %v3675_v29  ;;  %v4153_v51 = vmul.f32 %v8080_v50, %v4120_v58 }
 0x66e   : > { %3489 = vadd.xlane.f32.xlu0 %v8507_v36  ;;  %v3557_v37 = vmul.f32 %v8507_v36, %v8507_v36  ;;  %v4152_v14 = vmul.f32 %v8080_v50, %v4119_v46  ;;  %v3949_v56 = vsub.f32 1.5, %v3948_v49 }
 0x66f   : > { %v8497_v59 = vadd.f32 1e-05, %v3707_v42  ;;  %v8499_v26 = vpop.eup %5119  ;;  %v4186_v24 = vadd.f32 %v8082_v21, %v4153_v51 }
 0x670   : > { %v3472_v3 = vpop.xlane.xlu2 %3471  ;;  %v3956_v55 = vmul.f32 %v8499_v26, %v8465_v18  ;;  %v5122_v2 = vpop.eup %5121  ;;  %3617 = vadd.xlane.f32.xlu2 %v3557_v37  ;;  %vm3962_vm0 = vweird.f32 %v8499_v26  ;;  %v4185_v9 = vadd.f32 %v8082_v21, %v4152_v14  ;;  %v3950_v27 = vmul.f32 %v8467_v40, %v3949_v56  ;;  %v5191_v56 = vld [vmem:[%s8794_s5] sm:$0xf] }
 0x671   : > { %v8509_v30 = vmul.f32 0.03125, %v3472_v3  ;;  %5125 = vrsqrt.f32 %v8497_v59  ;;  %v5124_v39 = vpop.eup %5123  ;;  %vm3963_vm3 = vmor %vm3961_vm2, %vm3962_vm0  ;;  %v3738_v3 = vsub.f32 %v7986_v52, %v8452_v34  ;;  %vm3971_vm11 = vweird.f32 %v8497_v59 }
 0x672   : > { %v3957_v33 = vmul.f32 %v8499_v26, %v3956_v55  ;;  %v3600_v32 = vpop.xlane.xlu1 %3599  ;;  %v4241_v23 = vpack.c.bf16 %v5122_v2, %v5124_v39  ;;  %v3954_v45 = vsel %vm3953_vm5, %v8467_v40, %v3950_v27 }
 0x673   : > { %v3676_v16 = vmul.f32 %v8509_v30, %v8509_v30  ;;  %v3644_v48 = vmul.f32 0.03125, %v3600_v32  ;;  %v3425_v62 = vpop.f32.mrf.mxu3  ;;  %v4121_v52 = vmul.f32 %v3954_v45, %v3737_v44 }
 0x674   : > { %v3958_v61 = vmul.f32 0.5, %v3957_v33  ;;  %4354 = vmatmul.bf16.gmra.mxu0 %v4241_v23  ;;  %v8525_v13 = vadd.f32 %v3425_v62, %v3337_v1  ;;  %v8570_v62 = vperm.slane %v5191_v56, 3 }
 0x675   : > { %v3708_v63 = vsub.f32 %v3644_v48, %v3676_v16  ;;  %v4154_v1 = vmul.f32 %v8080_v50, %v4121_v52 }
 0x676   : > { %v3959_v31 = vsub.f32 1.5, %v3958_v61  ;;  %3491 = vadd.xlane.f32.xlu1 %v8525_v13  ;;  %v3558_v42 = vmul.f32 %v8525_v13, %v8525_v13 }
 0x677   : > { %v8521_v38 = vadd.f32 1e-05, %v3708_v63  ;;  %v8523_v29 = vpop.eup %5125 }
 0x678   : > { %v3474_v8 = vpop.xlane.xlu2 %3473  ;;  %v3960_v20 = vmul.f32 %v8499_v26, %v3959_v31  ;;  %v3966_v35 = vmul.f32 %v8523_v29, %v8497_v59  ;;  %3619 = vadd.xlane.f32.xlu0 %v3558_v42  ;;  %vm3972_vm7 = vweird.f32 %v8523_v29 }
 0x679   : > { %v8527_v11 = vmul.f32 0.03125, %v3474_v8  ;;  %5127 = vrsqrt.f32 %v8521_v38  ;;  %v4187_v8 = vadd.f32 %v8082_v21, %v4154_v1  ;;  %vm3981_vm8 = vweird.f32 %v8521_v38  ;;  %vm3973_vm12 = vmor %vm3971_vm11, %vm3972_vm7 }
 0x67a   : > { %v3602_v10 = vpop.xlane.xlu1 %3601  ;;  %5129 = vtanh.f32 %v4186_v24  ;;  %v3964_v4 = vsel %vm3963_vm3, %v8499_v26, %v3960_v20  ;;  %v3967_v58 = vmul.f32 %v8523_v29, %v3966_v35 }
 0x67b   : > { %v3677_v6 = vmul.f32 %v8527_v11, %v8527_v11  ;;  %v3645_v57 = vmul.f32 0.03125, %v3602_v10  ;;  %5131 = vtanh.f32 %v4185_v9  ;;  %v4122_v26 = vmul.f32 %v3964_v4, %v3738_v3 }
 0x67c   : > { %v3968_v49 = vmul.f32 0.5, %v3967_v58 }
 0x67d   : > { %v3709_v43 = vsub.f32 %v3645_v57, %v3677_v6  ;;  %v4155_v12 = vmul.f32 %v8080_v50, %v4122_v26  ;;  %v3739_v57 = vsub.f32 %v8010_v47, %v8469_v41 }
 0x67e   : > { %v3969_v51 = vsub.f32 1.5, %v3968_v49 }
 0x67f   : > { %v5128_v18 = vpop.eup %5127  ;;  %v8552_v55 = vadd.f32 1e-05, %v3709_v43  ;;  %v4188_v31 = vadd.f32 %v8082_v21, %v4155_v12 }
 0x680   : > { %v3476_v2 = vpop.xlane.xlu0 %3475  ;;  %v3976_v46 = vmul.f32 %v5128_v18, %v8521_v38  ;;  %v5130_v53 = vpop.eup %5129  ;;  %vm3982_vm6 = vweird.f32 %v5128_v18  ;;  %v3970_v24 = vmul.f32 %v8523_v29, %v3969_v51  ;;  %v3740_v38 = vsub.f32 %v8060_v15, %v8509_v30 }
 0x681   : > { %v8557_v33 = vmul.f32 0.03125, %v3476_v2  ;;  %5133 = vrsqrt.f32 %v8552_v55  ;;  %v5132_v48 = vpop.eup %5131  ;;  %vm3983_vm9 = vmor %vm3981_vm8, %vm3982_vm6  ;;  %vm3991_vm1 = vweird.f32 %v8552_v55 }
 0x682   : > { %v3604_v32 = vpop.xlane.xlu2 %3603  ;;  %v3977_v34 = vmul.f32 %v5128_v18, %v3976_v46  ;;  %v4242_v60 = vpack.c.bf16 %v5130_v53, %v5132_v48  ;;  %v3974_v27 = vsel %vm3973_vm12, %v8523_v29, %v3970_v24 }
 0x683   : > { %v3678_v40 = vmul.f32 %v8557_v33, %v8557_v33  ;;  %v3646_v16 = vmul.f32 0.03125, %v3604_v32  ;;  %v4123_v3 = vmul.f32 %v3974_v27, %v3739_v57 }
 0x684   : > { %v3978_v37 = vmul.f32 0.5, %v3977_v34  ;;  %4359 = vmatmul.bf16.gmra.mxu0 %v4242_v60  ;;  %v4325_v6 = vpop.f32.mrf.mxu0 }
 0x685   : > { %v3710_v39 = vsub.f32 %v3646_v16, %v3678_v40  ;;  %v4326_v42 = vadd.f32 %v4325_v6, %v8570_v62  ;;  %v4156_v46 = vmul.f32 %v8080_v50, %v4123_v3  ;;  %v3742_v40 = vsub.f32 %v8139_v54, %v8557_v33 }
 0x686   : > { %v3979_v61 = vsub.f32 1.5, %v3978_v37  ;;  %v3741_v16 = vsub.f32 %v8087_v5, %v8527_v11 }
 0x687   : > { %v3774_v23 = vadd.f32 1e-05, %v3710_v39  ;;  %v8564_v63 = vpop.eup %5133  ;;  %4406 = vst.msk [vmem:[%s8583_s17] sm:$0xff] %vm4405_vm10, %v4326_v42  ;;  %v4189_v53 = vadd.f32 %v8082_v21, %v4156_v46 }
 0x688   : > { %v3980_v14 = vmul.f32 %v5128_v18, %v3979_v61  ;;  %v3986_v20 = vmul.f32 %v8564_v63, %v8552_v55  ;;  %vm3992_vm14 = vweird.f32 %v8564_v63 }
 0x689   : > { %5135 = vrsqrt.f32 %v3774_v23  ;;  %vm4001_vm15 = vweird.f32 %v3774_v23  ;;  %vm3993_vm2 = vmor %vm3991_vm1, %vm3992_vm14 }
 0x68a   : > { %5137 = vtanh.f32 %v4188_v31  ;;  %v3984_v10 = vsel %vm3983_vm9, %v5128_v18, %v3980_v14  ;;  %v3987_v35 = vmul.f32 %v8564_v63, %v3986_v20 }
 0x68b   : > { %5139 = vtanh.f32 %v4187_v8  ;;  %v4124_v59 = vmul.f32 %v3984_v10, %v3740_v38 }
 0x68c   : > { %v3988_v45 = vmul.f32 0.5, %v3987_v35  ;;  %v4327_v30 = vpop.f32.mrf.mxu0 }
 0x68d   : > { %v4157_v2 = vmul.f32 %v8080_v50, %v4124_v59  ;;  %v4328_v29 = vadd.f32 %v4327_v30, %v8570_v62 }
 0x68e   : > { %v3989_v32 = vsub.f32 1.5, %v3988_v45 }
 0x68f   : > { %v5136_v9 = vpop.eup %5135  ;;  %4407 = vst.msk [vmem:[%s8583_s17 + $0x8] sm:$0xff] %vm4405_vm10, %v4328_v29  ;;  %v4190_v47 = vadd.f32 %v8082_v21, %v4157_v2 }
 0x690   : > { %v3996_v4 = vmul.f32 %v5136_v9, %v3774_v23  ;;  %v5138_v43 = vpop.eup %5137  ;;  %vm4002_vm13 = vweird.f32 %v5136_v9  ;;  %v3990_v52 = vmul.f32 %v8564_v63, %v3989_v32 }
 0x691   : > { %v5140_v58 = vpop.eup %5139  ;;  %vm4003_vm0 = vmor %vm4001_vm15, %vm4002_vm13  ;;  %5141 = vtanh.f32 %v4190_v47 }
 0x692   : > { %v3997_v18 = vmul.f32 %v5136_v9, %v3996_v4  ;;  %v4243_v44 = vpack.c.bf16 %v5138_v43, %v5140_v58  ;;  %5143 = vtanh.f32 %v4189_v53  ;;  %v3994_v49 = vsel %vm3993_vm2, %v8564_v63, %v3990_v52 }
 0x693   : > { %v4125_v12 = vmul.f32 %v3994_v49, %v3741_v16 }
 0x694   : > { %v3998_v15 = vmul.f32 0.5, %v3997_v18  ;;  %4364 = vmatmul.bf16.gmra.mxu0 %v4243_v44 }
 0x695   : > { %v4158_v51 = vmul.f32 %v8080_v50, %v4125_v12 }
 0x696   : > { %v3999_v26 = vsub.f32 1.5, %v3998_v15 }
 0x697   : > { %v5142_v37 = vpop.eup %5141  ;;  %v4191_v5 = vadd.f32 %v8082_v21, %v4158_v51 }
 0x698   : > { %v4000_v41 = vmul.f32 %v5136_v9, %v3999_v26  ;;  %v5144_v60 = vpop.eup %5143 }
 0x699   : > { %v4244_v1 = vpack.c.bf16 %v5142_v37, %v5144_v60 }
 0x69a   : > { %v4004_v34 = vsel %vm4003_vm0, %v5136_v9, %v4000_v41 }
 0x69b   : > { %v4126_v48 = vmul.f32 %v4004_v34, %v3742_v40 }
 0x69d   : > { %v4159_v55 = vmul.f32 %v8080_v50, %v4126_v48 }
 0x69f   : > { %v4330_v39 = vpop.f32.mrf.mxu0  ;;  %v4192_v54 = vadd.f32 %v8082_v21, %v4159_v55 }
 0x6a0   : > { %v4331_v61 = vadd.f32 %v4330_v39, %v8570_v62 }
 0x6a1   : > { %5145 = vtanh.f32 %v4192_v54 }
 0x6a2   : > { %4408 = vst.msk [vmem:[%s8583_s17 + $0x10] sm:$0xff] %vm4405_vm10, %v4331_v61  ;;  %5147 = vtanh.f32 %v4191_v5 }
 0x6a4   : > { %4369 = vmatmul.bf16.gmra.mxu0 %v4244_v1 }
 0x6a7   : > { %v4332_v11 = vpop.f32.mrf.mxu0  ;;  %v3339_v33 = vpop.f32.mrf.mxu2 }
 0x6a8   : > { %v4333_v23 = vadd.f32 %v4332_v11, %v8570_v62  ;;  %v3340_v63 = vadd.f32 %v3339_v33, %v7450_v28  ;;  %v5146_v56 = vpop.eup %5145 }
 0x6a9   : > { %v3428_v31 = vpop.f32.mrf.mxu3  ;;  %v5148_v20 = vpop.eup %5147 }
 0x6aa   : > { %4409 = vst.msk [vmem:[%s8583_s17 + $0x18] sm:$0xff] %vm4405_vm10, %v4333_v23  ;;  %v8621_v14 = vadd.f32 %v3428_v31, %v3340_v63  ;;  %v4245_v9 = vpack.c.bf16 %v5146_v56, %v5148_v20 }
 0x6ac   : > { %3493 = vadd.xlane.f32.xlu1 %v8621_v14  ;;  %v3559_v8 = vmul.f32 %v8621_v14, %v8621_v14 }
 0x6ae   : > { %3621 = vadd.xlane.f32.xlu0 %v3559_v8 }
 0x6af   : > { %v4335_v6 = vpop.f32.mrf.mxu0  ;;  %v3341_v42 = vpop.f32.mrf.mxu2 }
 0x6b0   : > { %v3478_v24 = vpop.xlane.xlu0 %3477  ;;  %v4336_v38 = vadd.f32 %v4335_v6, %v8570_v62  ;;  %v3342_v27 = vadd.f32 %v3341_v42, %v7450_v28 }
 0x6b1   : > { %v8626_v10 = vmul.f32 0.03125, %v3478_v24  ;;  %v3430_v59 = vpop.f32.mrf.mxu3 }
 0x6b2   : > { %v3606_v57 = vpop.xlane.xlu2 %3605  ;;  %4410 = vst.msk [vmem:[%s8583_s17 + $0x20] sm:$0xff] %vm4405_vm10, %v4336_v38  ;;  %v8634_v43 = vadd.f32 %v3430_v59, %v3342_v27 }
 0x6b3   : > { %v3679_v35 = vmul.f32 %v8626_v10, %v8626_v10  ;;  %v3647_v4 = vmul.f32 0.03125, %v3606_v57  ;;  %v3743_v24 = vsub.f32 %v8320_v0, %v8626_v10 }
 0x6b4   : > { %4374 = vmatmul.bf16.gmra.mxu0 %v4245_v9  ;;  %3495 = vadd.xlane.f32.xlu2 %v8634_v43  ;;  %v3560_v18 = vmul.f32 %v8634_v43, %v8634_v43 }
 0x6b5   : > { %v3711_v3 = vsub.f32 %v3647_v4, %v3679_v35 }
 0x6b6   : > { %3623 = vadd.xlane.f32.xlu1 %v3560_v18 }
 0x6b7   : > { %v3775_v45 = vadd.f32 1e-05, %v3711_v3  ;;  %v4337_v58 = vpop.f32.mrf.mxu0 }
 0x6b8   : > { %v3480_v28 = vpop.xlane.xlu1 %3479  ;;  %v4338_v30 = vadd.f32 %v4337_v58, %v8570_v62 }
 0x6b9   : > { %v3520_v15 = vmul.f32 0.03125, %v3480_v28  ;;  %5149 = vrsqrt.f32 %v3775_v45  ;;  %vm4011_vm4 = vweird.f32 %v3775_v45 }
 0x6ba   : > { %v3608_v2 = vpop.xlane.xlu0 %3607  ;;  %4411 = vst.msk [vmem:[%s8583_s17 + $0x28] sm:$0xff] %vm4405_vm10, %v4338_v30 }
 0x6bb   : > { %v3680_v29 = vmul.f32 %v3520_v15, %v3520_v15  ;;  %v3648_v44 = vmul.f32 0.03125, %v3608_v2  ;;  %v3744_v57 = vsub.f32 %v8344_v7, %v3520_v15 }
 0x6bd   : > { %v3712_v26 = vsub.f32 %v3648_v44, %v3680_v29 }
 0x6bf   : > { %v3776_v46 = vadd.f32 1e-05, %v3712_v26  ;;  %v5150_v32 = vpop.eup %5149 }
 0x6c0   : > { %v3482_v47 = vpop.xlane.xlu1 %3481  ;;  %v4006_v41 = vmul.f32 %v5150_v32, %v3775_v45  ;;  %vm4012_vm3 = vweird.f32 %v5150_v32 }
 0x6c1   : > { %v4340_v53 = vpop.f32.mrf.mxu0  ;;  %5151 = vrsqrt.f32 %v3776_v46  ;;  %v8643_v34 = vmul.f32 0.03125, %v3482_v47  ;;  %vm4013_vm5 = vmor %vm4011_vm4, %vm4012_vm3  ;;  %vm4021_vm7 = vweird.f32 %v3776_v46 }
 0x6c2   : > { %v4341_v52 = vadd.f32 %v4340_v53, %v8570_v62  ;;  %v4007_v40 = vmul.f32 %v5150_v32, %v4006_v41  ;;  %v3610_v49 = vpop.xlane.xlu0 %3609 }
 0x6c3   : > { %v3681_v16 = vmul.f32 %v8643_v34, %v8643_v34  ;;  %v3649_v48 = vmul.f32 0.03125, %v3610_v49 }
 0x6c4   : > { %4412 = vst.msk [vmem:[%s8583_s17 + $0x30] sm:$0xff] %vm4405_vm10, %v4341_v52  ;;  %v4008_v37 = vmul.f32 0.5, %v4007_v40 }
 0x6c5   : > { %v3713_v12 = vsub.f32 %v3649_v48, %v3681_v16 }
 0x6c6   : > { %v4009_v39 = vsub.f32 1.5, %v4008_v37 }
 0x6c7   : > { %v5152_v60 = vpop.eup %5151  ;;  %v8649_v61 = vadd.f32 1e-05, %v3713_v12 }
 0x6c8   : > { %v4016_v55 = vmul.f32 %v5152_v60, %v3776_v46  ;;  %v3484_v1 = vpop.xlane.xlu2 %3483  ;;  %v4010_v51 = vmul.f32 %v5150_v32, %v4009_v39  ;;  %vm4022_vm6 = vweird.f32 %v5152_v60 }
 0x6c9   : > { %v4342_v54 = vpop.f32.mrf.mxu0  ;;  %v8651_v5 = vmul.f32 0.03125, %v3484_v1  ;;  %5153 = vrsqrt.f32 %v8649_v61  ;;  %vm4023_vm8 = vmor %vm4021_vm7, %vm4022_vm6  ;;  %vm4031_vm11 = vweird.f32 %v8649_v61 }
 0x6ca   : > { %v4017_v11 = vmul.f32 %v5152_v60, %v4016_v55  ;;  %v4343_v33 = vadd.f32 %v4342_v54, %v8570_v62  ;;  %v3612_v23 = vpop.xlane.xlu1 %3611  ;;  %v4014_v56 = vsel %vm4013_vm5, %v5150_v32, %v4010_v51 }
 0x6cb   : > { %v3682_v63 = vmul.f32 %v8651_v5, %v8651_v5  ;;  %v3650_v31 = vmul.f32 0.03125, %v3612_v23  ;;  %v4127_v42 = vmul.f32 %v4014_v56, %v3743_v24 }
 0x6cc   : > { %v4018_v8 = vmul.f32 0.5, %v4017_v11  ;;  %4413 = vst.msk [vmem:[%s8583_s17 + $0x38] sm:$0xff] %vm4405_vm10, %v4343_v33  ;;  %v3745_v33 = vsub.f32 %v8383_v22, %v8643_v34 }
 0x6cd   : > { %v3714_v20 = vsub.f32 %v3650_v31, %v3682_v63  ;;  %v4160_v58 = vmul.f32 %v8080_v50, %v4127_v42 }
 0x6ce   : > { %v4019_v6 = vsub.f32 1.5, %v4018_v8  ;;  %v3746_v8 = vsub.f32 %v8402_v17, %v8651_v5 }
 0x6cf   : > { %v3778_v38 = vadd.f32 1e-05, %v3714_v20  ;;  %v5154_v9 = vpop.eup %5153  ;;  %v4193_v29 = vadd.f32 %v8082_v21, %v4160_v58 }
 0x6d0   : > { %v4020_v27 = vmul.f32 %v5152_v60, %v4019_v6  ;;  %v3486_v35 = vpop.xlane.xlu2 %3485  ;;  %v4026_v59 = vmul.f32 %v5154_v9, %v8649_v61  ;;  %vm4032_vm9 = vweird.f32 %v5154_v9 }
 0x6d1   : > { %v4345_v4 = vpop.f32.mrf.mxu0  ;;  %5155 = vrsqrt.f32 %v3778_v38  ;;  %v8664_v10 = vmul.f32 0.03125, %v3486_v35  ;;  %vm4033_vm12 = vmor %vm4031_vm11, %vm4032_vm9  ;;  %vm4041_vm14 = vweird.f32 %v3778_v38 }
 0x6d2   : > { %v4024_v3 = vsel %vm4023_vm8, %v5152_v60, %v4020_v27  ;;  %v4346_v0 = vadd.f32 %v4345_v4, %v8570_v62  ;;  %v4027_v45 = vmul.f32 %v5154_v9, %v4026_v59  ;;  %v3614_v28 = vpop.xlane.xlu1 %3613  ;;  %5157 = vtanh.f32 %v4193_v29 }
 0x6d3   : > { %v4128_v18 = vmul.f32 %v4024_v3, %v3744_v57  ;;  %v3683_v7 = vmul.f32 %v8664_v10, %v8664_v10  ;;  %v3651_v15 = vmul.f32 0.03125, %v3614_v28  ;;  %v3747_v58 = vsub.f32 %v8442_v25, %v8664_v10 }
 0x6d4   : > { %4414 = vst.msk [vmem:[%s8583_s17 + $0x40] sm:$0xff] %vm4405_vm10, %v4346_v0  ;;  %v4028_v30 = vmul.f32 0.5, %v4027_v45 }
 0x6d5   : > { %v4161_v2 = vmul.f32 %v8080_v50, %v4128_v18  ;;  %v3715_v44 = vsub.f32 %v3651_v15, %v3683_v7 }
 0x6d6   : > { %v4029_v46 = vsub.f32 1.5, %v4028_v30 }
 0x6d7   : > { %v5156_v26 = vpop.eup %5155  ;;  %v4194_v32 = vadd.f32 %v8082_v21, %v4161_v2  ;;  %v3779_v41 = vadd.f32 1e-05, %v3715_v44 }
 0x6d8   : > { %v4036_v47 = vmul.f32 %v5156_v26, %v3778_v38  ;;  %v3488_v53 = vpop.xlane.xlu0 %3487  ;;  %v4030_v49 = vmul.f32 %v5154_v9, %v4029_v46  ;;  %v5158_v1 = vpop.eup %5157  ;;  %vm4042_vm13 = vweird.f32 %v5156_v26 }
 0x6d9   : > { %v4347_v52 = vpop.f32.mrf.mxu0  ;;  %v8674_v40 = vmul.f32 0.03125, %v3488_v53  ;;  %5159 = vtanh.f32 %v4194_v32  ;;  %vm4043_vm15 = vmor %vm4041_vm14, %vm4042_vm13  ;;  %vm4051_vm1 = vweird.f32 %v3779_v41 }
 0x6da   : > { %v4037_v16 = vmul.f32 %v5156_v26, %v4036_v47  ;;  %v4348_v48 = vadd.f32 %v4347_v52, %v8570_v62  ;;  %5161 = vrsqrt.f32 %v3779_v41  ;;  %v3616_v37 = vpop.xlane.xlu2 %3615  ;;  %v4034_v51 = vsel %vm4033_vm12, %v5154_v9, %v4030_v49 }
 0x6db   : > { %v3684_v12 = vmul.f32 %v8674_v40, %v8674_v40  ;;  %v3652_v60 = vmul.f32 0.03125, %v3616_v37  ;;  %v4129_v61 = vmul.f32 %v4034_v51, %v3745_v33 }
 0x6dc   : > { %v4038_v39 = vmul.f32 0.5, %v4037_v16  ;;  %4415 = vst.msk [vmem:[%s8583_s17 + $0x48] sm:$0xff] %vm4405_vm10, %v4348_v48 }
 0x6dd   : > { %v3716_v55 = vsub.f32 %v3652_v60, %v3684_v12  ;;  %v4162_v57 = vmul.f32 %v8080_v50, %v4129_v61  ;;  %v3748_v12 = vsub.f32 %v8462_v19, %v8674_v40 }
 0x6de   : > { %v4039_v54 = vsub.f32 1.5, %v4038_v39 }
 0x6df   : > { %v5160_v11 = vpop.eup %5159  ;;  %v3780_v23 = vadd.f32 1e-05, %v3716_v55  ;;  %v4195_v0 = vadd.f32 %v8082_v21, %v4162_v57 }
 0x6e0   : > { %v5162_v63 = vpop.eup %5161  ;;  %v4040_v31 = vmul.f32 %v5156_v26, %v4039_v54  ;;  %v4246_v56 = vpack.c.bf16 %v5160_v11, %v5158_v1 }
 0x6e1   : > { %v4046_v24 = vmul.f32 %v5162_v63, %v3779_v41  ;;  %v4350_v20 = vpop.f32.mrf.mxu0  ;;  %5163 = vrsqrt.f32 %v3780_v23  ;;  %v3490_v34 = vpop.xlane.xlu0 %3489  ;;  %vm4052_vm0 = vweird.f32 %v5162_v63  ;;  %vm4061_vm4 = vweird.f32 %v3780_v23 }
 0x6e2   : > { %v4044_v6 = vsel %vm4043_vm15, %v5156_v26, %v4040_v31  ;;  %v4351_v42 = vadd.f32 %v4350_v20, %v8570_v62  ;;  %4379 = vmatmul.bf16.gmra.mxu0 %v4246_v56  ;;  %v8689_v27 = vmul.f32 0.03125, %v3490_v34  ;;  %5165 = vtanh.f32 %v4195_v0  ;;  %vm4053_vm2 = vmor %vm4051_vm1, %vm4052_vm0 }
 0x6e3   : > { %v4130_v9 = vmul.f32 %v4044_v6, %v3746_v8  ;;  %v4047_v22 = vmul.f32 %v5162_v63, %v4046_v24  ;;  %v3618_v35 = vpop.xlane.xlu2 %3617 }
 0x6e4   : > { %4416 = vst.msk [vmem:[%s8583_s17 + $0x50] sm:$0xff] %vm4405_vm10, %v4351_v42  ;;  %v3685_v5 = vmul.f32 %v8689_v27, %v8689_v27  ;;  %v3653_v59 = vmul.f32 0.03125, %v3618_v35  ;;  %v3749_v42 = vsub.f32 %v8507_v36, %v8689_v27 }
 0x6e5   : > { %v4048_v38 = vmul.f32 0.5, %v4047_v22  ;;  %v4163_v17 = vmul.f32 %v8080_v50, %v4130_v9 }
 0x6e6   : > { %v3717_v28 = vsub.f32 %v3653_v59, %v3685_v5 }
 0x6e7   : > { %v5164_v4 = vpop.eup %5163  ;;  %v4049_v3 = vsub.f32 1.5, %v4048_v38  ;;  %v4196_v18 = vadd.f32 %v8082_v21, %v4163_v17 }
 0x6e8   : > { %v4056_v45 = vmul.f32 %v5164_v4, %v3780_v23  ;;  %v3781_v29 = vadd.f32 1e-05, %v3717_v28  ;;  %vm4062_vm3 = vweird.f32 %v5164_v4  ;;  %v5166_v52 = vpop.eup %5165 }
 0x6e9   : > { %v4050_v7 = vmul.f32 %v5162_v63, %v4049_v3  ;;  %v4352_v15 = vpop.f32.mrf.mxu0  ;;  %v3492_v44 = vpop.xlane.xlu1 %3491  ;;  %5167 = vtanh.f32 %v4196_v18  ;;  %vm4063_vm5 = vmor %vm4061_vm4, %vm4062_vm3 }
 0x6ea   : > { %v4057_v30 = vmul.f32 %v5164_v4, %v4056_v45  ;;  %v4353_v2 = vadd.f32 %v4352_v15, %v8570_v62  ;;  %v8700_v46 = vmul.f32 0.03125, %v3492_v44  ;;  %5169 = vrsqrt.f32 %v3781_v29 }
 0x6eb   : > { %v4054_v26 = vsel %vm4053_vm2, %v5162_v63, %v4050_v7  ;;  %v3620_v25 = vpop.xlane.xlu0 %3619  ;;  %vm4071_vm7 = vweird.f32 %v3781_v29 }
 0x6ec   : > { %v4131_v32 = vmul.f32 %v4054_v26, %v3747_v58  ;;  %v4058_v47 = vmul.f32 0.5, %v4057_v30  ;;  %4417 = vst.msk [vmem:[%s8583_s17 + $0x58] sm:$0xff] %vm4405_vm10, %v4353_v2  ;;  %v3686_v10 = vmul.f32 %v8700_v46, %v8700_v46  ;;  %v3654_v41 = vmul.f32 0.03125, %v3620_v25 }
 0x6ed   : > { %v3750_v27 = vsub.f32 %v8525_v13, %v8700_v46 }
 0x6ee   : > { %v4059_v53 = vsub.f32 1.5, %v4058_v47  ;;  %v3718_v49 = vsub.f32 %v3654_v41, %v3686_v10  ;;  %v4164_v37 = vmul.f32 %v8080_v50, %v4131_v32 }
 0x6ef   : > { %v5168_v16 = vpop.eup %5167 }
 0x6f0   : > { %v4060_v48 = vmul.f32 %v5164_v4, %v4059_v53  ;;  %v3782_v39 = vadd.f32 1e-05, %v3718_v49  ;;  %v4247_v55 = vpack.c.bf16 %v5168_v16, %v5166_v52  ;;  %v5170_v1 = vpop.eup %5169  ;;  %v4197_v23 = vadd.f32 %v8082_v21, %v4164_v37 }
 0x6f1   : > { %v4355_v60 = vpop.f32.mrf.mxu0  ;;  %v4066_v33 = vmul.f32 %v5170_v1, %v3781_v29  ;;  %vm4072_vm6 = vweird.f32 %v5170_v1 }
 0x6f2   : > { %v4064_v51 = vsel %vm4063_vm5, %v5164_v4, %v4060_v48  ;;  %v4356_v54 = vadd.f32 %v4355_v60, %v8570_v62  ;;  %5171 = vrsqrt.f32 %v3782_v39  ;;  %4384 = vmatmul.bf16.gmra.mxu0 %v4247_v55  ;;  %vm4073_vm8 = vmor %vm4071_vm7, %vm4072_vm6  ;;  %vm4081_vm11 = vweird.f32 %v3782_v39 }
 0x6f3   : > { %v4132_v11 = vmul.f32 %v4064_v51, %v3748_v12  ;;  %v4067_v63 = vmul.f32 %v5170_v1, %v4066_v33  ;;  %5173 = vtanh.f32 %v4197_v23 }
 0x6f4   : > { %4418 = vst.msk [vmem:[%s8583_s17 + $0x60] sm:$0xff] %vm4405_vm10, %v4356_v54 }
 0x6f5   : > { %v4165_v31 = vmul.f32 %v8080_v50, %v4132_v11  ;;  %v4068_v19 = vmul.f32 0.5, %v4067_v63 }
 0x6f7   : > { %v4198_v40 = vadd.f32 %v8082_v21, %v4165_v31  ;;  %v4069_v61 = vsub.f32 1.5, %v4068_v19 }
 0x6f8   : > { %v5172_v56 = vpop.eup %5171 }
 0x6f9   : > { %v4357_v8 = vpop.f32.mrf.mxu0  ;;  %5175 = vtanh.f32 %v4198_v40  ;;  %v4076_v24 = vmul.f32 %v5172_v56, %v3782_v39  ;;  %v4070_v6 = vmul.f32 %v5170_v1, %v4069_v61  ;;  %v5174_v34 = vpop.eup %5173  ;;  %vm4082_vm9 = vweird.f32 %v5172_v56 }
 0x6fa   : > { %v4358_v20 = vadd.f32 %v4357_v8, %v8570_v62  ;;  %vm4083_vm12 = vmor %vm4081_vm11, %vm4082_vm9 }
 0x6fb   : > { %v4077_v9 = vmul.f32 %v5172_v56, %v4076_v24  ;;  %v4074_v22 = vsel %vm4073_vm8, %v5170_v1, %v4070_v6 }
 0x6fc   : > { %4419 = vst.msk [vmem:[%s8583_s17 + $0x68] sm:$0xff] %vm4405_vm10, %v4358_v20  ;;  %v4133_v38 = vmul.f32 %v4074_v22, %v3749_v42 }
 0x6fd   : > { %v4078_v35 = vmul.f32 0.5, %v4077_v9 }
 0x6fe   : > { %v4166_v36 = vmul.f32 %v8080_v50, %v4133_v38 }
 0x6ff   : > { %v5176_v57 = vpop.eup %5175  ;;  %v4079_v17 = vsub.f32 1.5, %v4078_v35 }
 0x700   : > { %v4248_v5 = vpack.c.bf16 %v5176_v57, %v5174_v34  ;;  %v4199_v45 = vadd.f32 %v8082_v21, %v4166_v36 }
 0x701   : > { %v4360_v59 = vpop.f32.mrf.mxu0  ;;  %v4080_v4 = vmul.f32 %v5172_v56, %v4079_v17 }
 0x702   : > { %v4361_v3 = vadd.f32 %v4360_v59, %v8570_v62  ;;  %4389 = vmatmul.bf16.gmra.mxu0 %v4248_v5  ;;  %5177 = vtanh.f32 %v4199_v45 }
 0x703   : > { %v4084_v0 = vsel %vm4083_vm12, %v5172_v56, %v4080_v4 }
 0x704   : > { %4420 = vst.msk [vmem:[%s8583_s17 + $0x70] sm:$0xff] %vm4405_vm10, %v4361_v3  ;;  %v4134_v18 = vmul.f32 %v4084_v0, %v3750_v27 }
 0x706   : > { %v4167_v28 = vmul.f32 %v8080_v50, %v4134_v18 }
 0x708   : > { %v4200_v7 = vadd.f32 %v8082_v21, %v4167_v28  ;;  %v5178_v13 = vpop.eup %5177 }
 0x709   : > { %v4362_v58 = vpop.f32.mrf.mxu0 }
 0x70a   : > { %v4363_v15 = vadd.f32 %v4362_v58, %v8570_v62  ;;  %5179 = vtanh.f32 %v4200_v7 }
 0x70c   : > { %4421 = vst.msk [vmem:[%s8583_s17 + $0x78] sm:$0xff] %vm4405_vm10, %v4363_v15 }
 0x710   : > { %v5180_v30 = vpop.eup %5179 }
 0x711   : > { %v4365_v2 = vpop.f32.mrf.mxu0  ;;  %v4249_v44 = vpack.c.bf16 %v5180_v30, %v5178_v13 }
 0x712   : > { %v4366_v29 = vadd.f32 %v4365_v2, %v8570_v62 }
 0x713   : > { %4394 = vmatmul.bf16.gmra.mxu0 %v4249_v44 }
 0x714   : > { %4422 = vst.msk [vmem:[%s8583_s17 + $0x80] sm:$0xff] %vm4405_vm10, %v4366_v29 }
 0x719   : > { %v4367_v26 = vpop.f32.mrf.mxu0 }
 0x71a   : > { %v4368_v46 = vadd.f32 %v4367_v26, %v8570_v62 }
 0x71c   : > { %4423 = vst.msk [vmem:[%s8583_s17 + $0x88] sm:$0xff] %vm4405_vm10, %v4368_v46 }
 0x71f   : > { %v3494_v47 = vpop.xlane.xlu1 %3493 }
 0x720   : > { %v3527_v10 = vmul.f32 0.03125, %v3494_v47 }
 0x721   : > { %v4370_v32 = vpop.f32.mrf.mxu0  ;;  %v3622_v41 = vpop.xlane.xlu0 %3621 }
 0x722   : > { %v4371_v25 = vadd.f32 %v4370_v32, %v8570_v62  ;;  %v3687_v53 = vmul.f32 %v3527_v10, %v3527_v10  ;;  %v3655_v52 = vmul.f32 0.03125, %v3622_v41  ;;  %v3751_v6 = vsub.f32 %v8621_v14, %v3527_v10 }
 0x724   : > { %4424 = vst.msk [vmem:[%s8583_s17 + $0x90] sm:$0xff] %vm4405_vm10, %v4371_v25  ;;  %v3719_v49 = vsub.f32 %v3655_v52, %v3687_v53 }
 0x726   : > { %v3783_v16 = vadd.f32 1e-05, %v3719_v49 }
 0x727   : > { %v3496_v37 = vpop.xlane.xlu2 %3495 }
 0x728   : > { %5181 = vrsqrt.f32 %v3783_v16  ;;  %v3528_v60 = vmul.f32 0.03125, %v3496_v37  ;;  %vm4091_vm14 = vweird.f32 %v3783_v16 }
 0x729   : > { %v4372_v48 = vpop.f32.mrf.mxu0  ;;  %v3624_v39 = vpop.xlane.xlu1 %3623 }
 0x72a   : > { %v4373_v12 = vadd.f32 %v4372_v48, %v8570_v62  ;;  %v3688_v55 = vmul.f32 %v3528_v60, %v3528_v60  ;;  %v3656_v1 = vmul.f32 0.03125, %v3624_v39  ;;  %v3752_v17 = vsub.f32 %v8634_v43, %v3528_v60 }
 0x72c   : > { %4425 = vst.msk [vmem:[%s8583_s17 + $0x98] sm:$0xff] %vm4405_vm10, %v4373_v12  ;;  %v3720_v51 = vsub.f32 %v3656_v1, %v3688_v55 }
 0x72e   : > { %v5182_v54 = vpop.eup %5181  ;;  %v3784_v11 = vadd.f32 1e-05, %v3720_v51 }
 0x72f   : > { %v4086_v23 = vmul.f32 %v5182_v54, %v3783_v16  ;;  %vm4092_vm13 = vweird.f32 %v5182_v54 }
 0x730   : > { %5183 = vrsqrt.f32 %v3784_v11  ;;  %vm4093_vm15 = vmor %vm4091_vm14, %vm4092_vm13  ;;  %vm4101_vm1 = vweird.f32 %v3784_v11 }
 0x731   : > { %v4375_v33 = vpop.f32.mrf.mxu0  ;;  %v4087_v31 = vmul.f32 %v5182_v54, %v4086_v23 }
 0x732   : > { %v4376_v63 = vadd.f32 %v4375_v33, %v8570_v62 }
 0x733   : > { %v4088_v19 = vmul.f32 0.5, %v4087_v31 }
 0x734   : > { %4426 = vst.msk [vmem:[%s8583_s17 + $0xa0] sm:$0xff] %vm4405_vm10, %v4376_v63 }
 0x735   : > { %v4089_v40 = vsub.f32 1.5, %v4088_v19 }
 0x736   : > { %v5184_v56 = vpop.eup %5183 }
 0x737   : > { %v4090_v8 = vmul.f32 %v5182_v54, %v4089_v40  ;;  %v4096_v24 = vmul.f32 %v5184_v56, %v3784_v11  ;;  %vm4102_vm0 = vweird.f32 %v5184_v56 }
 0x738   : > { %vm4103_vm2 = vmor %vm4101_vm1, %vm4102_vm0 }
 0x739   : > { %v4377_v61 = vpop.f32.mrf.mxu0  ;;  %v4094_v42 = vsel %vm4093_vm15, %v5182_v54, %v4090_v8  ;;  %v4097_v9 = vmul.f32 %v5184_v56, %v4096_v24 }
 0x73a   : > { %v4378_v20 = vadd.f32 %v4377_v61, %v8570_v62  ;;  %v4135_v22 = vmul.f32 %v4094_v42, %v3751_v6 }
 0x73b   : > { %v4098_v34 = vmul.f32 0.5, %v4097_v9 }
 0x73c   : > { %4427 = vst.msk [vmem:[%s8583_s17 + $0xa8] sm:$0xff] %vm4405_vm10, %v4378_v20  ;;  %v4168_v35 = vmul.f32 %v8080_v50, %v4135_v22 }
 0x73d   : > { %v4099_v38 = vsub.f32 1.5, %v4098_v34 }
 0x73e   : > { %v4201_v14 = vadd.f32 %v8082_v21, %v4168_v35 }
 0x73f   : > { %v4100_v57 = vmul.f32 %v5184_v56, %v4099_v38 }
 0x740   : > { %5185 = vtanh.f32 %v4201_v14 }
 0x741   : > { %v4104_v5 = vsel %vm4103_vm2, %v5184_v56, %v4100_v57 }
 0x742   : > { %v4136_v59 = vmul.f32 %v4104_v5, %v3752_v17 }
 0x744   : > { %v4169_v4 = vmul.f32 %v8080_v50, %v4136_v59 }
 0x746   : > { %v4202_v3 = vadd.f32 %v8082_v21, %v4169_v4  ;;  %v5186_v36 = vpop.eup %5185 }
 0x748   : > { %5187 = vtanh.f32 %v4202_v3 }
 0x74e   : > { %v5188_v27 = vpop.eup %5187 }
 0x74f   : > { %v4250_v0 = vpack.c.bf16 %v5188_v27, %v5186_v36 }
 0x751   : > { %4399 = vmatmul.bf16.gmra.mxu0 %v4250_v0 }
 0x75f   : > { %v4380_v43 = vpop.f32.mrf.mxu0 }
 0x760   : > { %v4381_v18 = vadd.f32 %v4380_v43, %v8570_v62 }
 0x762   : > { %4428 = vst.msk [vmem:[%s8583_s17 + $0xb0] sm:$0xff] %vm4405_vm10, %v4381_v18 }
 0x767   : > { %v4382_v45 = vpop.f32.mrf.mxu0 }
 0x768   : > { %v4383_v50 = vadd.f32 %v4382_v45, %v8570_v62 }
 0x76a   : > { %4429 = vst.msk [vmem:[%s8583_s17 + $0xb8] sm:$0xff] %vm4405_vm10, %v4383_v50 }
 0x76f   : > { %v4385_v21 = vpop.f32.mrf.mxu0 }
 0x770   : > { %v4386_v28 = vadd.f32 %v4385_v21, %v8570_v62 }
 0x772   : > { %4430 = vst.msk [vmem:[%s8583_s17 + $0xc0] sm:$0xff] %vm4405_vm10, %v4386_v28 }
 0x777   : > { %v4387_v58 = vpop.f32.mrf.mxu0 }
 0x778   : > { %v4388_v7 = vadd.f32 %v4387_v58, %v8570_v62 }
 0x77a   : > { %4431 = vst.msk [vmem:[%s8583_s17 + $0xc8] sm:$0xff] %vm4405_vm10, %v4388_v7 }
 0x77f   : > { %v4390_v15 = vpop.f32.mrf.mxu0 }
 0x780   : > { %v4391_v13 = vadd.f32 %v4390_v15, %v8570_v62 }
 0x782   : > { %4432 = vst.msk [vmem:[%s8583_s17 + $0xd0] sm:$0xff] %vm4405_vm10, %v4391_v13 }
 0x787   : > { %v4392_v30 = vpop.f32.mrf.mxu0 }
 0x788   : > { %v4393_v2 = vadd.f32 %v4392_v30, %v8570_v62 }
 0x78a   : > { %4433 = vst.msk [vmem:[%s8583_s17 + $0xd8] sm:$0xff] %vm4405_vm10, %v4393_v2 }
 0x790   : > { %v4395_v29 = vpop.f32.mrf.mxu0 }
 0x791   : > { %v4396_v44 = vadd.f32 %v4395_v29, %v8570_v62 }
 0x793   : > { %4434 = vst.msk [vmem:[%s8583_s17 + $0xe0] sm:$0xff] %vm4405_vm10, %v4396_v44 }
 0x798   : > { %v4397_v26 = vpop.f32.mrf.mxu0 }
 0x799   : > { %v4398_v46 = vadd.f32 %v4397_v26, %v8570_v62 }
 0x79b   : > { %4435 = vst.msk [vmem:[%s8583_s17 + $0xe8] sm:$0xff] %vm4405_vm10, %v4398_v46 }
 0x7ce   : > { %v4400_v32 = vpop.f32.mrf.mxu0 }
 0x7cf   : > { %v4401_v47 = vadd.f32 %v4400_v32, %v8570_v62 }
 0x7d1   : > { %4436 = vst.msk [vmem:[%s8583_s17 + $0xf0] sm:$0xff] %vm4405_vm10, %v4401_v47 }
 0x7d6   : > { %v4402_v25 = vpop.f32.mrf.mxu0 }
 0x7d7   : > { %v4403_v10 = vadd.f32 %v4402_v25, %v8570_v62 }
 0x7d9   : > { %4437 = vst.msk [vmem:[%s8583_s17 + $0xf8] sm:$0xff] %vm4405_vm10, %v4403_v10 }
 0x7da PF: > { %s17_s24 = sadd.s32 1, %s5198_s24  }
 0x7db   : > { %p14_p4 = scmp.ge.s32.totalorder %s17_s24, 4  }
 0x7dd   :  { %16 = sbr.rel (!%p14_p4) target bundleno = 1 (0x1), region = 78 }

</bundles_post_ra>
